<compile_context>
chip_gen: v6e
topology: v6e:2x2x1
jax: 0.10.0
libtpu: 0.0.40
codegen_flags: <defaults>
</compile_context>

<pallas_src>
import math
import jax
import jax.numpy as jnp
from jax.experimental import pallas as pl
from jax.experimental.pallas import tpu as pltpu

# -------------------- small synthetic config (roberta-base scaled down) --------------------
H = 32            # hidden_size            (roberta-base: 768)
HEADS = 4         # num_attention_heads    (roberta-base: 12, module cross-attn: 8)
HD = H // HEADS
V = 64            # vocab_size
FF_ENC = 64       # encoder intermediate size
FF_DEC = 64       # decoder dim_feedforward
N_ENC_LAYERS = 2
N_DEC_LAYERS = 2  # module uses 6; reduced for the small synthetic config
MAX_POS = 66
PAD_ID = 1
NEG = -1e9        # stand-in for -inf additive padding mask
ENC_EPS = 1e-12   # roberta layer_norm_eps
DEC_EPS = 1e-5    # nn.LayerNorm default (TransformerDecoderLayer)
SCALE = 1.0 / math.sqrt(HD)
CDT = jnp.bfloat16                      # MXU operand dtype
VMEM = pltpu.MemorySpace.VMEM


# ------------------------------ in-kernel building blocks -----------------------------------
def _ln(x, g, b, eps):
    mu = jnp.mean(x, axis=-1, keepdims=True)
    xc = x - mu
    var = jnp.mean(xc * xc, axis=-1, keepdims=True)
    return xc * jax.lax.rsqrt(var + eps) * g + b


def _mha(x, mem, addm, wq, bq, wkv, bkv, wo, bo):
    """Multi-head attention: Q from x, fused K|V from mem, additive mask broadcast in-kernel."""
    q = jnp.dot(x.astype(CDT), wq, preferred_element_type=jnp.float32) + bq        # (Tq, H)
    kv = jnp.dot(mem.astype(CDT), wkv, preferred_element_type=jnp.float32) + bkv   # (Tk, 2H)
    k = kv[:, :H]
    v = kv[:, H:]
    ctx = []
    for h in range(HEADS):                                   # static unroll; scores stay lane-dense
        sl = slice(h * HD, (h + 1) * HD)
        s = jax.lax.dot_general(q[:, sl], k[:, sl], (((1,), (1,)), ((), ())),
                                preferred_element_type=jnp.float32) * SCALE + addm
        s = s - jnp.max(s, axis=-1, keepdims=True)
        p = jnp.exp(s)
        p = p * pl.reciprocal(jnp.sum(p, axis=-1, keepdims=True), approx=True)
        ctx.append(jnp.dot(p.astype(CDT), v[:, sl].astype(CDT),
                           preferred_element_type=jnp.float32))                    # (Tq, HD)
    ctx = jnp.concatenate(ctx, axis=-1)                      # (Tq, H)
    return jnp.dot(ctx.astype(CDT), wo, preferred_element_type=jnp.float32) + bo


def _ffn(x, w1, b1, w2, b2, act):
    h = jnp.dot(x.astype(CDT), w1, preferred_element_type=jnp.float32) + b1
    if act == "gelu":
        # TODO(synk): roberta uses exact erf-gelu; tanh approximation used here.
        h = jax.nn.gelu(h, approximate=True)
    else:
        h = jnp.maximum(h, 0.0)
    return jnp.dot(h.astype(CDT), w2, preferred_element_type=jnp.float32) + b2


# ----------------------------------- fused Pallas kernels -----------------------------------
def _encoder_stack_kernel(x_ref, mask_ref, eg_ref, eb_ref,
                          wq_ref, bq_ref, wkv_ref, bkv_ref, wo_ref, bo_ref,
                          g1_ref, b1_ref, fw1_ref, fb1_ref, fw2_ref, fb2_ref,
                          g2_ref, b2_ref, o_ref, acc_ref):
    """All roberta layers; layer axis = grid dim 1; activation carried in VMEM scratch acc_ref."""
    l = pl.program_id(1)

    @pl.when(l == 0)
    def _():  # embedding LayerNorm fused into the first layer's prologue
        acc_ref[0] = _ln(x_ref[0], eg_ref[...], eb_ref[...], ENC_EPS)

    x = acc_ref[0]                                           # (Ts, H) f32
    addm = mask_ref[0]                                       # (1, Ts) additive padding mask
    y = _ln(x + _mha(x, x, addm, wq_ref[0], bq_ref[0], wkv_ref[0], bkv_ref[0],
                     wo_ref[0], bo_ref[0]),
            g1_ref[0], b1_ref[0], ENC_EPS)
    y = _ln(y + _ffn(y, fw1_ref[0], fb1_ref[0], fw2_ref[0], fb2_ref[0], "gelu"),
            g2_ref[0], b2_ref[0], ENC_EPS)
    acc_ref[0] = y

    @pl.when(l == pl.num_programs(1) - 1)
    def _():
        o_ref[0] = y


def encoder_stack(x_emb, addmask, enc):
    B, Ts, _ = x_emb.shape
    L = enc["wq"].shape[0]
    per_b = lambda shp: pl.BlockSpec(shp, lambda b, l: (b, 0, 0))
    per_l = lambda shp: pl.BlockSpec(shp, lambda b, l: (l, 0, 0))
    fixed = lambda shp: pl.BlockSpec(shp, lambda b, l: (0, 0))
    return pl.pallas_call(
        _encoder_stack_kernel,
        out_shape=jax.ShapeDtypeStruct((B, Ts, H), jnp.float32),
        grid=(B, L),
        in_specs=[
            per_b((1, Ts, H)),                               # embedding sum (pre-LN)
            per_b((1, 1, Ts)),                               # additive padding mask
            fixed((1, H)), fixed((1, H)),                    # embedding LN gamma / beta
            per_l((1, H, H)), per_l((1, 1, H)),              # wq, bq            (stacked over L)
            per_l((1, H, 2 * H)), per_l((1, 1, 2 * H)),      # wkv, bkv (fused k|v)
            per_l((1, H, H)), per_l((1, 1, H)),              # wo, bo
            per_l((1, 1, H)), per_l((1, 1, H)),              # ln1 gamma / beta
            per_l((1, H, FF_ENC)), per_l((1, 1, FF_ENC)),    # ff1
            per_l((1, FF_ENC, H)), per_l((1, 1, H)),         # ff2
            per_l((1, 1, H)), per_l((1, 1, H)),              # ln2 gamma / beta
        ],
        out_specs=per_b((1, Ts, H)),
        scratch_shapes=[pltpu.VMEM((1, Ts, H), jnp.float32)],
        compiler_params=pltpu.CompilerParams(
            dimension_semantics=("parallel", "arbitrary")),
    )(x_emb, addmask,
      enc["emb_ln_g"], enc["emb_ln_b"],
      enc["wq"], enc["bq"], enc["wkv"], enc["bkv"], enc["wo"], enc["bo"],
      enc["ln1_g"], enc["ln1_b"], enc["ff1_w"], enc["ff1_b"],
      enc["ff2_w"], enc["ff2_b"], enc["ln2_g"], enc["ln2_b"])


def _decoder_stack_kernel(y_ref, mem_ref, cmask_ref, smask_ref, eg_ref, eb_ref,
                          sq_ref, sbq_ref, skv_ref, sbkv_ref, so_ref, sbo_ref,
                          g1_ref, b1_ref,
                          cq_ref, cbq_ref, ckv_ref, cbkv_ref, co_ref, cbo_ref,
                          g2_ref, b2_ref,
                          fw1_ref, fb1_ref, fw2_ref, fb2_ref, g3_ref, b3_ref,
                          o_ref, acc_ref):
    """All TransformerDecoder layers (post-LN); activation carried in VMEM scratch across layers."""
    l = pl.program_id(1)

    @pl.when(l == 0)
    def _():  # target-embedding LayerNorm (roberta embeddings) fused at l == 0
        acc_ref[0] = _ln(y_ref[0], eg_ref[...], eb_ref[...], ENC_EPS)

    y = acc_ref[0]                                           # (Tt, H)
    mem = mem_ref[0]                                         # (Ts, H)
    causal = cmask_ref[0]                                    # (Tt, Tt) additive causal mask
    kpm = smask_ref[0]                                       # (1, Ts)  memory key-padding mask
    y = _ln(y + _mha(y, y, causal, sq_ref[0], sbq_ref[0], skv_ref[0], sbkv_ref[0],
                     so_ref[0], sbo_ref[0]), g1_ref[0], b1_ref[0], DEC_EPS)
    y = _ln(y + _mha(y, mem, kpm, cq_ref[0], cbq_ref[0], ckv_ref[0], cbkv_ref[0],
                     co_ref[0], cbo_ref[0]), g2_ref[0], b2_ref[0], DEC_EPS)
    y = _ln(y + _ffn(y, fw1_ref[0], fb1_ref[0], fw2_ref[0], fb2_ref[0], "relu"),
            g3_ref[0], b3_ref[0], DEC_EPS)
    acc_ref[0] = y

    @pl.when(l == pl.num_programs(1) - 1)
    def _():
        o_ref[0] = y


def decoder_stack(y_emb, memory, causal_mask, src_addmask, enc, dec):
    B, Tt, _ = y_emb.shape
    Ts = memory.shape[1]
    L = dec["sa_wq"].shape[0]
    per_b = lambda shp: pl.BlockSpec(shp, lambda b, l: (b, 0, 0))
    per_l = lambda shp: pl.BlockSpec(shp, lambda b, l: (l, 0, 0))
    fix3 = lambda shp: pl.BlockSpec(shp, lambda b, l: (0, 0, 0))
    fix2 = lambda shp: pl.BlockSpec(shp, lambda b, l: (0, 0))
    mha_specs = [per_l((1, H, H)), per_l((1, 1, H)),
                 per_l((1, H, 2 * H)), per_l((1, 1, 2 * H)),
                 per_l((1, H, H)), per_l((1, 1, H))]
    ln_specs = [per_l((1, 1, H)), per_l((1, 1, H))]
    return pl.pallas_call(
        _decoder_stack_kernel,
        out_shape=jax.ShapeDtypeStruct((B, Tt, H), jnp.float32),
        grid=(B, L),
        in_specs=[
            per_b((1, Tt, H)),                               # target embedding sum (pre-LN)
            per_b((1, Ts, H)),                               # memory (encoder output + audio attn)
            fix3((1, Tt, Tt)),                               # causal additive mask
            per_b((1, 1, Ts)),                               # memory key-padding additive mask
            fix2((1, H)), fix2((1, H)),                      # embedding LN gamma / beta
        ] + mha_specs + ln_specs                             # self-attn + ln1
          + mha_specs + ln_specs                             # cross-attn + ln2
          + [per_l((1, H, FF_DEC)), per_l((1, 1, FF_DEC)),   # ff1
             per_l((1, FF_DEC, H)), per_l((1, 1, H))]        # ff2
          + ln_specs,                                        # ln3
        out_specs=per_b((1, Tt, H)),
        scratch_shapes=[pltpu.VMEM((1, Tt, H), jnp.float32)],
        compiler_params=pltpu.CompilerParams(
            dimension_semantics=("parallel", "arbitrary")),
    )(y_emb, memory, causal_mask, src_addmask,
      enc["emb_ln_g"], enc["emb_ln_b"],
      dec["sa_wq"], dec["sa_bq"], dec["sa_wkv"], dec["sa_bkv"], dec["sa_wo"], dec["sa_bo"],
      dec["ln1_g"], dec["ln1_b"],
      dec["ca_wq"], dec["ca_bq"], dec["ca_wkv"], dec["ca_bkv"], dec["ca_wo"], dec["ca_bo"],
      dec["ln2_g"], dec["ln2_b"],
      dec["ff1_w"], dec["ff1_b"], dec["ff2_w"], dec["ff2_b"],
      dec["ln3_g"], dec["ln3_b"])


def _xattn_kernel(x_ref, a_ref, wq_ref, bq_ref, wkv_ref, bkv_ref, wo_ref, bo_ref, o_ref):
    """Cross-modal attention (Q=text, K=V=audio) + residual add; no LayerNorm, no mask."""
    x = x_ref[0]
    a = a_ref[0]
    o_ref[0] = x + _mha(x, a, 0.0, wq_ref[...], bq_ref[...], wkv_ref[...], bkv_ref[...],
                        wo_ref[...], bo_ref[...])


def cross_modal_attn(x, audio, p):
    B, Ts, _ = x.shape
    Ta = audio.shape[1]
    per_b = lambda shp: pl.BlockSpec(shp, lambda b: (b, 0, 0))
    fixed = lambda shp: pl.BlockSpec(shp, lambda b: (0, 0))
    return pl.pallas_call(
        _xattn_kernel,
        out_shape=jax.ShapeDtypeStruct((B, Ts, H), jnp.float32),
        grid=(B,),
        in_specs=[per_b((1, Ts, H)), per_b((1, Ta, H)),
                  fixed((H, H)), fixed((1, H)),
                  fixed((H, 2 * H)), fixed((1, 2 * H)),
                  fixed((H, H)), fixed((1, H))],
        out_specs=per_b((1, Ts, H)),
        compiler_params=pltpu.CompilerParams(dimension_semantics=("parallel",)),
    )(x, audio, p["wq"], p["bq"], p["wkv"], p["bkv"], p["wo"], p["bo"])


def _head_ce_kernel(x_ref, wd_ref, bd_ref, we_ref, lab_ref, msk_ref, sum_ref, cnt_ref):
    """Fused: tanh(dense) + tied lm_head + masked cross-entropy; logits never leave VMEM."""
    x = x_ref[...]                                           # (N, H) f32
    hidden = jnp.tanh(jnp.dot(x.astype(CDT), wd_ref[...],
                              preferred_element_type=jnp.float32) + bd_ref[...])
    logits = jnp.dot(hidden.astype(CDT), we_ref[...],
                     preferred_element_type=jnp.float32)     # (N, V), VMEM-resident
    labels = lab_ref[...]                                    # (N, 1) int32
    mask = msk_ref[...] * (labels != -1).astype(jnp.float32)  # CrossEntropyLoss(ignore_index=-1)
    m = jnp.max(logits, axis=-1, keepdims=True)
    lse = jnp.log(jnp.sum(jnp.exp(logits - m), axis=-1, keepdims=True)) + m
    N, Vv = logits.shape
    onehot = (jax.lax.broadcasted_iota(jnp.int32, (N, Vv), 1) == labels).astype(jnp.float32)
    tgt = jnp.sum(onehot * logits, axis=-1, keepdims=True)
    nll = (lse - tgt) * mask
    sum_ref[...] = jnp.sum(nll, keepdims=True)               # (1, 1)
    cnt_ref[...] = jnp.sum(mask, keepdims=True)              # (1, 1)


def head_and_loss(y_shift, dense_w, dense_b, word_emb, labels, active_mask):
    N = y_shift.shape[0]
    s, c = pl.pallas_call(
        _head_ce_kernel,
        out_shape=(jax.ShapeDtypeStruct((1, 1), jnp.float32),
                   jax.ShapeDtypeStruct((1, 1), jnp.float32)),
        in_specs=[pl.BlockSpec(memory_space=VMEM)] * 6,
        out_specs=(pl.BlockSpec(memory_space=VMEM), pl.BlockSpec(memory_space=VMEM)),
    )(y_shift.astype(jnp.float32), dense_w, dense_b, word_emb.T.astype(CDT),
      labels.reshape(N, 1).astype(jnp.int32), active_mask.reshape(N, 1).astype(jnp.float32))
    return s[0, 0], c[0, 0]


# --------------------------------- model building blocks ------------------------------------
def roberta_embed_sum(enc, ids):
    """word + (roberta-style) position + token-type embeddings, WITHOUT the LayerNorm
    (the LN is fused into the first grid step of the encoder/decoder stack kernels)."""
    m = (ids != PAD_ID).astype(jnp.int32)
    pos_ids = jnp.cumsum(m, axis=1) * m + PAD_ID
    return (enc["word_emb"][ids] + enc["pos_emb"][pos_ids]
            + enc["type_emb"][jnp.zeros_like(ids)]).astype(jnp.float32)


def text2text_forward(params, source_ids, source_mask, target_ids, target_mask, audio):
    """Training branch of Text2TextModel.forward (target_ids is not None)."""
    B, Ts = source_ids.shape
    Tt = target_ids.shape[1]
    enc = params["enc"]
    src_f = source_mask.astype(jnp.float32)
    src_addmask = ((1.0 - src_f) * NEG)[:, None, :]          # (B, 1, Ts), broadcast in-kernel

    # ---- encoder: RobertaModel(source_ids, attention_mask=source_mask), whole stack in 1 call ----
    x_emb = roberta_embed_sum(enc, source_ids)
    encoder_output = encoder_stack(x_emb, src_addmask, enc)  # (B, Ts, H)

    # ---- cross-modal attention: attn(encoder_output, audio, audio); residual add, no LN ----
    encoder_output = cross_modal_attn(encoder_output, audio.astype(jnp.float32), params["xattn"])

    # ---- decoder: nn.TransformerDecoder (post-LN, ReLU FFN), causal tgt mask + memory kpm ----
    tril = jnp.tril(jnp.ones((Tt, Tt), jnp.float32))         # self.bias[:Tt, :Tt]
    tgt_addmask = (-10000.0 * (1.0 - tril))[None, :, :]      # (1, Tt, Tt)
    y_emb = roberta_embed_sum(enc, target_ids)               # encoder.embeddings(target_ids)
    y = decoder_stack(y_emb, encoder_output, tgt_addmask, src_addmask, enc, params["dec"])

    # ---- heads + masked cross-entropy loss (fused; full logits never materialized in HBM) ----
    y_shift = y[:, :-1, :].reshape(-1, H)
    shift_labels = target_ids[:, 1:].reshape(-1)
    active = (target_mask[:, 1:] != 0).reshape(-1).astype(jnp.float32)
    loss_sum, cnt = head_and_loss(y_shift, params["dense_w"], params["dense_b"],
                                  enc["word_emb"], shift_labels, active)
    loss = loss_sum / cnt
    return loss, loss * cnt, cnt

# TODO(synk): the inference branch (Beam-search generation) is data-dependent Python control flow
# with topk bookkeeping and is not translated to a Pallas kernel; dropout is omitted (inference math).


# ------------------------------------ parameter init ----------------------------------------
def init_params(key):
    keys = iter(jax.random.split(key, 64))

    def nk(shape):
        return jax.random.normal(next(keys), shape, jnp.float32) * 0.02

    def w(shape):                   # matmul weight: pre-transposed (in, out), bf16 MXU operand
        return nk(shape).astype(CDT)

    def zeros(shape):
        return jnp.zeros(shape, jnp.float32)

    def ones(shape):
        return jnp.ones(shape, jnp.float32)

    def mha_stack(L, prefix=""):    # per-layer weights stacked along a leading layer axis
        return {prefix + "wq": w((L, H, H)), prefix + "bq": zeros((L, 1, H)),
                prefix + "wkv": w((L, H, 2 * H)), prefix + "bkv": zeros((L, 1, 2 * H)),
                prefix + "wo": w((L, H, H)), prefix + "bo": zeros((L, 1, H))}

    enc = {"word_emb": nk((V, H)), "pos_emb": nk((MAX_POS, H)), "type_emb": nk((1, H)),
           "emb_ln_g": ones((1, H)), "emb_ln_b": zeros((1, H)),
           "ln1_g": ones((N_ENC_LAYERS, 1, H)), "ln1_b": zeros((N_ENC_LAYERS, 1, H)),
           "ff1_w": w((N_ENC_LAYERS, H, FF_ENC)), "ff1_b": zeros((N_ENC_LAYERS, 1, FF_ENC)),
           "ff2_w": w((N_ENC_LAYERS, FF_ENC, H)), "ff2_b": zeros((N_ENC_LAYERS, 1, H)),
           "ln2_g": ones((N_ENC_LAYERS, 1, H)), "ln2_b": zeros((N_ENC_LAYERS, 1, H))}
    enc.update(mha_stack(N_ENC_LAYERS))

    dec = {"ln1_g": ones((N_DEC_LAYERS, 1, H)), "ln1_b": zeros((N_DEC_LAYERS, 1, H)),
           "ln2_g": ones((N_DEC_LAYERS, 1, H)), "ln2_b": zeros((N_DEC_LAYERS, 1, H)),
           "ln3_g": ones((N_DEC_LAYERS, 1, H)), "ln3_b": zeros((N_DEC_LAYERS, 1, H)),
           "ff1_w": w((N_DEC_LAYERS, H, FF_DEC)), "ff1_b": zeros((N_DEC_LAYERS, 1, FF_DEC)),
           "ff2_w": w((N_DEC_LAYERS, FF_DEC, H)), "ff2_b": zeros((N_DEC_LAYERS, 1, H))}
    dec.update(mha_stack(N_DEC_LAYERS, "sa_"))
    dec.update(mha_stack(N_DEC_LAYERS, "ca_"))

    xattn = {"wq": w((H, H)), "bq": zeros((1, H)),
             "wkv": w((H, 2 * H)), "bkv": zeros((1, 2 * H)),
             "wo": w((H, H)), "bo": zeros((1, H))}

    return {"enc": enc, "dec": dec, "xattn": xattn,
            "dense_w": w((H, H)), "dense_b": zeros((1, H))}
    # lm_head weight is tied to enc["word_emb"], exactly as in the module.


# ------------------------------------------ main --------------------------------------------
if __name__ == "__main__":
    B, Ts, Tt, Ta = 2, 8, 8, 6
    key = jax.random.PRNGKey(0)
    kp, k1, k2, k3 = jax.random.split(key, 4)
    params = init_params(kp)

    source_ids = jax.random.randint(k1, (B, Ts), 2, V, dtype=jnp.int32)
    target_ids = jax.random.randint(k2, (B, Tt), 2, V, dtype=jnp.int32)
    audio = jax.random.normal(k3, (B, Ta, H), jnp.float32)
    source_mask = jnp.array([[1] * Ts, [1] * (Ts - 2) + [0, 0]], jnp.int32)
    target_mask = jnp.array([[1] * Tt, [1] * (Tt - 3) + [0, 0, 0]], jnp.int32)

    fwd = jax.jit(text2text_forward)
    loss, loss_scaled, active_cnt = fwd(params, source_ids, source_mask,
                                        target_ids, target_mask, audio)
    jax.block_until_ready((loss, loss_scaled, active_cnt))
    assert bool(jnp.isfinite(loss)) and bool(jnp.isfinite(loss_scaled)) and float(active_cnt) > 0
    print("KERNEL_OK")
</pallas_src>

<mosaic_0001>
module attributes {stable_mosaic.version = 11 : i64} {
  func.func @_xattn_kernel(%arg0: i32, %arg1: memref<1x8x32xf32, #tpu.memory_space<vmem>>, %arg2: memref<1x6x32xf32, #tpu.memory_space<vmem>>, %arg3: memref<32x32xbf16, #tpu.memory_space<vmem>>, %arg4: memref<1x32xf32, #tpu.memory_space<vmem>>, %arg5: memref<32x64xbf16, #tpu.memory_space<vmem>>, %arg6: memref<1x64xf32, #tpu.memory_space<vmem>>, %arg7: memref<32x32xbf16, #tpu.memory_space<vmem>>, %arg8: memref<1x32xf32, #tpu.memory_space<vmem>>, %arg9: memref<1x8x32xf32, #tpu.memory_space<vmem>>) attributes {dimension_semantics = [#tpu.dimension_semantics<parallel>], iteration_bounds = array<i64: 2>, scalar_prefetch = 0 : i64, scratch_operands = 0 : i64, tpu.core_type = #tpu.core_type<tc>, window_params = [{transform_indices = @transform_0, window_bounds = array<i64: 1, 8, 32>}, {transform_indices = @transform_1, window_bounds = array<i64: 1, 6, 32>}, {pipeline_mode = #tpu.pipeline_mode<synchronous>, transform_indices = @transform_2, window_bounds = array<i64: 32, 32>}, {pipeline_mode = #tpu.pipeline_mode<synchronous>, transform_indices = @transform_3, window_bounds = array<i64: 1, 32>}, {pipeline_mode = #tpu.pipeline_mode<synchronous>, transform_indices = @transform_4, window_bounds = array<i64: 32, 64>}, {pipeline_mode = #tpu.pipeline_mode<synchronous>, transform_indices = @transform_5, window_bounds = array<i64: 1, 64>}, {pipeline_mode = #tpu.pipeline_mode<synchronous>, transform_indices = @transform_6, window_bounds = array<i64: 32, 32>}, {pipeline_mode = #tpu.pipeline_mode<synchronous>, transform_indices = @transform_7, window_bounds = array<i64: 1, 32>}, {transform_indices = @transform_8, window_bounds = array<i64: 1, 8, 32>}]} {
    %c0 = arith.constant 0 : index
    %c0_0 = arith.constant 0 : index
    %c0_1 = arith.constant 0 : index
    %0 = vector.load %arg1[%c0, %c0_0, %c0_1] : memref<1x8x32xf32, #tpu.memory_space<vmem>>, vector<1x8x32xf32>
    %1 = vector.shape_cast %0 : vector<1x8x32xf32> to vector<8x32xf32>
    %c0_2 = arith.constant 0 : index
    %c0_3 = arith.constant 0 : index
    %c0_4 = arith.constant 0 : index
    %2 = vector.load %arg2[%c0_2, %c0_3, %c0_4] : memref<1x6x32xf32, #tpu.memory_space<vmem>>, vector<1x6x32xf32>
    %3 = vector.shape_cast %2 : vector<1x6x32xf32> to vector<6x32xf32>
    %c0_5 = arith.constant 0 : index
    %c0_6 = arith.constant 0 : index
    %4 = vector.load %arg3[%c0_5, %c0_6] : memref<32x32xbf16, #tpu.memory_space<vmem>>, vector<32x32xbf16>
    %c0_7 = arith.constant 0 : index
    %c0_8 = arith.constant 0 : index
    %5 = vector.load %arg4[%c0_7, %c0_8] : memref<1x32xf32, #tpu.memory_space<vmem>>, vector<1x32xf32>
    %c0_9 = arith.constant 0 : index
    %c0_10 = arith.constant 0 : index
    %6 = vector.load %arg5[%c0_9, %c0_10] : memref<32x64xbf16, #tpu.memory_space<vmem>>, vector<32x64xbf16>
    %c0_11 = arith.constant 0 : index
    %c0_12 = arith.constant 0 : index
    %7 = vector.load %arg6[%c0_11, %c0_12] : memref<1x64xf32, #tpu.memory_space<vmem>>, vector<1x64xf32>
    %c0_13 = arith.constant 0 : index
    %c0_14 = arith.constant 0 : index
    %8 = vector.load %arg7[%c0_13, %c0_14] : memref<32x32xbf16, #tpu.memory_space<vmem>>, vector<32x32xbf16>
    %c0_15 = arith.constant 0 : index
    %c0_16 = arith.constant 0 : index
    %9 = vector.load %arg8[%c0_15, %c0_16] : memref<1x32xf32, #tpu.memory_space<vmem>>, vector<1x32xf32>
    %10 = arith.truncf %1 : vector<8x32xf32> to vector<8x32xbf16>
    %cst = arith.constant dense<0.000000e+00> : vector<8x32xf32>
    %11 = tpu.matmul %10, %4, %cst {dimension_numbers = #tpu.dot_dimension_numbers<[1], [0], [0], [1], [0, 0, 1, 1], [], []>} : vector<8x32xbf16>, vector<32x32xbf16>, vector<8x32xf32> -> vector<8x32xf32>
    %12 = vector.broadcast %5 : vector<1x32xf32> to vector<8x32xf32>
    %13 = arith.addf %11, %12 : vector<8x32xf32>
    %14 = arith.truncf %3 : vector<6x32xf32> to vector<6x32xbf16>
    %cst_17 = arith.constant dense<0.000000e+00> : vector<6x64xf32>
    %15 = tpu.matmul %14, %6, %cst_17 {dimension_numbers = #tpu.dot_dimension_numbers<[1], [0], [0], [1], [0, 0, 1, 1], [], []>} : vector<6x32xbf16>, vector<32x64xbf16>, vector<6x64xf32> -> vector<6x64xf32>
    %16 = vector.broadcast %7 : vector<1x64xf32> to vector<6x64xf32>
    %17 = arith.addf %15, %16 : vector<6x64xf32>
    %18 = vector.extract_strided_slice %17 {offsets = [0, 0], sizes = [6, 32], strides = [1, 1]} : vector<6x64xf32> to vector<6x32xf32>
    %19 = vector.extract_strided_slice %17 {offsets = [0, 32], sizes = [6, 32], strides = [1, 1]} : vector<6x64xf32> to vector<6x32xf32>
    %20 = vector.extract_strided_slice %13 {offsets = [0, 0], sizes = [8, 8], strides = [1, 1]} : vector<8x32xf32> to vector<8x8xf32>
    %21 = vector.extract_strided_slice %18 {offsets = [0, 0], sizes = [6, 8], strides = [1, 1]} : vector<6x32xf32> to vector<6x8xf32>
    %cst_18 = arith.constant dense<0.000000e+00> : vector<8x6xf32>
    %22 = tpu.matmul %20, %21, %cst_18 {dimension_numbers = #tpu.dot_dimension_numbers<[1], [1], [0], [0], [0, 0, 1, 0], [], []>} : vector<8x8xf32>, vector<6x8xf32>, vector<8x6xf32> -> vector<8x6xf32>
    %cst_19 = arith.constant 0.353553385 : f32
    %23 = vector.broadcast %cst_19 : f32 to vector<8x6xf32>
    %24 = arith.mulf %22, %23 : vector<8x6xf32>
    %cst_20 = arith.constant 0.000000e+00 : f32
    %25 = vector.broadcast %cst_20 : f32 to vector<8x6xf32>
    %26 = arith.addf %24, %25 : vector<8x6xf32>
    %cst_21 = arith.constant dense<0xFF800000> : vector<8xf32>
    %27 = vector.multi_reduction <maximumf>, %26, %cst_21 [1] : vector<8x6xf32> to vector<8xf32>
    %28 = vector.shape_cast %27 : vector<8xf32> to vector<8x1xf32>
    %29 = vector.broadcast %28 : vector<8x1xf32> to vector<8x6xf32>
    %30 = arith.subf %26, %29 : vector<8x6xf32>
    %31 = math.exp %30 : vector<8x6xf32>
    %cst_22 = arith.constant dense<0.000000e+00> : vector<8xf32>
    %32 = vector.multi_reduction <add>, %31, %cst_22 [1] : vector<8x6xf32> to vector<8xf32>
    %33 = vector.shape_cast %32 : vector<8xf32> to vector<8x1xf32>
    %34 = tpu.reciprocal %33 {approx = true} : vector<8x1xf32> -> vector<8x1xf32>
    %35 = vector.broadcast %34 : vector<8x1xf32> to vector<8x6xf32>
    %36 = arith.mulf %31, %35 : vector<8x6xf32>
    %37 = arith.truncf %36 : vector<8x6xf32> to vector<8x6xbf16>
    %38 = vector.extract_strided_slice %19 {offsets = [0, 0], sizes = [6, 8], strides = [1, 1]} : vector<6x32xf32> to vector<6x8xf32>
    %39 = arith.truncf %38 : vector<6x8xf32> to vector<6x8xbf16>
    %cst_23 = arith.constant dense<0.000000e+00> : vector<8x8xf32>
    %40 = tpu.matmul %37, %39, %cst_23 {dimension_numbers = #tpu.dot_dimension_numbers<[1], [0], [0], [1], [0, 0, 1, 1], [], []>} : vector<8x6xbf16>, vector<6x8xbf16>, vector<8x8xf32> -> vector<8x8xf32>
    %41 = vector.extract_strided_slice %13 {offsets = [0, 8], sizes = [8, 8], strides = [1, 1]} : vector<8x32xf32> to vector<8x8xf32>
    %42 = vector.extract_strided_slice %18 {offsets = [0, 8], sizes = [6, 8], strides = [1, 1]} : vector<6x32xf32> to vector<6x8xf32>
    %cst_24 = arith.constant dense<0.000000e+00> : vector<8x6xf32>
    %43 = tpu.matmul %41, %42, %cst_24 {dimension_numbers = #tpu.dot_dimension_numbers<[1], [1], [0], [0], [0, 0, 1, 0], [], []>} : vector<8x8xf32>, vector<6x8xf32>, vector<8x6xf32> -> vector<8x6xf32>
    %cst_25 = arith.constant 0.353553385 : f32
    %44 = vector.broadcast %cst_25 : f32 to vector<8x6xf32>
    %45 = arith.mulf %43, %44 : vector<8x6xf32>
    %cst_26 = arith.constant 0.000000e+00 : f32
    %46 = vector.broadcast %cst_26 : f32 to vector<8x6xf32>
    %47 = arith.addf %45, %46 : vector<8x6xf32>
    %cst_27 = arith.constant dense<0xFF800000> : vector<8xf32>
    %48 = vector.multi_reduction <maximumf>, %47, %cst_27 [1] : vector<8x6xf32> to vector<8xf32>
    %49 = vector.shape_cast %48 : vector<8xf32> to vector<8x1xf32>
    %50 = vector.broadcast %49 : vector<8x1xf32> to vector<8x6xf32>
    %51 = arith.subf %47, %50 : vector<8x6xf32>
    %52 = math.exp %51 : vector<8x6xf32>
    %cst_28 = arith.constant dense<0.000000e+00> : vector<8xf32>
    %53 = vector.multi_reduction <add>, %52, %cst_28 [1] : vector<8x6xf32> to vector<8xf32>
    %54 = vector.shape_cast %53 : vector<8xf32> to vector<8x1xf32>
    %55 = tpu.reciprocal %54 {approx = true} : vector<8x1xf32> -> vector<8x1xf32>
    %56 = vector.broadcast %55 : vector<8x1xf32> to vector<8x6xf32>
    %57 = arith.mulf %52, %56 : vector<8x6xf32>
    %58 = arith.truncf %57 : vector<8x6xf32> to vector<8x6xbf16>
    %59 = vector.extract_strided_slice %19 {offsets = [0, 8], sizes = [6, 8], strides = [1, 1]} : vector<6x32xf32> to vector<6x8xf32>
    %60 = arith.truncf %59 : vector<6x8xf32> to vector<6x8xbf16>
    %cst_29 = arith.constant dense<0.000000e+00> : vector<8x8xf32>
    %61 = tpu.matmul %58, %60, %cst_29 {dimension_numbers = #tpu.dot_dimension_numbers<[1], [0], [0], [1], [0, 0, 1, 1], [], []>} : vector<8x6xbf16>, vector<6x8xbf16>, vector<8x8xf32> -> vector<8x8xf32>
    %62 = vector.extract_strided_slice %13 {offsets = [0, 16], sizes = [8, 8], strides = [1, 1]} : vector<8x32xf32> to vector<8x8xf32>
    %63 = vector.extract_strided_slice %18 {offsets = [0, 16], sizes = [6, 8], strides = [1, 1]} : vector<6x32xf32> to vector<6x8xf32>
    %cst_30 = arith.constant dense<0.000000e+00> : vector<8x6xf32>
    %64 = tpu.matmul %62, %63, %cst_30 {dimension_numbers = #tpu.dot_dimension_numbers<[1], [1], [0], [0], [0, 0, 1, 0], [], []>} : vector<8x8xf32>, vector<6x8xf32>, vector<8x6xf32> -> vector<8x6xf32>
    %cst_31 = arith.constant 0.353553385 : f32
    %65 = vector.broadcast %cst_31 : f32 to vector<8x6xf32>
    %66 = arith.mulf %64, %65 : vector<8x6xf32>
    %cst_32 = arith.constant 0.000000e+00 : f32
    %67 = vector.broadcast %cst_32 : f32 to vector<8x6xf32>
    %68 = arith.addf %66, %67 : vector<8x6xf32>
    %cst_33 = arith.constant dense<0xFF800000> : vector<8xf32>
    %69 = vector.multi_reduction <maximumf>, %68, %cst_33 [1] : vector<8x6xf32> to vector<8xf32>
    %70 = vector.shape_cast %69 : vector<8xf32> to vector<8x1xf32>
    %71 = vector.broadcast %70 : vector<8x1xf32> to vector<8x6xf32>
    %72 = arith.subf %68, %71 : vector<8x6xf32>
    %73 = math.exp %72 : vector<8x6xf32>
    %cst_34 = arith.constant dense<0.000000e+00> : vector<8xf32>
    %74 = vector.multi_reduction <add>, %73, %cst_34 [1] : vector<8x6xf32> to vector<8xf32>
    %75 = vector.shape_cast %74 : vector<8xf32> to vector<8x1xf32>
    %76 = tpu.reciprocal %75 {approx = true} : vector<8x1xf32> -> vector<8x1xf32>
    %77 = vector.broadcast %76 : vector<8x1xf32> to vector<8x6xf32>
    %78 = arith.mulf %73, %77 : vector<8x6xf32>
    %79 = arith.truncf %78 : vector<8x6xf32> to vector<8x6xbf16>
    %80 = vector.extract_strided_slice %19 {offsets = [0, 16], sizes = [6, 8], strides = [1, 1]} : vector<6x32xf32> to vector<6x8xf32>
    %81 = arith.truncf %80 : vector<6x8xf32> to vector<6x8xbf16>
    %cst_35 = arith.constant dense<0.000000e+00> : vector<8x8xf32>
    %82 = tpu.matmul %79, %81, %cst_35 {dimension_numbers = #tpu.dot_dimension_numbers<[1], [0], [0], [1], [0, 0, 1, 1], [], []>} : vector<8x6xbf16>, vector<6x8xbf16>, vector<8x8xf32> -> vector<8x8xf32>
    %83 = vector.extract_strided_slice %13 {offsets = [0, 24], sizes = [8, 8], strides = [1, 1]} : vector<8x32xf32> to vector<8x8xf32>
    %84 = vector.extract_strided_slice %18 {offsets = [0, 24], sizes = [6, 8], strides = [1, 1]} : vector<6x32xf32> to vector<6x8xf32>
    %cst_36 = arith.constant dense<0.000000e+00> : vector<8x6xf32>
    %85 = tpu.matmul %83, %84, %cst_36 {dimension_numbers = #tpu.dot_dimension_numbers<[1], [1], [0], [0], [0, 0, 1, 0], [], []>} : vector<8x8xf32>, vector<6x8xf32>, vector<8x6xf32> -> vector<8x6xf32>
    %cst_37 = arith.constant 0.353553385 : f32
    %86 = vector.broadcast %cst_37 : f32 to vector<8x6xf32>
    %87 = arith.mulf %85, %86 : vector<8x6xf32>
    %cst_38 = arith.constant 0.000000e+00 : f32
    %88 = vector.broadcast %cst_38 : f32 to vector<8x6xf32>
    %89 = arith.addf %87, %88 : vector<8x6xf32>
    %cst_39 = arith.constant dense<0xFF800000> : vector<8xf32>
    %90 = vector.multi_reduction <maximumf>, %89, %cst_39 [1] : vector<8x6xf32> to vector<8xf32>
    %91 = vector.shape_cast %90 : vector<8xf32> to vector<8x1xf32>
    %92 = vector.broadcast %91 : vector<8x1xf32> to vector<8x6xf32>
    %93 = arith.subf %89, %92 : vector<8x6xf32>
    %94 = math.exp %93 : vector<8x6xf32>
    %cst_40 = arith.constant dense<0.000000e+00> : vector<8xf32>
    %95 = vector.multi_reduction <add>, %94, %cst_40 [1] : vector<8x6xf32> to vector<8xf32>
    %96 = vector.shape_cast %95 : vector<8xf32> to vector<8x1xf32>
    %97 = tpu.reciprocal %96 {approx = true} : vector<8x1xf32> -> vector<8x1xf32>
    %98 = vector.broadcast %97 : vector<8x1xf32> to vector<8x6xf32>
    %99 = arith.mulf %94, %98 : vector<8x6xf32>
    %100 = arith.truncf %99 : vector<8x6xf32> to vector<8x6xbf16>
    %101 = vector.extract_strided_slice %19 {offsets = [0, 24], sizes = [6, 8], strides = [1, 1]} : vector<6x32xf32> to vector<6x8xf32>
    %102 = arith.truncf %101 : vector<6x8xf32> to vector<6x8xbf16>
    %cst_41 = arith.constant dense<0.000000e+00> : vector<8x8xf32>
    %103 = tpu.matmul %100, %102, %cst_41 {dimension_numbers = #tpu.dot_dimension_numbers<[1], [0], [0], [1], [0, 0, 1, 1], [], []>} : vector<8x6xbf16>, vector<6x8xbf16>, vector<8x8xf32> -> vector<8x8xf32>
    %104 = tpu.concatenate %40, %61, %82, %103 in 1 : vector<8x8xf32>, vector<8x8xf32>, vector<8x8xf32>, vector<8x8xf32> -> vector<8x32xf32>
    %105 = arith.truncf %104 : vector<8x32xf32> to vector<8x32xbf16>
    %cst_42 = arith.constant dense<0.000000e+00> : vector<8x32xf32>
    %106 = tpu.matmul %105, %8, %cst_42 {dimension_numbers = #tpu.dot_dimension_numbers<[1], [0], [0], [1], [0, 0, 1, 1], [], []>} : vector<8x32xbf16>, vector<32x32xbf16>, vector<8x32xf32> -> vector<8x32xf32>
    %107 = vector.broadcast %9 : vector<1x32xf32> to vector<8x32xf32>
    %108 = arith.addf %106, %107 : vector<8x32xf32>
    %109 = arith.addf %1, %108 : vector<8x32xf32>
    %c0_43 = arith.constant 0 : index
    %c0_44 = arith.constant 0 : index
    %c0_45 = arith.constant 0 : index
    %110 = vector.load %arg9[%c0_43, %c0_44, %c0_45] : memref<1x8x32xf32, #tpu.memory_space<vmem>>, vector<1x8x32xf32>
    %111 = vector.shape_cast %110 : vector<1x8x32xf32> to vector<8x32xf32>
    %112 = vector.shape_cast %109 : vector<8x32xf32> to vector<1x8x32xf32>
    tpu.vector_store %arg9[%c0_43, %c0_44, %c0_45], %112 {strides = array<i32>} : memref<1x8x32xf32, #tpu.memory_space<vmem>>, vector<1x8x32xf32>,
    return
  }
  func.func @transform_0(%arg0: i32) -> (i32, i32, i32) {
    %c0_i32 = arith.constant 0 : i32
    %c0_i32_0 = arith.constant 0 : i32
    %c0_i32_1 = arith.constant 0 : i32
    return %arg0, %c0_i32, %c0_i32_0 : i32, i32, i32
  }
  func.func @transform_1(%arg0: i32) -> (i32, i32, i32) {
    %c0_i32 = arith.constant 0 : i32
    %c0_i32_0 = arith.constant 0 : i32
    %c0_i32_1 = arith.constant 0 : i32
    return %arg0, %c0_i32, %c0_i32_0 : i32, i32, i32
  }
  func.func @transform_2(%arg0: i32) -> (i32, i32) {
    %c0_i32 = arith.constant 0 : i32
    %c0_i32_0 = arith.constant 0 : i32
    %c0_i32_1 = arith.constant 0 : i32
    return %c0_i32, %c0_i32_0 : i32, i32
  }
  func.func @transform_3(%arg0: i32) -> (i32, i32) {
    %c0_i32 = arith.constant 0 : i32
    %c0_i32_0 = arith.constant 0 : i32
    %c0_i32_1 = arith.constant 0 : i32
    return %c0_i32, %c0_i32_0 : i32, i32
  }
  func.func @transform_4(%arg0: i32) -> (i32, i32) {
    %c0_i32 = arith.constant 0 : i32
    %c0_i32_0 = arith.constant 0 : i32
    %c0_i32_1 = arith.constant 0 : i32
    return %c0_i32, %c0_i32_0 : i32, i32
  }
  func.func @transform_5(%arg0: i32) -> (i32, i32) {
    %c0_i32 = arith.constant 0 : i32
    %c0_i32_0 = arith.constant 0 : i32
    %c0_i32_1 = arith.constant 0 : i32
    return %c0_i32, %c0_i32_0 : i32, i32
  }
  func.func @transform_6(%arg0: i32) -> (i32, i32) {
    %c0_i32 = arith.constant 0 : i32
    %c0_i32_0 = arith.constant 0 : i32
    %c0_i32_1 = arith.constant 0 : i32
    return %c0_i32, %c0_i32_0 : i32, i32
  }
  func.func @transform_7(%arg0: i32) -> (i32, i32) {
    %c0_i32 = arith.constant 0 : i32
    %c0_i32_0 = arith.constant 0 : i32
    %c0_i32_1 = arith.constant 0 : i32
    return %c0_i32, %c0_i32_0 : i32, i32
  }
  func.func @transform_8(%arg0: i32) -> (i32, i32, i32) {
    %c0_i32 = arith.constant 0 : i32
    %c0_i32_0 = arith.constant 0 : i32
    %c0_i32_1 = arith.constant 0 : i32
    return %arg0, %c0_i32, %c0_i32_0 : i32, i32, i32
  }
}

module attributes {stable_mosaic.version = 11 : i64} {
  func.func @_encoder_stack_kernel(%arg0: i32, %arg1: i32, %arg2: memref<1x8x32xf32, #tpu.memory_space<vmem>>, %arg3: memref<1x1x8xf32, #tpu.memory_space<vmem>>, %arg4: memref<1x32xf32, #tpu.memory_space<vmem>>, %arg5: memref<1x32xf32, #tpu.memory_space<vmem>>, %arg6: memref<1x32x32xbf16, #tpu.memory_space<vmem>>, %arg7: memref<1x1x32xf32, #tpu.memory_space<vmem>>, %arg8: memref<1x32x64xbf16, #tpu.memory_space<vmem>>, %arg9: memref<1x1x64xf32, #tpu.memory_space<vmem>>, %arg10: memref<1x32x32xbf16, #tpu.memory_space<vmem>>, %arg11: memref<1x1x32xf32, #tpu.memory_space<vmem>>, %arg12: memref<1x1x32xf32, #tpu.memory_space<vmem>>, %arg13: memref<1x1x32xf32, #tpu.memory_space<vmem>>, %arg14: memref<1x32x64xbf16, #tpu.memory_space<vmem>>, %arg15: memref<1x1x64xf32, #tpu.memory_space<vmem>>, %arg16: memref<1x64x32xbf16, #tpu.memory_space<vmem>>, %arg17: memref<1x1x32xf32, #tpu.memory_space<vmem>>, %arg18: memref<1x1x32xf32, #tpu.memory_space<vmem>>, %arg19: memref<1x1x32xf32, #tpu.memory_space<vmem>>, %arg20: memref<1x8x32xf32, #tpu.memory_space<vmem>>, %arg21: memref<1x8x32xf32, #tpu.memory_space<vmem>>) attributes {dimension_semantics = [#tpu.dimension_semantics<parallel>, #tpu.dimension_semantics<arbitrary>], iteration_bounds = array<i64: 2, 2>, scalar_prefetch = 0 : i64, scratch_operands = 1 : i64, tpu.core_type = #tpu.core_type<tc>, window_params = [{transform_indices = @transform_0, window_bounds = array<i64: 1, 8, 32>}, {transform_indices = @transform_1, window_bounds = array<i64: 1, 1, 8>}, {pipeline_mode = #tpu.pipeline_mode<synchronous>, transform_indices = @transform_2, window_bounds = array<i64: 1, 32>}, {pipeline_mode = #tpu.pipeline_mode<synchronous>, transform_indices = @transform_3, window_bounds = array<i64: 1, 32>}, {transform_indices = @transform_4, window_bounds = array<i64: 1, 32, 32>}, {transform_indices = @transform_5, window_bounds = array<i64: 1, 1, 32>}, {transform_indices = @transform_6, window_bounds = array<i64: 1, 32, 64>}, {transform_indices = @transform_7, window_bounds = array<i64: 1, 1, 64>}, {transform_indices = @transform_8, window_bounds = array<i64: 1, 32, 32>}, {transform_indices = @transform_9, window_bounds = array<i64: 1, 1, 32>}, {transform_indices = @transform_10, window_bounds = array<i64: 1, 1, 32>}, {transform_indices = @transform_11, window_bounds = array<i64: 1, 1, 32>}, {transform_indices = @transform_12, window_bounds = array<i64: 1, 32, 64>}, {transform_indices = @transform_13, window_bounds = array<i64: 1, 1, 64>}, {transform_indices = @transform_14, window_bounds = array<i64: 1, 64, 32>}, {transform_indices = @transform_15, window_bounds = array<i64: 1, 1, 32>}, {transform_indices = @transform_16, window_bounds = array<i64: 1, 1, 32>}, {transform_indices = @transform_17, window_bounds = array<i64: 1, 1, 32>}, {transform_indices = @transform_18, window_bounds = array<i64: 1, 8, 32>}]} {
    %c0_i32 = arith.constant 0 : i32
    %0 = arith.cmpi eq, %arg1, %c0_i32 : i32
    %1 = arith.extui %0 : i1 to i32
    %c0_i32_0 = arith.constant 0 : i32
    %2 = arith.cmpi ne, %1, %c0_i32_0 : i32
    scf.if %2 {
      %c0_90 = arith.constant 0 : index
      %c0_91 = arith.constant 0 : index
      %c0_92 = arith.constant 0 : index
      %203 = vector.load %arg2[%c0_90, %c0_91, %c0_92] : memref<1x8x32xf32, #tpu.memory_space<vmem>>, vector<1x8x32xf32>
      %204 = vector.shape_cast %203 : vector<1x8x32xf32> to vector<8x32xf32>
      %c0_93 = arith.constant 0 : index
      %c0_94 = arith.constant 0 : index
      %205 = vector.load %arg4[%c0_93, %c0_94] : memref<1x32xf32, #tpu.memory_space<vmem>>, vector<1x32xf32>
      %c0_95 = arith.constant 0 : index
      %c0_96 = arith.constant 0 : index
      %206 = vector.load %arg5[%c0_95, %c0_96] : memref<1x32xf32, #tpu.memory_space<vmem>>, vector<1x32xf32>
      %cst_97 = arith.constant dense<0.000000e+00> : vector<8xf32>
      %207 = vector.multi_reduction <add>, %204, %cst_97 [1] : vector<8x32xf32> to vector<8xf32>
      %208 = vector.shape_cast %207 : vector<8xf32> to vector<8x1xf32>
      %cst_98 = arith.constant 3.200000e+01 : f32
      %209 = vector.broadcast %cst_98 : f32 to vector<8x1xf32>
      %210 = arith.divf %208, %209 : vector<8x1xf32>
      %211 = vector.broadcast %210 : vector<8x1xf32> to vector<8x32xf32>
      %212 = arith.subf %204, %211 : vector<8x32xf32>
      %213 = arith.mulf %212, %212 : vector<8x32xf32>
      %cst_99 = arith.constant dense<0.000000e+00> : vector<8xf32>
      %214 = vector.multi_reduction <add>, %213, %cst_99 [1] : vector<8x32xf32> to vector<8xf32>
      %215 = vector.shape_cast %214 : vector<8xf32> to vector<8x1xf32>
      %cst_100 = arith.constant 3.200000e+01 : f32
      %216 = vector.broadcast %cst_100 : f32 to vector<8x1xf32>
      %217 = arith.divf %215, %216 : vector<8x1xf32>
      %cst_101 = arith.constant 9.99999996E-13 : f32
      %218 = vector.broadcast %cst_101 : f32 to vector<8x1xf32>
      %219 = arith.addf %217, %218 : vector<8x1xf32>
      %220 = math.rsqrt %219 : vector<8x1xf32>
      %221 = vector.broadcast %220 : vector<8x1xf32> to vector<8x32xf32>
      %222 = arith.mulf %212, %221 : vector<8x32xf32>
      %223 = vector.broadcast %205 : vector<1x32xf32> to vector<8x32xf32>
      %224 = arith.mulf %222, %223 : vector<8x32xf32>
      %225 = vector.broadcast %206 : vector<1x32xf32> to vector<8x32xf32>
      %226 = arith.addf %224, %225 : vector<8x32xf32>
      %c0_102 = arith.constant 0 : index
      %c0_103 = arith.constant 0 : index
      %c0_104 = arith.constant 0 : index
      %227 = vector.load %arg21[%c0_102, %c0_103, %c0_104] : memref<1x8x32xf32, #tpu.memory_space<vmem>>, vector<1x8x32xf32>
      %228 = vector.shape_cast %227 : vector<1x8x32xf32> to vector<8x32xf32>
      %229 = vector.shape_cast %226 : vector<8x32xf32> to vector<1x8x32xf32>
      tpu.vector_store %arg21[%c0_102, %c0_103, %c0_104], %229 {strides = array<i32>} : memref<1x8x32xf32, #tpu.memory_space<vmem>>, vector<1x8x32xf32>,
    } else {
    }
    %c0 = arith.constant 0 : index
    %c0_1 = arith.constant 0 : index
    %c0_2 = arith.constant 0 : index
    %3 = vector.load %arg21[%c0, %c0_1, %c0_2] : memref<1x8x32xf32, #tpu.memory_space<vmem>>, vector<1x8x32xf32>
    %4 = vector.shape_cast %3 : vector<1x8x32xf32> to vector<8x32xf32>
    %c0_3 = arith.constant 0 : index
    %c0_4 = arith.constant 0 : index
    %c0_5 = arith.constant 0 : index
    %5 = vector.load %arg3[%c0_3, %c0_4, %c0_5] : memref<1x1x8xf32, #tpu.memory_space<vmem>>, vector<1x1x8xf32>
    %6 = vector.shape_cast %5 : vector<1x1x8xf32> to vector<1x8xf32>
    %c0_6 = arith.constant 0 : index
    %c0_7 = arith.constant 0 : index
    %c0_8 = arith.constant 0 : index
    %7 = vector.load %arg6[%c0_6, %c0_7, %c0_8] : memref<1x32x32xbf16, #tpu.memory_space<vmem>>, vector<1x32x32xbf16>
    %8 = vector.shape_cast %7 : vector<1x32x32xbf16> to vector<32x32xbf16>
    %c0_9 = arith.constant 0 : index
    %c0_10 = arith.constant 0 : index
    %c0_11 = arith.constant 0 : index
    %9 = vector.load %arg7[%c0_9, %c0_10, %c0_11] : memref<1x1x32xf32, #tpu.memory_space<vmem>>, vector<1x1x32xf32>
    %10 = vector.shape_cast %9 : vector<1x1x32xf32> to vector<1x32xf32>
    %c0_12 = arith.constant 0 : index
    %c0_13 = arith.constant 0 : index
    %c0_14 = arith.constant 0 : index
    %11 = vector.load %arg8[%c0_12, %c0_13, %c0_14] : memref<1x32x64xbf16, #tpu.memory_space<vmem>>, vector<1x32x64xbf16>
    %12 = vector.shape_cast %11 : vector<1x32x64xbf16> to vector<32x64xbf16>
    %c0_15 = arith.constant 0 : index
    %c0_16 = arith.constant 0 : index
    %c0_17 = arith.constant 0 : index
    %13 = vector.load %arg9[%c0_15, %c0_16, %c0_17] : memref<1x1x64xf32, #tpu.memory_space<vmem>>, vector<1x1x64xf32>
    %14 = vector.shape_cast %13 : vector<1x1x64xf32> to vector<1x64xf32>
    %c0_18 = arith.constant 0 : index
    %c0_19 = arith.constant 0 : index
    %c0_20 = arith.constant 0 : index
    %15 = vector.load %arg10[%c0_18, %c0_19, %c0_20] : memref<1x32x32xbf16, #tpu.memory_space<vmem>>, vector<1x32x32xbf16>
    %16 = vector.shape_cast %15 : vector<1x32x32xbf16> to vector<32x32xbf16>
    %c0_21 = arith.constant 0 : index
    %c0_22 = arith.constant 0 : index
    %c0_23 = arith.constant 0 : index
    %17 = vector.load %arg11[%c0_21, %c0_22, %c0_23] : memref<1x1x32xf32, #tpu.memory_space<vmem>>, vector<1x1x32xf32>
    %18 = vector.shape_cast %17 : vector<1x1x32xf32> to vector<1x32xf32>
    %19 = arith.truncf %4 : vector<8x32xf32> to vector<8x32xbf16>
    %cst = arith.constant dense<0.000000e+00> : vector<8x32xf32>
    %20 = tpu.matmul %19, %8, %cst {dimension_numbers = #tpu.dot_dimension_numbers<[1], [0], [0], [1], [0, 0, 1, 1], [], []>} : vector<8x32xbf16>, vector<32x32xbf16>, vector<8x32xf32> -> vector<8x32xf32>
    %21 = vector.broadcast %10 : vector<1x32xf32> to vector<8x32xf32>
    %22 = arith.addf %20, %21 : vector<8x32xf32>
    %23 = arith.truncf %4 : vector<8x32xf32> to vector<8x32xbf16>
    %cst_24 = arith.constant dense<0.000000e+00> : vector<8x64xf32>
    %24 = tpu.matmul %23, %12, %cst_24 {dimension_numbers = #tpu.dot_dimension_numbers<[1], [0], [0], [1], [0, 0, 1, 1], [], []>} : vector<8x32xbf16>, vector<32x64xbf16>, vector<8x64xf32> -> vector<8x64xf32>
    %25 = vector.broadcast %14 : vector<1x64xf32> to vector<8x64xf32>
    %26 = arith.addf %24, %25 : vector<8x64xf32>
    %27 = vector.extract_strided_slice %26 {offsets = [0, 0], sizes = [8, 32], strides = [1, 1]} : vector<8x64xf32> to vector<8x32xf32>
    %28 = vector.extract_strided_slice %26 {offsets = [0, 32], sizes = [8, 32], strides = [1, 1]} : vector<8x64xf32> to vector<8x32xf32>
    %29 = vector.extract_strided_slice %22 {offsets = [0, 0], sizes = [8, 8], strides = [1, 1]} : vector<8x32xf32> to vector<8x8xf32>
    %30 = vector.extract_strided_slice %27 {offsets = [0, 0], sizes = [8, 8], strides = [1, 1]} : vector<8x32xf32> to vector<8x8xf32>
    %cst_25 = arith.constant dense<0.000000e+00> : vector<8x8xf32>
    %31 = tpu.matmul %29, %30, %cst_25 {dimension_numbers = #tpu.dot_dimension_numbers<[1], [1], [0], [0], [0, 0, 1, 0], [], []>} : vector<8x8xf32>, vector<8x8xf32>, vector<8x8xf32> -> vector<8x8xf32>
    %cst_26 = arith.constant 0.353553385 : f32
    %32 = vector.broadcast %cst_26 : f32 to vector<8x8xf32>
    %33 = arith.mulf %31, %32 : vector<8x8xf32>
    %34 = vector.broadcast %6 : vector<1x8xf32> to vector<8x8xf32>
    %35 = arith.addf %33, %34 : vector<8x8xf32>
    %cst_27 = arith.constant dense<0xFF800000> : vector<8xf32>
    %36 = vector.multi_reduction <maximumf>, %35, %cst_27 [1] : vector<8x8xf32> to vector<8xf32>
    %37 = vector.shape_cast %36 : vector<8xf32> to vector<8x1xf32>
    %38 = vector.broadcast %37 : vector<8x1xf32> to vector<8x8xf32>
    %39 = arith.subf %35, %38 : vector<8x8xf32>
    %40 = math.exp %39 : vector<8x8xf32>
    %cst_28 = arith.constant dense<0.000000e+00> : vector<8xf32>
    %41 = vector.multi_reduction <add>, %40, %cst_28 [1] : vector<8x8xf32> to vector<8xf32>
    %42 = vector.shape_cast %41 : vector<8xf32> to vector<8x1xf32>
    %43 = tpu.reciprocal %42 {approx = true} : vector<8x1xf32> -> vector<8x1xf32>
    %44 = vector.broadcast %43 : vector<8x1xf32> to vector<8x8xf32>
    %45 = arith.mulf %40, %44 : vector<8x8xf32>
    %46 = arith.truncf %45 : vector<8x8xf32> to vector<8x8xbf16>
    %47 = vector.extract_strided_slice %28 {offsets = [0, 0], sizes = [8, 8], strides = [1, 1]} : vector<8x32xf32> to vector<8x8xf32>
    %48 = arith.truncf %47 : vector<8x8xf32> to vector<8x8xbf16>
    %cst_29 = arith.constant dense<0.000000e+00> : vector<8x8xf32>
    %49 = tpu.matmul %46, %48, %cst_29 {dimension_numbers = #tpu.dot_dimension_numbers<[1], [0], [0], [1], [0, 0, 1, 1], [], []>} : vector<8x8xbf16>, vector<8x8xbf16>, vector<8x8xf32> -> vector<8x8xf32>
    %50 = vector.extract_strided_slice %22 {offsets = [0, 8], sizes = [8, 8], strides = [1, 1]} : vector<8x32xf32> to vector<8x8xf32>
    %51 = vector.extract_strided_slice %27 {offsets = [0, 8], sizes = [8, 8], strides = [1, 1]} : vector<8x32xf32> to vector<8x8xf32>
    %cst_30 = arith.constant dense<0.000000e+00> : vector<8x8xf32>
    %52 = tpu.matmul %50, %51, %cst_30 {dimension_numbers = #tpu.dot_dimension_numbers<[1], [1], [0], [0], [0, 0, 1, 0], [], []>} : vector<8x8xf32>, vector<8x8xf32>, vector<8x8xf32> -> vector<8x8xf32>
    %cst_31 = arith.constant 0.353553385 : f32
    %53 = vector.broadcast %cst_31 : f32 to vector<8x8xf32>
    %54 = arith.mulf %52, %53 : vector<8x8xf32>
    %55 = vector.broadcast %6 : vector<1x8xf32> to vector<8x8xf32>
    %56 = arith.addf %54, %55 : vector<8x8xf32>
    %cst_32 = arith.constant dense<0xFF800000> : vector<8xf32>
    %57 = vector.multi_reduction <maximumf>, %56, %cst_32 [1] : vector<8x8xf32> to vector<8xf32>
    %58 = vector.shape_cast %57 : vector<8xf32> to vector<8x1xf32>
    %59 = vector.broadcast %58 : vector<8x1xf32> to vector<8x8xf32>
    %60 = arith.subf %56, %59 : vector<8x8xf32>
    %61 = math.exp %60 : vector<8x8xf32>
    %cst_33 = arith.constant dense<0.000000e+00> : vector<8xf32>
    %62 = vector.multi_reduction <add>, %61, %cst_33 [1] : vector<8x8xf32> to vector<8xf32>
    %63 = vector.shape_cast %62 : vector<8xf32> to vector<8x1xf32>
    %64 = tpu.reciprocal %63 {approx = true} : vector<8x1xf32> -> vector<8x1xf32>
    %65 = vector.broadcast %64 : vector<8x1xf32> to vector<8x8xf32>
    %66 = arith.mulf %61, %65 : vector<8x8xf32>
    %67 = arith.truncf %66 : vector<8x8xf32> to vector<8x8xbf16>
    %68 = vector.extract_strided_slice %28 {offsets = [0, 8], sizes = [8, 8], strides = [1, 1]} : vector<8x32xf32> to vector<8x8xf32>
    %69 = arith.truncf %68 : vector<8x8xf32> to vector<8x8xbf16>
    %cst_34 = arith.constant dense<0.000000e+00> : vector<8x8xf32>
    %70 = tpu.matmul %67, %69, %cst_34 {dimension_numbers = #tpu.dot_dimension_numbers<[1], [0], [0], [1], [0, 0, 1, 1], [], []>} : vector<8x8xbf16>, vector<8x8xbf16>, vector<8x8xf32> -> vector<8x8xf32>
    %71 = vector.extract_strided_slice %22 {offsets = [0, 16], sizes = [8, 8], strides = [1, 1]} : vector<8x32xf32> to vector<8x8xf32>
    %72 = vector.extract_strided_slice %27 {offsets = [0, 16], sizes = [8, 8], strides = [1, 1]} : vector<8x32xf32> to vector<8x8xf32>
    %cst_35 = arith.constant dense<0.000000e+00> : vector<8x8xf32>
    %73 = tpu.matmul %71, %72, %cst_35 {dimension_numbers = #tpu.dot_dimension_numbers<[1], [1], [0], [0], [0, 0, 1, 0], [], []>} : vector<8x8xf32>, vector<8x8xf32>, vector<8x8xf32> -> vector<8x8xf32>
    %cst_36 = arith.constant 0.353553385 : f32
    %74 = vector.broadcast %cst_36 : f32 to vector<8x8xf32>
    %75 = arith.mulf %73, %74 : vector<8x8xf32>
    %76 = vector.broadcast %6 : vector<1x8xf32> to vector<8x8xf32>
    %77 = arith.addf %75, %76 : vector<8x8xf32>
    %cst_37 = arith.constant dense<0xFF800000> : vector<8xf32>
    %78 = vector.multi_reduction <maximumf>, %77, %cst_37 [1] : vector<8x8xf32> to vector<8xf32>
    %79 = vector.shape_cast %78 : vector<8xf32> to vector<8x1xf32>
    %80 = vector.broadcast %79 : vector<8x1xf32> to vector<8x8xf32>
    %81 = arith.subf %77, %80 : vector<8x8xf32>
    %82 = math.exp %81 : vector<8x8xf32>
    %cst_38 = arith.constant dense<0.000000e+00> : vector<8xf32>
    %83 = vector.multi_reduction <add>, %82, %cst_38 [1] : vector<8x8xf32> to vector<8xf32>
    %84 = vector.shape_cast %83 : vector<8xf32> to vector<8x1xf32>
    %85 = tpu.reciprocal %84 {approx = true} : vector<8x1xf32> -> vector<8x1xf32>
    %86 = vector.broadcast %85 : vector<8x1xf32> to vector<8x8xf32>
    %87 = arith.mulf %82, %86 : vector<8x8xf32>
    %88 = arith.truncf %87 : vector<8x8xf32> to vector<8x8xbf16>
    %89 = vector.extract_strided_slice %28 {offsets = [0, 16], sizes = [8, 8], strides = [1, 1]} : vector<8x32xf32> to vector<8x8xf32>
    %90 = arith.truncf %89 : vector<8x8xf32> to vector<8x8xbf16>
    %cst_39 = arith.constant dense<0.000000e+00> : vector<8x8xf32>
    %91 = tpu.matmul %88, %90, %cst_39 {dimension_numbers = #tpu.dot_dimension_numbers<[1], [0], [0], [1], [0, 0, 1, 1], [], []>} : vector<8x8xbf16>, vector<8x8xbf16>, vector<8x8xf32> -> vector<8x8xf32>
    %92 = vector.extract_strided_slice %22 {offsets = [0, 24], sizes = [8, 8], strides = [1, 1]} : vector<8x32xf32> to vector<8x8xf32>
    %93 = vector.extract_strided_slice %27 {offsets = [0, 24], sizes = [8, 8], strides = [1, 1]} : vector<8x32xf32> to vector<8x8xf32>
    %cst_40 = arith.constant dense<0.000000e+00> : vector<8x8xf32>
    %94 = tpu.matmul %92, %93, %cst_40 {dimension_numbers = #tpu.dot_dimension_numbers<[1], [1], [0], [0], [0, 0, 1, 0], [], []>} : vector<8x8xf32>, vector<8x8xf32>, vector<8x8xf32> -> vector<8x8xf32>
    %cst_41 = arith.constant 0.353553385 : f32
    %95 = vector.broadcast %cst_41 : f32 to vector<8x8xf32>
    %96 = arith.mulf %94, %95 : vector<8x8xf32>
    %97 = vector.broadcast %6 : vector<1x8xf32> to vector<8x8xf32>
    %98 = arith.addf %96, %97 : vector<8x8xf32>
    %cst_42 = arith.constant dense<0xFF800000> : vector<8xf32>
    %99 = vector.multi_reduction <maximumf>, %98, %cst_42 [1] : vector<8x8xf32> to vector<8xf32>
    %100 = vector.shape_cast %99 : vector<8xf32> to vector<8x1xf32>
    %101 = vector.broadcast %100 : vector<8x1xf32> to vector<8x8xf32>
    %102 = arith.subf %98, %101 : vector<8x8xf32>
    %103 = math.exp %102 : vector<8x8xf32>
    %cst_43 = arith.constant dense<0.000000e+00> : vector<8xf32>
    %104 = vector.multi_reduction <add>, %103, %cst_43 [1] : vector<8x8xf32> to vector<8xf32>
    %105 = vector.shape_cast %104 : vector<8xf32> to vector<8x1xf32>
    %106 = tpu.reciprocal %105 {approx = true} : vector<8x1xf32> -> vector<8x1xf32>
    %107 = vector.broadcast %106 : vector<8x1xf32> to vector<8x8xf32>
    %108 = arith.mulf %103, %107 : vector<8x8xf32>
    %109 = arith.truncf %108 : vector<8x8xf32> to vector<8x8xbf16>
    %110 = vector.extract_strided_slice %28 {offsets = [0, 24], sizes = [8, 8], strides = [1, 1]} : vector<8x32xf32> to vector<8x8xf32>
    %111 = arith.truncf %110 : vector<8x8xf32> to vector<8x8xbf16>
    %cst_44 = arith.constant dense<0.000000e+00> : vector<8x8xf32>
    %112 = tpu.matmul %109, %111, %cst_44 {dimension_numbers = #tpu.dot_dimension_numbers<[1], [0], [0], [1], [0, 0, 1, 1], [], []>} : vector<8x8xbf16>, vector<8x8xbf16>, vector<8x8xf32> -> vector<8x8xf32>
    %113 = tpu.concatenate %49, %70, %91, %112 in 1 : vector<8x8xf32>, vector<8x8xf32>, vector<8x8xf32>, vector<8x8xf32> -> vector<8x32xf32>
    %114 = arith.truncf %113 : vector<8x32xf32> to vector<8x32xbf16>
    %cst_45 = arith.constant dense<0.000000e+00> : vector<8x32xf32>
    %115 = tpu.matmul %114, %16, %cst_45 {dimension_numbers = #tpu.dot_dimension_numbers<[1], [0], [0], [1], [0, 0, 1, 1], [], []>} : vector<8x32xbf16>, vector<32x32xbf16>, vector<8x32xf32> -> vector<8x32xf32>
    %116 = vector.broadcast %18 : vector<1x32xf32> to vector<8x32xf32>
    %117 = arith.addf %115, %116 : vector<8x32xf32>
    %118 = arith.addf %4, %117 : vector<8x32xf32>
    %c0_46 = arith.constant 0 : index
    %c0_47 = arith.constant 0 : index
    %c0_48 = arith.constant 0 : index
    %119 = vector.load %arg12[%c0_46, %c0_47, %c0_48] : memref<1x1x32xf32, #tpu.memory_space<vmem>>, vector<1x1x32xf32>
    %120 = vector.shape_cast %119 : vector<1x1x32xf32> to vector<1x32xf32>
    %c0_49 = arith.constant 0 : index
    %c0_50 = arith.constant 0 : index
    %c0_51 = arith.constant 0 : index
    %121 = vector.load %arg13[%c0_49, %c0_50, %c0_51] : memref<1x1x32xf32, #tpu.memory_space<vmem>>, vector<1x1x32xf32>
    %122 = vector.shape_cast %121 : vector<1x1x32xf32> to vector<1x32xf32>
    %cst_52 = arith.constant dense<0.000000e+00> : vector<8xf32>
    %123 = vector.multi_reduction <add>, %118, %cst_52 [1] : vector<8x32xf32> to vector<8xf32>
    %124 = vector.shape_cast %123 : vector<8xf32> to vector<8x1xf32>
    %cst_53 = arith.constant 3.200000e+01 : f32
    %125 = vector.broadcast %cst_53 : f32 to vector<8x1xf32>
    %126 = arith.divf %124, %125 : vector<8x1xf32>
    %127 = vector.broadcast %126 : vector<8x1xf32> to vector<8x32xf32>
    %128 = arith.subf %118, %127 : vector<8x32xf32>
    %129 = arith.mulf %128, %128 : vector<8x32xf32>
    %cst_54 = arith.constant dense<0.000000e+00> : vector<8xf32>
    %130 = vector.multi_reduction <add>, %129, %cst_54 [1] : vector<8x32xf32> to vector<8xf32>
    %131 = vector.shape_cast %130 : vector<8xf32> to vector<8x1xf32>
    %cst_55 = arith.constant 3.200000e+01 : f32
    %132 = vector.broadcast %cst_55 : f32 to vector<8x1xf32>
    %133 = arith.divf %131, %132 : vector<8x1xf32>
    %cst_56 = arith.constant 9.99999996E-13 : f32
    %134 = vector.broadcast %cst_56 : f32 to vector<8x1xf32>
    %135 = arith.addf %133, %134 : vector<8x1xf32>
    %136 = math.rsqrt %135 : vector<8x1xf32>
    %137 = vector.broadcast %136 : vector<8x1xf32> to vector<8x32xf32>
    %138 = arith.mulf %128, %137 : vector<8x32xf32>
    %139 = vector.broadcast %120 : vector<1x32xf32> to vector<8x32xf32>
    %140 = arith.mulf %138, %139 : vector<8x32xf32>
    %141 = vector.broadcast %122 : vector<1x32xf32> to vector<8x32xf32>
    %142 = arith.addf %140, %141 : vector<8x32xf32>
    %c0_57 = arith.constant 0 : index
    %c0_58 = arith.constant 0 : index
    %c0_59 = arith.constant 0 : index
    %143 = vector.load %arg14[%c0_57, %c0_58, %c0_59] : memref<1x32x64xbf16, #tpu.memory_space<vmem>>, vector<1x32x64xbf16>
    %144 = vector.shape_cast %143 : vector<1x32x64xbf16> to vector<32x64xbf16>
    %c0_60 = arith.constant 0 : index
    %c0_61 = arith.constant 0 : index
    %c0_62 = arith.constant 0 : index
    %145 = vector.load %arg15[%c0_60, %c0_61, %c0_62] : memref<1x1x64xf32, #tpu.memory_space<vmem>>, vector<1x1x64xf32>
    %146 = vector.shape_cast %145 : vector<1x1x64xf32> to vector<1x64xf32>
    %c0_63 = arith.constant 0 : index
    %c0_64 = arith.constant 0 : index
    %c0_65 = arith.constant 0 : index
    %147 = vector.load %arg16[%c0_63, %c0_64, %c0_65] : memref<1x64x32xbf16, #tpu.memory_space<vmem>>, vector<1x64x32xbf16>
    %148 = vector.shape_cast %147 : vector<1x64x32xbf16> to vector<64x32xbf16>
    %c0_66 = arith.constant 0 : index
    %c0_67 = arith.constant 0 : index
    %c0_68 = arith.constant 0 : index
    %149 = vector.load %arg17[%c0_66, %c0_67, %c0_68] : memref<1x1x32xf32, #tpu.memory_space<vmem>>, vector<1x1x32xf32>
    %150 = vector.shape_cast %149 : vector<1x1x32xf32> to vector<1x32xf32>
    %151 = arith.truncf %142 : vector<8x32xf32> to vector<8x32xbf16>
    %cst_69 = arith.constant dense<0.000000e+00> : vector<8x64xf32>
    %152 = tpu.matmul %151, %144, %cst_69 {dimension_numbers = #tpu.dot_dimension_numbers<[1], [0], [0], [1], [0, 0, 1, 1], [], []>} : vector<8x32xbf16>, vector<32x64xbf16>, vector<8x64xf32> -> vector<8x64xf32>
    %153 = vector.broadcast %146 : vector<1x64xf32> to vector<8x64xf32>
    %154 = arith.addf %152, %153 : vector<8x64xf32>
    %155 = arith.mulf %154, %154 : vector<8x64xf32>
    %156 = arith.mulf %154, %155 : vector<8x64xf32>
    %cst_70 = arith.constant 4.471500e-02 : f32
    %157 = vector.broadcast %cst_70 : f32 to vector<8x64xf32>
    %158 = arith.mulf %157, %156 : vector<8x64xf32>
    %159 = arith.addf %154, %158 : vector<8x64xf32>
    %cst_71 = arith.constant 0.797884583 : f32
    %160 = vector.broadcast %cst_71 : f32 to vector<8x64xf32>
    %161 = arith.mulf %160, %159 : vector<8x64xf32>
    %162 = math.tanh %161 : vector<8x64xf32>
    %cst_72 = arith.constant 1.000000e+00 : f32
    %163 = vector.broadcast %cst_72 : f32 to vector<8x64xf32>
    %164 = arith.addf %163, %162 : vector<8x64xf32>
    %cst_73 = arith.constant 5.000000e-01 : f32
    %165 = vector.broadcast %cst_73 : f32 to vector<8x64xf32>
    %166 = arith.mulf %165, %164 : vector<8x64xf32>
    %167 = arith.mulf %154, %166 : vector<8x64xf32>
    %168 = arith.truncf %167 : vector<8x64xf32> to vector<8x64xbf16>
    %cst_74 = arith.constant dense<0.000000e+00> : vector<8x32xf32>
    %169 = tpu.matmul %168, %148, %cst_74 {dimension_numbers = #tpu.dot_dimension_numbers<[1], [0], [0], [1], [0, 0, 1, 1], [], []>} : vector<8x64xbf16>, vector<64x32xbf16>, vector<8x32xf32> -> vector<8x32xf32>
    %170 = vector.broadcast %150 : vector<1x32xf32> to vector<8x32xf32>
    %171 = arith.addf %169, %170 : vector<8x32xf32>
    %172 = arith.addf %142, %171 : vector<8x32xf32>
    %c0_75 = arith.constant 0 : index
    %c0_76 = arith.constant 0 : index
    %c0_77 = arith.constant 0 : index
    %173 = vector.load %arg18[%c0_75, %c0_76, %c0_77] : memref<1x1x32xf32, #tpu.memory_space<vmem>>, vector<1x1x32xf32>
    %174 = vector.shape_cast %173 : vector<1x1x32xf32> to vector<1x32xf32>
    %c0_78 = arith.constant 0 : index
    %c0_79 = arith.constant 0 : index
    %c0_80 = arith.constant 0 : index
    %175 = vector.load %arg19[%c0_78, %c0_79, %c0_80] : memref<1x1x32xf32, #tpu.memory_space<vmem>>, vector<1x1x32xf32>
    %176 = vector.shape_cast %175 : vector<1x1x32xf32> to vector<1x32xf32>
    %cst_81 = arith.constant dense<0.000000e+00> : vector<8xf32>
    %177 = vector.multi_reduction <add>, %172, %cst_81 [1] : vector<8x32xf32> to vector<8xf32>
    %178 = vector.shape_cast %177 : vector<8xf32> to vector<8x1xf32>
    %cst_82 = arith.constant 3.200000e+01 : f32
    %179 = vector.broadcast %cst_82 : f32 to vector<8x1xf32>
    %180 = arith.divf %178, %179 : vector<8x1xf32>
    %181 = vector.broadcast %180 : vector<8x1xf32> to vector<8x32xf32>
    %182 = arith.subf %172, %181 : vector<8x32xf32>
    %183 = arith.mulf %182, %182 : vector<8x32xf32>
    %cst_83 = arith.constant dense<0.000000e+00> : vector<8xf32>
    %184 = vector.multi_reduction <add>, %183, %cst_83 [1] : vector<8x32xf32> to vector<8xf32>
    %185 = vector.shape_cast %184 : vector<8xf32> to vector<8x1xf32>
    %cst_84 = arith.constant 3.200000e+01 : f32
    %186 = vector.broadcast %cst_84 : f32 to vector<8x1xf32>
    %187 = arith.divf %185, %186 : vector<8x1xf32>
    %cst_85 = arith.constant 9.99999996E-13 : f32
    %188 = vector.broadcast %cst_85 : f32 to vector<8x1xf32>
    %189 = arith.addf %187, %188 : vector<8x1xf32>
    %190 = math.rsqrt %189 : vector<8x1xf32>
    %191 = vector.broadcast %190 : vector<8x1xf32> to vector<8x32xf32>
    %192 = arith.mulf %182, %191 : vector<8x32xf32>
    %193 = vector.broadcast %174 : vector<1x32xf32> to vector<8x32xf32>
    %194 = arith.mulf %192, %193 : vector<8x32xf32>
    %195 = vector.broadcast %176 : vector<1x32xf32> to vector<8x32xf32>
    %196 = arith.addf %194, %195 : vector<8x32xf32>
    %c0_86 = arith.constant 0 : index
    %c0_87 = arith.constant 0 : index
    %c0_88 = arith.constant 0 : index
    %197 = vector.load %arg21[%c0_86, %c0_87, %c0_88] : memref<1x8x32xf32, #tpu.memory_space<vmem>>, vector<1x8x32xf32>
    %198 = vector.shape_cast %197 : vector<1x8x32xf32> to vector<8x32xf32>
    %199 = vector.shape_cast %196 : vector<8x32xf32> to vector<1x8x32xf32>
    tpu.vector_store %arg21[%c0_86, %c0_87, %c0_88], %199 {strides = array<i32>} : memref<1x8x32xf32, #tpu.memory_space<vmem>>, vector<1x8x32xf32>,
    %c1_i32 = arith.constant 1 : i32
    %200 = arith.cmpi eq, %arg1, %c1_i32 : i32
    %201 = arith.extui %200 : i1 to i32
    %c0_i32_89 = arith.constant 0 : i32
    %202 = arith.cmpi ne, %201, %c0_i32_89 : i32
    scf.if %202 {
      %c0_90 = arith.constant 0 : index
      %c0_91 = arith.constant 0 : index
      %c0_92 = arith.constant 0 : index
      %203 = vector.load %arg20[%c0_90, %c0_91, %c0_92] : memref<1x8x32xf32, #tpu.memory_space<vmem>>, vector<1x8x32xf32>
      %204 = vector.shape_cast %203 : vector<1x8x32xf32> to vector<8x32xf32>
      %205 = vector.shape_cast %196 : vector<8x32xf32> to vector<1x8x32xf32>
      tpu.vector_store %arg20[%c0_90, %c0_91, %c0_92], %205 {strides = array<i32>} : memref<1x8x32xf32, #tpu.memory_space<vmem>>, vector<1x8x32xf32>,
    } else {
    }
    return
  }
  func.func @transform_0(%arg0: i32, %arg1: i32) -> (i32, i32, i32) {
    %c0_i32 = arith.constant 0 : i32
    %c0_i32_0 = arith.constant 0 : i32
    %c0_i32_1 = arith.constant 0 : i32
    return %arg0, %c0_i32, %c0_i32_0 : i32, i32, i32
  }
  func.func @transform_1(%arg0: i32, %arg1: i32) -> (i32, i32, i32) {
    %c0_i32 = arith.constant 0 : i32
    %c0_i32_0 = arith.constant 0 : i32
    %c0_i32_1 = arith.constant 0 : i32
    return %arg0, %c0_i32, %c0_i32_0 : i32, i32, i32
  }
  func.func @transform_2(%arg0: i32, %arg1: i32) -> (i32, i32) {
    %c0_i32 = arith.constant 0 : i32
    %c0_i32_0 = arith.constant 0 : i32
    %c0_i32_1 = arith.constant 0 : i32
    return %c0_i32, %c0_i32_0 : i32, i32
  }
  func.func @transform_3(%arg0: i32, %arg1: i32) -> (i32, i32) {
    %c0_i32 = arith.constant 0 : i32
    %c0_i32_0 = arith.constant 0 : i32
    %c0_i32_1 = arith.constant 0 : i32
    return %c0_i32, %c0_i32_0 : i32, i32
  }
  func.func @transform_4(%arg0: i32, %arg1: i32) -> (i32, i32, i32) {
    %c0_i32 = arith.constant 0 : i32
    %c0_i32_0 = arith.constant 0 : i32
    %c0_i32_1 = arith.constant 0 : i32
    return %arg1, %c0_i32, %c0_i32_0 : i32, i32, i32
  }
  func.func @transform_5(%arg0: i32, %arg1: i32) -> (i32, i32, i32) {
    %c0_i32 = arith.constant 0 : i32
    %c0_i32_0 = arith.constant 0 : i32
    %c0_i32_1 = arith.constant 0 : i32
    return %arg1, %c0_i32, %c0_i32_0 : i32, i32, i32
  }
  func.func @transform_6(%arg0: i32, %arg1: i32) -> (i32, i32, i32) {
    %c0_i32 = arith.constant 0 : i32
    %c0_i32_0 = arith.constant 0 : i32
    %c0_i32_1 = arith.constant 0 : i32
    return %arg1, %c0_i32, %c0_i32_0 : i32, i32, i32
  }
  func.func @transform_7(%arg0: i32, %arg1: i32) -> (i32, i32, i32) {
    %c0_i32 = arith.constant 0 : i32
    %c0_i32_0 = arith.constant 0 : i32
    %c0_i32_1 = arith.constant 0 : i32
    return %arg1, %c0_i32, %c0_i32_0 : i32, i32, i32
  }
  func.func @transform_8(%arg0: i32, %arg1: i32) -> (i32, i32, i32) {
    %c0_i32 = arith.constant 0 : i32
    %c0_i32_0 = arith.constant 0 : i32
    %c0_i32_1 = arith.constant 0 : i32
    return %arg1, %c0_i32, %c0_i32_0 : i32, i32, i32
  }
  func.func @transform_9(%arg0: i32, %arg1: i32) -> (i32, i32, i32) {
    %c0_i32 = arith.constant 0 : i32
    %c0_i32_0 = arith.constant 0 : i32
    %c0_i32_1 = arith.constant 0 : i32
    return %arg1, %c0_i32, %c0_i32_0 : i32, i32, i32
  }
  func.func @transform_10(%arg0: i32, %arg1: i32) -> (i32, i32, i32) {
    %c0_i32 = arith.constant 0 : i32
    %c0_i32_0 = arith.constant 0 : i32
    %c0_i32_1 = arith.constant 0 : i32
    return %arg1, %c0_i32, %c0_i32_0 : i32, i32, i32
  }
  func.func @transform_11(%arg0: i32, %arg1: i32) -> (i32, i32, i32) {
    %c0_i32 = arith.constant 0 : i32
    %c0_i32_0 = arith.constant 0 : i32
    %c0_i32_1 = arith.constant 0 : i32
    return %arg1, %c0_i32, %c0_i32_0 : i32, i32, i32
  }
  func.func @transform_12(%arg0: i32, %arg1: i32) -> (i32, i32, i32) {
    %c0_i32 = arith.constant 0 : i32
    %c0_i32_0 = arith.constant 0 : i32
    %c0_i32_1 = arith.constant 0 : i32
    return %arg1, %c0_i32, %c0_i32_0 : i32, i32, i32
  }
  func.func @transform_13(%arg0: i32, %arg1: i32) -> (i32, i32, i32) {
    %c0_i32 = arith.constant 0 : i32
    %c0_i32_0 = arith.constant 0 : i32
    %c0_i32_1 = arith.constant 0 : i32
    return %arg1, %c0_i32, %c0_i32_0 : i32, i32, i32
  }
  func.func @transform_14(%arg0: i32, %arg1: i32) -> (i32, i32, i32) {
    %c0_i32 = arith.constant 0 : i32
    %c0_i32_0 = arith.constant 0 : i32
    %c0_i32_1 = arith.constant 0 : i32
    return %arg1, %c0_i32, %c0_i32_0 : i32, i32, i32
  }
  func.func @transform_15(%arg0: i32, %arg1: i32) -> (i32, i32, i32) {
    %c0_i32 = arith.constant 0 : i32
    %c0_i32_0 = arith.constant 0 : i32
    %c0_i32_1 = arith.constant 0 : i32
    return %arg1, %c0_i32, %c0_i32_0 : i32, i32, i32
  }
  func.func @transform_16(%arg0: i32, %arg1: i32) -> (i32, i32, i32) {
    %c0_i32 = arith.constant 0 : i32
    %c0_i32_0 = arith.constant 0 : i32
    %c0_i32_1 = arith.constant 0 : i32
    return %arg1, %c0_i32, %c0_i32_0 : i32, i32, i32
  }
  func.func @transform_17(%arg0: i32, %arg1: i32) -> (i32, i32, i32) {
    %c0_i32 = arith.constant 0 : i32
    %c0_i32_0 = arith.constant 0 : i32
    %c0_i32_1 = arith.constant 0 : i32
    return %arg1, %c0_i32, %c0_i32_0 : i32, i32, i32
  }
  func.func @transform_18(%arg0: i32, %arg1: i32) -> (i32, i32, i32) {
    %c0_i32 = arith.constant 0 : i32
    %c0_i32_0 = arith.constant 0 : i32
    %c0_i32_1 = arith.constant 0 : i32
    return %arg0, %c0_i32, %c0_i32_0 : i32, i32, i32
  }
}

module attributes {stable_mosaic.version = 11 : i64} {
  func.func @_decoder_stack_kernel(%arg0: i32, %arg1: i32, %arg2: memref<1x8x32xf32, #tpu.memory_space<vmem>>, %arg3: memref<1x8x32xf32, #tpu.memory_space<vmem>>, %arg4: memref<1x8x8xf32, #tpu.memory_space<vmem>>, %arg5: memref<1x1x8xf32, #tpu.memory_space<vmem>>, %arg6: memref<1x32xf32, #tpu.memory_space<vmem>>, %arg7: memref<1x32xf32, #tpu.memory_space<vmem>>, %arg8: memref<1x32x32xbf16, #tpu.memory_space<vmem>>, %arg9: memref<1x1x32xf32, #tpu.memory_space<vmem>>, %arg10: memref<1x32x64xbf16, #tpu.memory_space<vmem>>, %arg11: memref<1x1x64xf32, #tpu.memory_space<vmem>>, %arg12: memref<1x32x32xbf16, #tpu.memory_space<vmem>>, %arg13: memref<1x1x32xf32, #tpu.memory_space<vmem>>, %arg14: memref<1x1x32xf32, #tpu.memory_space<vmem>>, %arg15: memref<1x1x32xf32, #tpu.memory_space<vmem>>, %arg16: memref<1x32x32xbf16, #tpu.memory_space<vmem>>, %arg17: memref<1x1x32xf32, #tpu.memory_space<vmem>>, %arg18: memref<1x32x64xbf16, #tpu.memory_space<vmem>>, %arg19: memref<1x1x64xf32, #tpu.memory_space<vmem>>, %arg20: memref<1x32x32xbf16, #tpu.memory_space<vmem>>, %arg21: memref<1x1x32xf32, #tpu.memory_space<vmem>>, %arg22: memref<1x1x32xf32, #tpu.memory_space<vmem>>, %arg23: memref<1x1x32xf32, #tpu.memory_space<vmem>>, %arg24: memref<1x32x64xbf16, #tpu.memory_space<vmem>>, %arg25: memref<1x1x64xf32, #tpu.memory_space<vmem>>, %arg26: memref<1x64x32xbf16, #tpu.memory_space<vmem>>, %arg27: memref<1x1x32xf32, #tpu.memory_space<vmem>>, %arg28: memref<1x1x32xf32, #tpu.memory_space<vmem>>, %arg29: memref<1x1x32xf32, #tpu.memory_space<vmem>>, %arg30: memref<1x8x32xf32, #tpu.memory_space<vmem>>, %arg31: memref<1x8x32xf32, #tpu.memory_space<vmem>>) attributes {dimension_semantics = [#tpu.dimension_semantics<parallel>, #tpu.dimension_semantics<arbitrary>], iteration_bounds = array<i64: 2, 2>, scalar_prefetch = 0 : i64, scratch_operands = 1 : i64, tpu.core_type = #tpu.core_type<tc>, window_params = [{transform_indices = @transform_0, window_bounds = array<i64: 1, 8, 32>}, {transform_indices = @transform_1, window_bounds = array<i64: 1, 8, 32>}, {pipeline_mode = #tpu.pipeline_mode<synchronous>, transform_indices = @transform_2, window_bounds = array<i64: 1, 8, 8>}, {transform_indices = @transform_3, window_bounds = array<i64: 1, 1, 8>}, {pipeline_mode = #tpu.pipeline_mode<synchronous>, transform_indices = @transform_4, window_bounds = array<i64: 1, 32>}, {pipeline_mode = #tpu.pipeline_mode<synchronous>, transform_indices = @transform_5, window_bounds = array<i64: 1, 32>}, {transform_indices = @transform_6, window_bounds = array<i64: 1, 32, 32>}, {transform_indices = @transform_7, window_bounds = array<i64: 1, 1, 32>}, {transform_indices = @transform_8, window_bounds = array<i64: 1, 32, 64>}, {transform_indices = @transform_9, window_bounds = array<i64: 1, 1, 64>}, {transform_indices = @transform_10, window_bounds = array<i64: 1, 32, 32>}, {transform_indices = @transform_11, window_bounds = array<i64: 1, 1, 32>}, {transform_indices = @transform_12, window_bounds = array<i64: 1, 1, 32>}, {transform_indices = @transform_13, window_bounds = array<i64: 1, 1, 32>}, {transform_indices = @transform_14, window_bounds = array<i64: 1, 32, 32>}, {transform_indices = @transform_15, window_bounds = array<i64: 1, 1, 32>}, {transform_indices = @transform_16, window_bounds = array<i64: 1, 32, 64>}, {transform_indices = @transform_17, window_bounds = array<i64: 1, 1, 64>}, {transform_indices = @transform_18, window_bounds = array<i64: 1, 32, 32>}, {transform_indices = @transform_19, window_bounds = array<i64: 1, 1, 32>}, {transform_indices = @transform_20, window_bounds = array<i64: 1, 1, 32>}, {transform_indices = @transform_21, window_bounds = array<i64: 1, 1, 32>}, {transform_indices = @transform_22, window_bounds = array<i64: 1, 32, 64>}, {transform_indices = @transform_23, window_bounds = array<i64: 1, 1, 64>}, {transform_indices = @transform_24, window_bounds = array<i64: 1, 64, 32>}, {transform_indices = @transform_25, window_bounds = array<i64: 1, 1, 32>}, {transform_indices = @transform_26, window_bounds = array<i64: 1, 1, 32>}, {transform_indices = @transform_27, window_bounds = array<i64: 1, 1, 32>}, {transform_indices = @transform_28, window_bounds = array<i64: 1, 8, 32>}]} {
    %c0_i32 = arith.constant 0 : i32
    %0 = arith.cmpi eq, %arg1, %c0_i32 : i32
    %1 = arith.extui %0 : i1 to i32
    %c0_i32_0 = arith.constant 0 : i32
    %2 = arith.cmpi ne, %1, %c0_i32_0 : i32
    scf.if %2 {
      %c0_145 = arith.constant 0 : index
      %c0_146 = arith.constant 0 : index
      %c0_147 = arith.constant 0 : index
      %328 = vector.load %arg2[%c0_145, %c0_146, %c0_147] : memref<1x8x32xf32, #tpu.memory_space<vmem>>, vector<1x8x32xf32>
      %329 = vector.shape_cast %328 : vector<1x8x32xf32> to vector<8x32xf32>
      %c0_148 = arith.constant 0 : index
      %c0_149 = arith.constant 0 : index
      %330 = vector.load %arg6[%c0_148, %c0_149] : memref<1x32xf32, #tpu.memory_space<vmem>>, vector<1x32xf32>
      %c0_150 = arith.constant 0 : index
      %c0_151 = arith.constant 0 : index
      %331 = vector.load %arg7[%c0_150, %c0_151] : memref<1x32xf32, #tpu.memory_space<vmem>>, vector<1x32xf32>
      %cst_152 = arith.constant dense<0.000000e+00> : vector<8xf32>
      %332 = vector.multi_reduction <add>, %329, %cst_152 [1] : vector<8x32xf32> to vector<8xf32>
      %333 = vector.shape_cast %332 : vector<8xf32> to vector<8x1xf32>
      %cst_153 = arith.constant 3.200000e+01 : f32
      %334 = vector.broadcast %cst_153 : f32 to vector<8x1xf32>
      %335 = arith.divf %333, %334 : vector<8x1xf32>
      %336 = vector.broadcast %335 : vector<8x1xf32> to vector<8x32xf32>
      %337 = arith.subf %329, %336 : vector<8x32xf32>
      %338 = arith.mulf %337, %337 : vector<8x32xf32>
      %cst_154 = arith.constant dense<0.000000e+00> : vector<8xf32>
      %339 = vector.multi_reduction <add>, %338, %cst_154 [1] : vector<8x32xf32> to vector<8xf32>
      %340 = vector.shape_cast %339 : vector<8xf32> to vector<8x1xf32>
      %cst_155 = arith.constant 3.200000e+01 : f32
      %341 = vector.broadcast %cst_155 : f32 to vector<8x1xf32>
      %342 = arith.divf %340, %341 : vector<8x1xf32>
      %cst_156 = arith.constant 9.99999996E-13 : f32
      %343 = vector.broadcast %cst_156 : f32 to vector<8x1xf32>
      %344 = arith.addf %342, %343 : vector<8x1xf32>
      %345 = math.rsqrt %344 : vector<8x1xf32>
      %346 = vector.broadcast %345 : vector<8x1xf32> to vector<8x32xf32>
      %347 = arith.mulf %337, %346 : vector<8x32xf32>
      %348 = vector.broadcast %330 : vector<1x32xf32> to vector<8x32xf32>
      %349 = arith.mulf %347, %348 : vector<8x32xf32>
      %350 = vector.broadcast %331 : vector<1x32xf32> to vector<8x32xf32>
      %351 = arith.addf %349, %350 : vector<8x32xf32>
      %c0_157 = arith.constant 0 : index
      %c0_158 = arith.constant 0 : index
      %c0_159 = arith.constant 0 : index
      %352 = vector.load %arg31[%c0_157, %c0_158, %c0_159] : memref<1x8x32xf32, #tpu.memory_space<vmem>>, vector<1x8x32xf32>
      %353 = vector.shape_cast %352 : vector<1x8x32xf32> to vector<8x32xf32>
      %354 = vector.shape_cast %351 : vector<8x32xf32> to vector<1x8x32xf32>
      tpu.vector_store %arg31[%c0_157, %c0_158, %c0_159], %354 {strides = array<i32>} : memref<1x8x32xf32, #tpu.memory_space<vmem>>, vector<1x8x32xf32>,
    } else {
    }
    %c0 = arith.constant 0 : index
    %c0_1 = arith.constant 0 : index
    %c0_2 = arith.constant 0 : index
    %3 = vector.load %arg31[%c0, %c0_1, %c0_2] : memref<1x8x32xf32, #tpu.memory_space<vmem>>, vector<1x8x32xf32>
    %4 = vector.shape_cast %3 : vector<1x8x32xf32> to vector<8x32xf32>
    %c0_3 = arith.constant 0 : index
    %c0_4 = arith.constant 0 : index
    %c0_5 = arith.constant 0 : index
    %5 = vector.load %arg3[%c0_3, %c0_4, %c0_5] : memref<1x8x32xf32, #tpu.memory_space<vmem>>, vector<1x8x32xf32>
    %6 = vector.shape_cast %5 : vector<1x8x32xf32> to vector<8x32xf32>
    %c0_6 = arith.constant 0 : index
    %c0_7 = arith.constant 0 : index
    %c0_8 = arith.constant 0 : index
    %7 = vector.load %arg4[%c0_6, %c0_7, %c0_8] : memref<1x8x8xf32, #tpu.memory_space<vmem>>, vector<1x8x8xf32>
    %8 = vector.shape_cast %7 : vector<1x8x8xf32> to vector<8x8xf32>
    %c0_9 = arith.constant 0 : index
    %c0_10 = arith.constant 0 : index
    %c0_11 = arith.constant 0 : index
    %9 = vector.load %arg5[%c0_9, %c0_10, %c0_11] : memref<1x1x8xf32, #tpu.memory_space<vmem>>, vector<1x1x8xf32>
    %10 = vector.shape_cast %9 : vector<1x1x8xf32> to vector<1x8xf32>
    %c0_12 = arith.constant 0 : index
    %c0_13 = arith.constant 0 : index
    %c0_14 = arith.constant 0 : index
    %11 = vector.load %arg8[%c0_12, %c0_13, %c0_14] : memref<1x32x32xbf16, #tpu.memory_space<vmem>>, vector<1x32x32xbf16>
    %12 = vector.shape_cast %11 : vector<1x32x32xbf16> to vector<32x32xbf16>
    %c0_15 = arith.constant 0 : index
    %c0_16 = arith.constant 0 : index
    %c0_17 = arith.constant 0 : index
    %13 = vector.load %arg9[%c0_15, %c0_16, %c0_17] : memref<1x1x32xf32, #tpu.memory_space<vmem>>, vector<1x1x32xf32>
    %14 = vector.shape_cast %13 : vector<1x1x32xf32> to vector<1x32xf32>
    %c0_18 = arith.constant 0 : index
    %c0_19 = arith.constant 0 : index
    %c0_20 = arith.constant 0 : index
    %15 = vector.load %arg10[%c0_18, %c0_19, %c0_20] : memref<1x32x64xbf16, #tpu.memory_space<vmem>>, vector<1x32x64xbf16>
    %16 = vector.shape_cast %15 : vector<1x32x64xbf16> to vector<32x64xbf16>
    %c0_21 = arith.constant 0 : index
    %c0_22 = arith.constant 0 : index
    %c0_23 = arith.constant 0 : index
    %17 = vector.load %arg11[%c0_21, %c0_22, %c0_23] : memref<1x1x64xf32, #tpu.memory_space<vmem>>, vector<1x1x64xf32>
    %18 = vector.shape_cast %17 : vector<1x1x64xf32> to vector<1x64xf32>
    %c0_24 = arith.constant 0 : index
    %c0_25 = arith.constant 0 : index
    %c0_26 = arith.constant 0 : index
    %19 = vector.load %arg12[%c0_24, %c0_25, %c0_26] : memref<1x32x32xbf16, #tpu.memory_space<vmem>>, vector<1x32x32xbf16>
    %20 = vector.shape_cast %19 : vector<1x32x32xbf16> to vector<32x32xbf16>
    %c0_27 = arith.constant 0 : index
    %c0_28 = arith.constant 0 : index
    %c0_29 = arith.constant 0 : index
    %21 = vector.load %arg13[%c0_27, %c0_28, %c0_29] : memref<1x1x32xf32, #tpu.memory_space<vmem>>, vector<1x1x32xf32>
    %22 = vector.shape_cast %21 : vector<1x1x32xf32> to vector<1x32xf32>
    %23 = arith.truncf %4 : vector<8x32xf32> to vector<8x32xbf16>
    %cst = arith.constant dense<0.000000e+00> : vector<8x32xf32>
    %24 = tpu.matmul %23, %12, %cst {dimension_numbers = #tpu.dot_dimension_numbers<[1], [0], [0], [1], [0, 0, 1, 1], [], []>} : vector<8x32xbf16>, vector<32x32xbf16>, vector<8x32xf32> -> vector<8x32xf32>
    %25 = vector.broadcast %14 : vector<1x32xf32> to vector<8x32xf32>
    %26 = arith.addf %24, %25 : vector<8x32xf32>
    %27 = arith.truncf %4 : vector<8x32xf32> to vector<8x32xbf16>
    %cst_30 = arith.constant dense<0.000000e+00> : vector<8x64xf32>
    %28 = tpu.matmul %27, %16, %cst_30 {dimension_numbers = #tpu.dot_dimension_numbers<[1], [0], [0], [1], [0, 0, 1, 1], [], []>} : vector<8x32xbf16>, vector<32x64xbf16>, vector<8x64xf32> -> vector<8x64xf32>
    %29 = vector.broadcast %18 : vector<1x64xf32> to vector<8x64xf32>
    %30 = arith.addf %28, %29 : vector<8x64xf32>
    %31 = vector.extract_strided_slice %30 {offsets = [0, 0], sizes = [8, 32], strides = [1, 1]} : vector<8x64xf32> to vector<8x32xf32>
    %32 = vector.extract_strided_slice %30 {offsets = [0, 32], sizes = [8, 32], strides = [1, 1]} : vector<8x64xf32> to vector<8x32xf32>
    %33 = vector.extract_strided_slice %26 {offsets = [0, 0], sizes = [8, 8], strides = [1, 1]} : vector<8x32xf32> to vector<8x8xf32>
    %34 = vector.extract_strided_slice %31 {offsets = [0, 0], sizes = [8, 8], strides = [1, 1]} : vector<8x32xf32> to vector<8x8xf32>
    %cst_31 = arith.constant dense<0.000000e+00> : vector<8x8xf32>
    %35 = tpu.matmul %33, %34, %cst_31 {dimension_numbers = #tpu.dot_dimension_numbers<[1], [1], [0], [0], [0, 0, 1, 0], [], []>} : vector<8x8xf32>, vector<8x8xf32>, vector<8x8xf32> -> vector<8x8xf32>
    %cst_32 = arith.constant 0.353553385 : f32
    %36 = vector.broadcast %cst_32 : f32 to vector<8x8xf32>
    %37 = arith.mulf %35, %36 : vector<8x8xf32>
    %38 = arith.addf %37, %8 : vector<8x8xf32>
    %cst_33 = arith.constant dense<0xFF800000> : vector<8xf32>
    %39 = vector.multi_reduction <maximumf>, %38, %cst_33 [1] : vector<8x8xf32> to vector<8xf32>
    %40 = vector.shape_cast %39 : vector<8xf32> to vector<8x1xf32>
    %41 = vector.broadcast %40 : vector<8x1xf32> to vector<8x8xf32>
    %42 = arith.subf %38, %41 : vector<8x8xf32>
    %43 = math.exp %42 : vector<8x8xf32>
    %cst_34 = arith.constant dense<0.000000e+00> : vector<8xf32>
    %44 = vector.multi_reduction <add>, %43, %cst_34 [1] : vector<8x8xf32> to vector<8xf32>
    %45 = vector.shape_cast %44 : vector<8xf32> to vector<8x1xf32>
    %46 = tpu.reciprocal %45 {approx = true} : vector<8x1xf32> -> vector<8x1xf32>
    %47 = vector.broadcast %46 : vector<8x1xf32> to vector<8x8xf32>
    %48 = arith.mulf %43, %47 : vector<8x8xf32>
    %49 = arith.truncf %48 : vector<8x8xf32> to vector<8x8xbf16>
    %50 = vector.extract_strided_slice %32 {offsets = [0, 0], sizes = [8, 8], strides = [1, 1]} : vector<8x32xf32> to vector<8x8xf32>
    %51 = arith.truncf %50 : vector<8x8xf32> to vector<8x8xbf16>
    %cst_35 = arith.constant dense<0.000000e+00> : vector<8x8xf32>
    %52 = tpu.matmul %49, %51, %cst_35 {dimension_numbers = #tpu.dot_dimension_numbers<[1], [0], [0], [1], [0, 0, 1, 1], [], []>} : vector<8x8xbf16>, vector<8x8xbf16>, vector<8x8xf32> -> vector<8x8xf32>
    %53 = vector.extract_strided_slice %26 {offsets = [0, 8], sizes = [8, 8], strides = [1, 1]} : vector<8x32xf32> to vector<8x8xf32>
    %54 = vector.extract_strided_slice %31 {offsets = [0, 8], sizes = [8, 8], strides = [1, 1]} : vector<8x32xf32> to vector<8x8xf32>
    %cst_36 = arith.constant dense<0.000000e+00> : vector<8x8xf32>
    %55 = tpu.matmul %53, %54, %cst_36 {dimension_numbers = #tpu.dot_dimension_numbers<[1], [1], [0], [0], [0, 0, 1, 0], [], []>} : vector<8x8xf32>, vector<8x8xf32>, vector<8x8xf32> -> vector<8x8xf32>
    %cst_37 = arith.constant 0.353553385 : f32
    %56 = vector.broadcast %cst_37 : f32 to vector<8x8xf32>
    %57 = arith.mulf %55, %56 : vector<8x8xf32>
    %58 = arith.addf %57, %8 : vector<8x8xf32>
    %cst_38 = arith.constant dense<0xFF800000> : vector<8xf32>
    %59 = vector.multi_reduction <maximumf>, %58, %cst_38 [1] : vector<8x8xf32> to vector<8xf32>
    %60 = vector.shape_cast %59 : vector<8xf32> to vector<8x1xf32>
    %61 = vector.broadcast %60 : vector<8x1xf32> to vector<8x8xf32>
    %62 = arith.subf %58, %61 : vector<8x8xf32>
    %63 = math.exp %62 : vector<8x8xf32>
    %cst_39 = arith.constant dense<0.000000e+00> : vector<8xf32>
    %64 = vector.multi_reduction <add>, %63, %cst_39 [1] : vector<8x8xf32> to vector<8xf32>
    %65 = vector.shape_cast %64 : vector<8xf32> to vector<8x1xf32>
    %66 = tpu.reciprocal %65 {approx = true} : vector<8x1xf32> -> vector<8x1xf32>
    %67 = vector.broadcast %66 : vector<8x1xf32> to vector<8x8xf32>
    %68 = arith.mulf %63, %67 : vector<8x8xf32>
    %69 = arith.truncf %68 : vector<8x8xf32> to vector<8x8xbf16>
    %70 = vector.extract_strided_slice %32 {offsets = [0, 8], sizes = [8, 8], strides = [1, 1]} : vector<8x32xf32> to vector<8x8xf32>
    %71 = arith.truncf %70 : vector<8x8xf32> to vector<8x8xbf16>
    %cst_40 = arith.constant dense<0.000000e+00> : vector<8x8xf32>
    %72 = tpu.matmul %69, %71, %cst_40 {dimension_numbers = #tpu.dot_dimension_numbers<[1], [0], [0], [1], [0, 0, 1, 1], [], []>} : vector<8x8xbf16>, vector<8x8xbf16>, vector<8x8xf32> -> vector<8x8xf32>
    %73 = vector.extract_strided_slice %26 {offsets = [0, 16], sizes = [8, 8], strides = [1, 1]} : vector<8x32xf32> to vector<8x8xf32>
    %74 = vector.extract_strided_slice %31 {offsets = [0, 16], sizes = [8, 8], strides = [1, 1]} : vector<8x32xf32> to vector<8x8xf32>
    %cst_41 = arith.constant dense<0.000000e+00> : vector<8x8xf32>
    %75 = tpu.matmul %73, %74, %cst_41 {dimension_numbers = #tpu.dot_dimension_numbers<[1], [1], [0], [0], [0, 0, 1, 0], [], []>} : vector<8x8xf32>, vector<8x8xf32>, vector<8x8xf32> -> vector<8x8xf32>
    %cst_42 = arith.constant 0.353553385 : f32
    %76 = vector.broadcast %cst_42 : f32 to vector<8x8xf32>
    %77 = arith.mulf %75, %76 : vector<8x8xf32>
    %78 = arith.addf %77, %8 : vector<8x8xf32>
    %cst_43 = arith.constant dense<0xFF800000> : vector<8xf32>
    %79 = vector.multi_reduction <maximumf>, %78, %cst_43 [1] : vector<8x8xf32> to vector<8xf32>
    %80 = vector.shape_cast %79 : vector<8xf32> to vector<8x1xf32>
    %81 = vector.broadcast %80 : vector<8x1xf32> to vector<8x8xf32>
    %82 = arith.subf %78, %81 : vector<8x8xf32>
    %83 = math.exp %82 : vector<8x8xf32>
    %cst_44 = arith.constant dense<0.000000e+00> : vector<8xf32>
    %84 = vector.multi_reduction <add>, %83, %cst_44 [1] : vector<8x8xf32> to vector<8xf32>
    %85 = vector.shape_cast %84 : vector<8xf32> to vector<8x1xf32>
    %86 = tpu.reciprocal %85 {approx = true} : vector<8x1xf32> -> vector<8x1xf32>
    %87 = vector.broadcast %86 : vector<8x1xf32> to vector<8x8xf32>
    %88 = arith.mulf %83, %87 : vector<8x8xf32>
    %89 = arith.truncf %88 : vector<8x8xf32> to vector<8x8xbf16>
    %90 = vector.extract_strided_slice %32 {offsets = [0, 16], sizes = [8, 8], strides = [1, 1]} : vector<8x32xf32> to vector<8x8xf32>
    %91 = arith.truncf %90 : vector<8x8xf32> to vector<8x8xbf16>
    %cst_45 = arith.constant dense<0.000000e+00> : vector<8x8xf32>
    %92 = tpu.matmul %89, %91, %cst_45 {dimension_numbers = #tpu.dot_dimension_numbers<[1], [0], [0], [1], [0, 0, 1, 1], [], []>} : vector<8x8xbf16>, vector<8x8xbf16>, vector<8x8xf32> -> vector<8x8xf32>
    %93 = vector.extract_strided_slice %26 {offsets = [0, 24], sizes = [8, 8], strides = [1, 1]} : vector<8x32xf32> to vector<8x8xf32>
    %94 = vector.extract_strided_slice %31 {offsets = [0, 24], sizes = [8, 8], strides = [1, 1]} : vector<8x32xf32> to vector<8x8xf32>
    %cst_46 = arith.constant dense<0.000000e+00> : vector<8x8xf32>
    %95 = tpu.matmul %93, %94, %cst_46 {dimension_numbers = #tpu.dot_dimension_numbers<[1], [1], [0], [0], [0, 0, 1, 0], [], []>} : vector<8x8xf32>, vector<8x8xf32>, vector<8x8xf32> -> vector<8x8xf32>
    %cst_47 = arith.constant 0.353553385 : f32
    %96 = vector.broadcast %cst_47 : f32 to vector<8x8xf32>
    %97 = arith.mulf %95, %96 : vector<8x8xf32>
    %98 = arith.addf %97, %8 : vector<8x8xf32>
    %cst_48 = arith.constant dense<0xFF800000> : vector<8xf32>
    %99 = vector.multi_reduction <maximumf>, %98, %cst_48 [1] : vector<8x8xf32> to vector<8xf32>
    %100 = vector.shape_cast %99 : vector<8xf32> to vector<8x1xf32>
    %101 = vector.broadcast %100 : vector<8x1xf32> to vector<8x8xf32>
    %102 = arith.subf %98, %101 : vector<8x8xf32>
    %103 = math.exp %102 : vector<8x8xf32>
    %cst_49 = arith.constant dense<0.000000e+00> : vector<8xf32>
    %104 = vector.multi_reduction <add>, %103, %cst_49 [1] : vector<8x8xf32> to vector<8xf32>
    %105 = vector.shape_cast %104 : vector<8xf32> to vector<8x1xf32>
    %106 = tpu.reciprocal %105 {approx = true} : vector<8x1xf32> -> vector<8x1xf32>
    %107 = vector.broadcast %106 : vector<8x1xf32> to vector<8x8xf32>
    %108 = arith.mulf %103, %107 : vector<8x8xf32>
    %109 = arith.truncf %108 : vector<8x8xf32> to vector<8x8xbf16>
    %110 = vector.extract_strided_slice %32 {offsets = [0, 24], sizes = [8, 8], strides = [1, 1]} : vector<8x32xf32> to vector<8x8xf32>
    %111 = arith.truncf %110 : vector<8x8xf32> to vector<8x8xbf16>
    %cst_50 = arith.constant dense<0.000000e+00> : vector<8x8xf32>
    %112 = tpu.matmul %109, %111, %cst_50 {dimension_numbers = #tpu.dot_dimension_numbers<[1], [0], [0], [1], [0, 0, 1, 1], [], []>} : vector<8x8xbf16>, vector<8x8xbf16>, vector<8x8xf32> -> vector<8x8xf32>
    %113 = tpu.concatenate %52, %72, %92, %112 in 1 : vector<8x8xf32>, vector<8x8xf32>, vector<8x8xf32>, vector<8x8xf32> -> vector<8x32xf32>
    %114 = arith.truncf %113 : vector<8x32xf32> to vector<8x32xbf16>
    %cst_51 = arith.constant dense<0.000000e+00> : vector<8x32xf32>
    %115 = tpu.matmul %114, %20, %cst_51 {dimension_numbers = #tpu.dot_dimension_numbers<[1], [0], [0], [1], [0, 0, 1, 1], [], []>} : vector<8x32xbf16>, vector<32x32xbf16>, vector<8x32xf32> -> vector<8x32xf32>
    %116 = vector.broadcast %22 : vector<1x32xf32> to vector<8x32xf32>
    %117 = arith.addf %115, %116 : vector<8x32xf32>
    %118 = arith.addf %4, %117 : vector<8x32xf32>
    %c0_52 = arith.constant 0 : index
    %c0_53 = arith.constant 0 : index
    %c0_54 = arith.constant 0 : index
    %119 = vector.load %arg14[%c0_52, %c0_53, %c0_54] : memref<1x1x32xf32, #tpu.memory_space<vmem>>, vector<1x1x32xf32>
    %120 = vector.shape_cast %119 : vector<1x1x32xf32> to vector<1x32xf32>
    %c0_55 = arith.constant 0 : index
    %c0_56 = arith.constant 0 : index
    %c0_57 = arith.constant 0 : index
    %121 = vector.load %arg15[%c0_55, %c0_56, %c0_57] : memref<1x1x32xf32, #tpu.memory_space<vmem>>, vector<1x1x32xf32>
    %122 = vector.shape_cast %121 : vector<1x1x32xf32> to vector<1x32xf32>
    %cst_58 = arith.constant dense<0.000000e+00> : vector<8xf32>
    %123 = vector.multi_reduction <add>, %118, %cst_58 [1] : vector<8x32xf32> to vector<8xf32>
    %124 = vector.shape_cast %123 : vector<8xf32> to vector<8x1xf32>
    %cst_59 = arith.constant 3.200000e+01 : f32
    %125 = vector.broadcast %cst_59 : f32 to vector<8x1xf32>
    %126 = arith.divf %124, %125 : vector<8x1xf32>
    %127 = vector.broadcast %126 : vector<8x1xf32> to vector<8x32xf32>
    %128 = arith.subf %118, %127 : vector<8x32xf32>
    %129 = arith.mulf %128, %128 : vector<8x32xf32>
    %cst_60 = arith.constant dense<0.000000e+00> : vector<8xf32>
    %130 = vector.multi_reduction <add>, %129, %cst_60 [1] : vector<8x32xf32> to vector<8xf32>
    %131 = vector.shape_cast %130 : vector<8xf32> to vector<8x1xf32>
    %cst_61 = arith.constant 3.200000e+01 : f32
    %132 = vector.broadcast %cst_61 : f32 to vector<8x1xf32>
    %133 = arith.divf %131, %132 : vector<8x1xf32>
    %cst_62 = arith.constant 9.99999974E-6 : f32
    %134 = vector.broadcast %cst_62 : f32 to vector<8x1xf32>
    %135 = arith.addf %133, %134 : vector<8x1xf32>
    %136 = math.rsqrt %135 : vector<8x1xf32>
    %137 = vector.broadcast %136 : vector<8x1xf32> to vector<8x32xf32>
    %138 = arith.mulf %128, %137 : vector<8x32xf32>
    %139 = vector.broadcast %120 : vector<1x32xf32> to vector<8x32xf32>
    %140 = arith.mulf %138, %139 : vector<8x32xf32>
    %141 = vector.broadcast %122 : vector<1x32xf32> to vector<8x32xf32>
    %142 = arith.addf %140, %141 : vector<8x32xf32>
    %c0_63 = arith.constant 0 : index
    %c0_64 = arith.constant 0 : index
    %c0_65 = arith.constant 0 : index
    %143 = vector.load %arg16[%c0_63, %c0_64, %c0_65] : memref<1x32x32xbf16, #tpu.memory_space<vmem>>, vector<1x32x32xbf16>
    %144 = vector.shape_cast %143 : vector<1x32x32xbf16> to vector<32x32xbf16>
    %c0_66 = arith.constant 0 : index
    %c0_67 = arith.constant 0 : index
    %c0_68 = arith.constant 0 : index
    %145 = vector.load %arg17[%c0_66, %c0_67, %c0_68] : memref<1x1x32xf32, #tpu.memory_space<vmem>>, vector<1x1x32xf32>
    %146 = vector.shape_cast %145 : vector<1x1x32xf32> to vector<1x32xf32>
    %c0_69 = arith.constant 0 : index
    %c0_70 = arith.constant 0 : index
    %c0_71 = arith.constant 0 : index
    %147 = vector.load %arg18[%c0_69, %c0_70, %c0_71] : memref<1x32x64xbf16, #tpu.memory_space<vmem>>, vector<1x32x64xbf16>
    %148 = vector.shape_cast %147 : vector<1x32x64xbf16> to vector<32x64xbf16>
    %c0_72 = arith.constant 0 : index
    %c0_73 = arith.constant 0 : index
    %c0_74 = arith.constant 0 : index
    %149 = vector.load %arg19[%c0_72, %c0_73, %c0_74] : memref<1x1x64xf32, #tpu.memory_space<vmem>>, vector<1x1x64xf32>
    %150 = vector.shape_cast %149 : vector<1x1x64xf32> to vector<1x64xf32>
    %c0_75 = arith.constant 0 : index
    %c0_76 = arith.constant 0 : index
    %c0_77 = arith.constant 0 : index
    %151 = vector.load %arg20[%c0_75, %c0_76, %c0_77] : memref<1x32x32xbf16, #tpu.memory_space<vmem>>, vector<1x32x32xbf16>
    %152 = vector.shape_cast %151 : vector<1x32x32xbf16> to vector<32x32xbf16>
    %c0_78 = arith.constant 0 : index
    %c0_79 = arith.constant 0 : index
    %c0_80 = arith.constant 0 : index
    %153 = vector.load %arg21[%c0_78, %c0_79, %c0_80] : memref<1x1x32xf32, #tpu.memory_space<vmem>>, vector<1x1x32xf32>
    %154 = vector.shape_cast %153 : vector<1x1x32xf32> to vector<1x32xf32>
    %155 = arith.truncf %142 : vector<8x32xf32> to vector<8x32xbf16>
    %cst_81 = arith.constant dense<0.000000e+00> : vector<8x32xf32>
    %156 = tpu.matmul %155, %144, %cst_81 {dimension_numbers = #tpu.dot_dimension_numbers<[1], [0], [0], [1], [0, 0, 1, 1], [], []>} : vector<8x32xbf16>, vector<32x32xbf16>, vector<8x32xf32> -> vector<8x32xf32>
    %157 = vector.broadcast %146 : vector<1x32xf32> to vector<8x32xf32>
    %158 = arith.addf %156, %157 : vector<8x32xf32>
    %159 = arith.truncf %6 : vector<8x32xf32> to vector<8x32xbf16>
    %cst_82 = arith.constant dense<0.000000e+00> : vector<8x64xf32>
    %160 = tpu.matmul %159, %148, %cst_82 {dimension_numbers = #tpu.dot_dimension_numbers<[1], [0], [0], [1], [0, 0, 1, 1], [], []>} : vector<8x32xbf16>, vector<32x64xbf16>, vector<8x64xf32> -> vector<8x64xf32>
    %161 = vector.broadcast %150 : vector<1x64xf32> to vector<8x64xf32>
    %162 = arith.addf %160, %161 : vector<8x64xf32>
    %163 = vector.extract_strided_slice %162 {offsets = [0, 0], sizes = [8, 32], strides = [1, 1]} : vector<8x64xf32> to vector<8x32xf32>
    %164 = vector.extract_strided_slice %162 {offsets = [0, 32], sizes = [8, 32], strides = [1, 1]} : vector<8x64xf32> to vector<8x32xf32>
    %165 = vector.extract_strided_slice %158 {offsets = [0, 0], sizes = [8, 8], strides = [1, 1]} : vector<8x32xf32> to vector<8x8xf32>
    %166 = vector.extract_strided_slice %163 {offsets = [0, 0], sizes = [8, 8], strides = [1, 1]} : vector<8x32xf32> to vector<8x8xf32>
    %cst_83 = arith.constant dense<0.000000e+00> : vector<8x8xf32>
    %167 = tpu.matmul %165, %166, %cst_83 {dimension_numbers = #tpu.dot_dimension_numbers<[1], [1], [0], [0], [0, 0, 1, 0], [], []>} : vector<8x8xf32>, vector<8x8xf32>, vector<8x8xf32> -> vector<8x8xf32>
    %cst_84 = arith.constant 0.353553385 : f32
    %168 = vector.broadcast %cst_84 : f32 to vector<8x8xf32>
    %169 = arith.mulf %167, %168 : vector<8x8xf32>
    %170 = vector.broadcast %10 : vector<1x8xf32> to vector<8x8xf32>
    %171 = arith.addf %169, %170 : vector<8x8xf32>
    %cst_85 = arith.constant dense<0xFF800000> : vector<8xf32>
    %172 = vector.multi_reduction <maximumf>, %171, %cst_85 [1] : vector<8x8xf32> to vector<8xf32>
    %173 = vector.shape_cast %172 : vector<8xf32> to vector<8x1xf32>
    %174 = vector.broadcast %173 : vector<8x1xf32> to vector<8x8xf32>
    %175 = arith.subf %171, %174 : vector<8x8xf32>
    %176 = math.exp %175 : vector<8x8xf32>
    %cst_86 = arith.constant dense<0.000000e+00> : vector<8xf32>
    %177 = vector.multi_reduction <add>, %176, %cst_86 [1] : vector<8x8xf32> to vector<8xf32>
    %178 = vector.shape_cast %177 : vector<8xf32> to vector<8x1xf32>
    %179 = tpu.reciprocal %178 {approx = true} : vector<8x1xf32> -> vector<8x1xf32>
    %180 = vector.broadcast %179 : vector<8x1xf32> to vector<8x8xf32>
    %181 = arith.mulf %176, %180 : vector<8x8xf32>
    %182 = arith.truncf %181 : vector<8x8xf32> to vector<8x8xbf16>
    %183 = vector.extract_strided_slice %164 {offsets = [0, 0], sizes = [8, 8], strides = [1, 1]} : vector<8x32xf32> to vector<8x8xf32>
    %184 = arith.truncf %183 : vector<8x8xf32> to vector<8x8xbf16>
    %cst_87 = arith.constant dense<0.000000e+00> : vector<8x8xf32>
    %185 = tpu.matmul %182, %184, %cst_87 {dimension_numbers = #tpu.dot_dimension_numbers<[1], [0], [0], [1], [0, 0, 1, 1], [], []>} : vector<8x8xbf16>, vector<8x8xbf16>, vector<8x8xf32> -> vector<8x8xf32>
    %186 = vector.extract_strided_slice %158 {offsets = [0, 8], sizes = [8, 8], strides = [1, 1]} : vector<8x32xf32> to vector<8x8xf32>
    %187 = vector.extract_strided_slice %163 {offsets = [0, 8], sizes = [8, 8], strides = [1, 1]} : vector<8x32xf32> to vector<8x8xf32>
    %cst_88 = arith.constant dense<0.000000e+00> : vector<8x8xf32>
    %188 = tpu.matmul %186, %187, %cst_88 {dimension_numbers = #tpu.dot_dimension_numbers<[1], [1], [0], [0], [0, 0, 1, 0], [], []>} : vector<8x8xf32>, vector<8x8xf32>, vector<8x8xf32> -> vector<8x8xf32>
    %cst_89 = arith.constant 0.353553385 : f32
    %189 = vector.broadcast %cst_89 : f32 to vector<8x8xf32>
    %190 = arith.mulf %188, %189 : vector<8x8xf32>
    %191 = vector.broadcast %10 : vector<1x8xf32> to vector<8x8xf32>
    %192 = arith.addf %190, %191 : vector<8x8xf32>
    %cst_90 = arith.constant dense<0xFF800000> : vector<8xf32>
    %193 = vector.multi_reduction <maximumf>, %192, %cst_90 [1] : vector<8x8xf32> to vector<8xf32>
    %194 = vector.shape_cast %193 : vector<8xf32> to vector<8x1xf32>
    %195 = vector.broadcast %194 : vector<8x1xf32> to vector<8x8xf32>
    %196 = arith.subf %192, %195 : vector<8x8xf32>
    %197 = math.exp %196 : vector<8x8xf32>
    %cst_91 = arith.constant dense<0.000000e+00> : vector<8xf32>
    %198 = vector.multi_reduction <add>, %197, %cst_91 [1] : vector<8x8xf32> to vector<8xf32>
    %199 = vector.shape_cast %198 : vector<8xf32> to vector<8x1xf32>
    %200 = tpu.reciprocal %199 {approx = true} : vector<8x1xf32> -> vector<8x1xf32>
    %201 = vector.broadcast %200 : vector<8x1xf32> to vector<8x8xf32>
    %202 = arith.mulf %197, %201 : vector<8x8xf32>
    %203 = arith.truncf %202 : vector<8x8xf32> to vector<8x8xbf16>
    %204 = vector.extract_strided_slice %164 {offsets = [0, 8], sizes = [8, 8], strides = [1, 1]} : vector<8x32xf32> to vector<8x8xf32>
    %205 = arith.truncf %204 : vector<8x8xf32> to vector<8x8xbf16>
    %cst_92 = arith.constant dense<0.000000e+00> : vector<8x8xf32>
    %206 = tpu.matmul %203, %205, %cst_92 {dimension_numbers = #tpu.dot_dimension_numbers<[1], [0], [0], [1], [0, 0, 1, 1], [], []>} : vector<8x8xbf16>, vector<8x8xbf16>, vector<8x8xf32> -> vector<8x8xf32>
    %207 = vector.extract_strided_slice %158 {offsets = [0, 16], sizes = [8, 8], strides = [1, 1]} : vector<8x32xf32> to vector<8x8xf32>
    %208 = vector.extract_strided_slice %163 {offsets = [0, 16], sizes = [8, 8], strides = [1, 1]} : vector<8x32xf32> to vector<8x8xf32>
    %cst_93 = arith.constant dense<0.000000e+00> : vector<8x8xf32>
    %209 = tpu.matmul %207, %208, %cst_93 {dimension_numbers = #tpu.dot_dimension_numbers<[1], [1], [0], [0], [0, 0, 1, 0], [], []>} : vector<8x8xf32>, vector<8x8xf32>, vector<8x8xf32> -> vector<8x8xf32>
    %cst_94 = arith.constant 0.353553385 : f32
    %210 = vector.broadcast %cst_94 : f32 to vector<8x8xf32>
    %211 = arith.mulf %209, %210 : vector<8x8xf32>
    %212 = vector.broadcast %10 : vector<1x8xf32> to vector<8x8xf32>
    %213 = arith.addf %211, %212 : vector<8x8xf32>
    %cst_95 = arith.constant dense<0xFF800000> : vector<8xf32>
    %214 = vector.multi_reduction <maximumf>, %213, %cst_95 [1] : vector<8x8xf32> to vector<8xf32>
    %215 = vector.shape_cast %214 : vector<8xf32> to vector<8x1xf32>
    %216 = vector.broadcast %215 : vector<8x1xf32> to vector<8x8xf32>
    %217 = arith.subf %213, %216 : vector<8x8xf32>
    %218 = math.exp %217 : vector<8x8xf32>
    %cst_96 = arith.constant dense<0.000000e+00> : vector<8xf32>
    %219 = vector.multi_reduction <add>, %218, %cst_96 [1] : vector<8x8xf32> to vector<8xf32>
    %220 = vector.shape_cast %219 : vector<8xf32> to vector<8x1xf32>
    %221 = tpu.reciprocal %220 {approx = true} : vector<8x1xf32> -> vector<8x1xf32>
    %222 = vector.broadcast %221 : vector<8x1xf32> to vector<8x8xf32>
    %223 = arith.mulf %218, %222 : vector<8x8xf32>
    %224 = arith.truncf %223 : vector<8x8xf32> to vector<8x8xbf16>
    %225 = vector.extract_strided_slice %164 {offsets = [0, 16], sizes = [8, 8], strides = [1, 1]} : vector<8x32xf32> to vector<8x8xf32>
    %226 = arith.truncf %225 : vector<8x8xf32> to vector<8x8xbf16>
    %cst_97 = arith.constant dense<0.000000e+00> : vector<8x8xf32>
    %227 = tpu.matmul %224, %226, %cst_97 {dimension_numbers = #tpu.dot_dimension_numbers<[1], [0], [0], [1], [0, 0, 1, 1], [], []>} : vector<8x8xbf16>, vector<8x8xbf16>, vector<8x8xf32> -> vector<8x8xf32>
    %228 = vector.extract_strided_slice %158 {offsets = [0, 24], sizes = [8, 8], strides = [1, 1]} : vector<8x32xf32> to vector<8x8xf32>
    %229 = vector.extract_strided_slice %163 {offsets = [0, 24], sizes = [8, 8], strides = [1, 1]} : vector<8x32xf32> to vector<8x8xf32>
    %cst_98 = arith.constant dense<0.000000e+00> : vector<8x8xf32>
    %230 = tpu.matmul %228, %229, %cst_98 {dimension_numbers = #tpu.dot_dimension_numbers<[1], [1], [0], [0], [0, 0, 1, 0], [], []>} : vector<8x8xf32>, vector<8x8xf32>, vector<8x8xf32> -> vector<8x8xf32>
    %cst_99 = arith.constant 0.353553385 : f32
    %231 = vector.broadcast %cst_99 : f32 to vector<8x8xf32>
    %232 = arith.mulf %230, %231 : vector<8x8xf32>
    %233 = vector.broadcast %10 : vector<1x8xf32> to vector<8x8xf32>
    %234 = arith.addf %232, %233 : vector<8x8xf32>
    %cst_100 = arith.constant dense<0xFF800000> : vector<8xf32>
    %235 = vector.multi_reduction <maximumf>, %234, %cst_100 [1] : vector<8x8xf32> to vector<8xf32>
    %236 = vector.shape_cast %235 : vector<8xf32> to vector<8x1xf32>
    %237 = vector.broadcast %236 : vector<8x1xf32> to vector<8x8xf32>
    %238 = arith.subf %234, %237 : vector<8x8xf32>
    %239 = math.exp %238 : vector<8x8xf32>
    %cst_101 = arith.constant dense<0.000000e+00> : vector<8xf32>
    %240 = vector.multi_reduction <add>, %239, %cst_101 [1] : vector<8x8xf32> to vector<8xf32>
    %241 = vector.shape_cast %240 : vector<8xf32> to vector<8x1xf32>
    %242 = tpu.reciprocal %241 {approx = true} : vector<8x1xf32> -> vector<8x1xf32>
    %243 = vector.broadcast %242 : vector<8x1xf32> to vector<8x8xf32>
    %244 = arith.mulf %239, %243 : vector<8x8xf32>
    %245 = arith.truncf %244 : vector<8x8xf32> to vector<8x8xbf16>
    %246 = vector.extract_strided_slice %164 {offsets = [0, 24], sizes = [8, 8], strides = [1, 1]} : vector<8x32xf32> to vector<8x8xf32>
    %247 = arith.truncf %246 : vector<8x8xf32> to vector<8x8xbf16>
    %cst_102 = arith.constant dense<0.000000e+00> : vector<8x8xf32>
    %248 = tpu.matmul %245, %247, %cst_102 {dimension_numbers = #tpu.dot_dimension_numbers<[1], [0], [0], [1], [0, 0, 1, 1], [], []>} : vector<8x8xbf16>, vector<8x8xbf16>, vector<8x8xf32> -> vector<8x8xf32>
    %249 = tpu.concatenate %185, %206, %227, %248 in 1 : vector<8x8xf32>, vector<8x8xf32>, vector<8x8xf32>, vector<8x8xf32> -> vector<8x32xf32>
    %250 = arith.truncf %249 : vector<8x32xf32> to vector<8x32xbf16>
    %cst_103 = arith.constant dense<0.000000e+00> : vector<8x32xf32>
    %251 = tpu.matmul %250, %152, %cst_103 {dimension_numbers = #tpu.dot_dimension_numbers<[1], [0], [0], [1], [0, 0, 1, 1], [], []>} : vector<8x32xbf16>, vector<32x32xbf16>, vector<8x32xf32> -> vector<8x32xf32>
    %252 = vector.broadcast %154 : vector<1x32xf32> to vector<8x32xf32>
    %253 = arith.addf %251, %252 : vector<8x32xf32>
    %254 = arith.addf %142, %253 : vector<8x32xf32>
    %c0_104 = arith.constant 0 : index
    %c0_105 = arith.constant 0 : index
    %c0_106 = arith.constant 0 : index
    %255 = vector.load %arg22[%c0_104, %c0_105, %c0_106] : memref<1x1x32xf32, #tpu.memory_space<vmem>>, vector<1x1x32xf32>
    %256 = vector.shape_cast %255 : vector<1x1x32xf32> to vector<1x32xf32>
    %c0_107 = arith.constant 0 : index
    %c0_108 = arith.constant 0 : index
    %c0_109 = arith.constant 0 : index
    %257 = vector.load %arg23[%c0_107, %c0_108, %c0_109] : memref<1x1x32xf32, #tpu.memory_space<vmem>>, vector<1x1x32xf32>
    %258 = vector.shape_cast %257 : vector<1x1x32xf32> to vector<1x32xf32>
    %cst_110 = arith.constant dense<0.000000e+00> : vector<8xf32>
    %259 = vector.multi_reduction <add>, %254, %cst_110 [1] : vector<8x32xf32> to vector<8xf32>
    %260 = vector.shape_cast %259 : vector<8xf32> to vector<8x1xf32>
    %cst_111 = arith.constant 3.200000e+01 : f32
    %261 = vector.broadcast %cst_111 : f32 to vector<8x1xf32>
    %262 = arith.divf %260, %261 : vector<8x1xf32>
    %263 = vector.broadcast %262 : vector<8x1xf32> to vector<8x32xf32>
    %264 = arith.subf %254, %263 : vector<8x32xf32>
    %265 = arith.mulf %264, %264 : vector<8x32xf32>
    %cst_112 = arith.constant dense<0.000000e+00> : vector<8xf32>
    %266 = vector.multi_reduction <add>, %265, %cst_112 [1] : vector<8x32xf32> to vector<8xf32>
    %267 = vector.shape_cast %266 : vector<8xf32> to vector<8x1xf32>
    %cst_113 = arith.constant 3.200000e+01 : f32
    %268 = vector.broadcast %cst_113 : f32 to vector<8x1xf32>
    %269 = arith.divf %267, %268 : vector<8x1xf32>
    %cst_114 = arith.constant 9.99999974E-6 : f32
    %270 = vector.broadcast %cst_114 : f32 to vector<8x1xf32>
    %271 = arith.addf %269, %270 : vector<8x1xf32>
    %272 = math.rsqrt %271 : vector<8x1xf32>
    %273 = vector.broadcast %272 : vector<8x1xf32> to vector<8x32xf32>
    %274 = arith.mulf %264, %273 : vector<8x32xf32>
    %275 = vector.broadcast %256 : vector<1x32xf32> to vector<8x32xf32>
    %276 = arith.mulf %274, %275 : vector<8x32xf32>
    %277 = vector.broadcast %258 : vector<1x32xf32> to vector<8x32xf32>
    %278 = arith.addf %276, %277 : vector<8x32xf32>
    %c0_115 = arith.constant 0 : index
    %c0_116 = arith.constant 0 : index
    %c0_117 = arith.constant 0 : index
    %279 = vector.load %arg24[%c0_115, %c0_116, %c0_117] : memref<1x32x64xbf16, #tpu.memory_space<vmem>>, vector<1x32x64xbf16>
    %280 = vector.shape_cast %279 : vector<1x32x64xbf16> to vector<32x64xbf16>
    %c0_118 = arith.constant 0 : index
    %c0_119 = arith.constant 0 : index
    %c0_120 = arith.constant 0 : index
    %281 = vector.load %arg25[%c0_118, %c0_119, %c0_120] : memref<1x1x64xf32, #tpu.memory_space<vmem>>, vector<1x1x64xf32>
    %282 = vector.shape_cast %281 : vector<1x1x64xf32> to vector<1x64xf32>
    %c0_121 = arith.constant 0 : index
    %c0_122 = arith.constant 0 : index
    %c0_123 = arith.constant 0 : index
    %283 = vector.load %arg26[%c0_121, %c0_122, %c0_123] : memref<1x64x32xbf16, #tpu.memory_space<vmem>>, vector<1x64x32xbf16>
    %284 = vector.shape_cast %283 : vector<1x64x32xbf16> to vector<64x32xbf16>
    %c0_124 = arith.constant 0 : index
    %c0_125 = arith.constant 0 : index
    %c0_126 = arith.constant 0 : index
    %285 = vector.load %arg27[%c0_124, %c0_125, %c0_126] : memref<1x1x32xf32, #tpu.memory_space<vmem>>, vector<1x1x32xf32>
    %286 = vector.shape_cast %285 : vector<1x1x32xf32> to vector<1x32xf32>
    %287 = arith.truncf %278 : vector<8x32xf32> to vector<8x32xbf16>
    %cst_127 = arith.constant dense<0.000000e+00> : vector<8x64xf32>
    %288 = tpu.matmul %287, %280, %cst_127 {dimension_numbers = #tpu.dot_dimension_numbers<[1], [0], [0], [1], [0, 0, 1, 1], [], []>} : vector<8x32xbf16>, vector<32x64xbf16>, vector<8x64xf32> -> vector<8x64xf32>
    %289 = vector.broadcast %282 : vector<1x64xf32> to vector<8x64xf32>
    %290 = arith.addf %288, %289 : vector<8x64xf32>
    %cst_128 = arith.constant 0.000000e+00 : f32
    %291 = vector.broadcast %cst_128 : f32 to vector<8x64xf32>
    %292 = arith.maximumf %290, %291 : vector<8x64xf32>
    %293 = arith.truncf %292 : vector<8x64xf32> to vector<8x64xbf16>
    %cst_129 = arith.constant dense<0.000000e+00> : vector<8x32xf32>
    %294 = tpu.matmul %293, %284, %cst_129 {dimension_numbers = #tpu.dot_dimension_numbers<[1], [0], [0], [1], [0, 0, 1, 1], [], []>} : vector<8x64xbf16>, vector<64x32xbf16>, vector<8x32xf32> -> vector<8x32xf32>
    %295 = vector.broadcast %286 : vector<1x32xf32> to vector<8x32xf32>
    %296 = arith.addf %294, %295 : vector<8x32xf32>
    %297 = arith.addf %278, %296 : vector<8x32xf32>
    %c0_130 = arith.constant 0 : index
    %c0_131 = arith.constant 0 : index
    %c0_132 = arith.constant 0 : index
    %298 = vector.load %arg28[%c0_130, %c0_131, %c0_132] : memref<1x1x32xf32, #tpu.memory_space<vmem>>, vector<1x1x32xf32>
    %299 = vector.shape_cast %298 : vector<1x1x32xf32> to vector<1x32xf32>
    %c0_133 = arith.constant 0 : index
    %c0_134 = arith.constant 0 : index
    %c0_135 = arith.constant 0 : index
    %300 = vector.load %arg29[%c0_133, %c0_134, %c0_135] : memref<1x1x32xf32, #tpu.memory_space<vmem>>, vector<1x1x32xf32>
    %301 = vector.shape_cast %300 : vector<1x1x32xf32> to vector<1x32xf32>
    %cst_136 = arith.constant dense<0.000000e+00> : vector<8xf32>
    %302 = vector.multi_reduction <add>, %297, %cst_136 [1] : vector<8x32xf32> to vector<8xf32>
    %303 = vector.shape_cast %302 : vector<8xf32> to vector<8x1xf32>
    %cst_137 = arith.constant 3.200000e+01 : f32
    %304 = vector.broadcast %cst_137 : f32 to vector<8x1xf32>
    %305 = arith.divf %303, %304 : vector<8x1xf32>
    %306 = vector.broadcast %305 : vector<8x1xf32> to vector<8x32xf32>
    %307 = arith.subf %297, %306 : vector<8x32xf32>
    %308 = arith.mulf %307, %307 : vector<8x32xf32>
    %cst_138 = arith.constant dense<0.000000e+00> : vector<8xf32>
    %309 = vector.multi_reduction <add>, %308, %cst_138 [1] : vector<8x32xf32> to vector<8xf32>
    %310 = vector.shape_cast %309 : vector<8xf32> to vector<8x1xf32>
    %cst_139 = arith.constant 3.200000e+01 : f32
    %311 = vector.broadcast %cst_139 : f32 to vector<8x1xf32>
    %312 = arith.divf %310, %311 : vector<8x1xf32>
    %cst_140 = arith.constant 9.99999974E-6 : f32
    %313 = vector.broadcast %cst_140 : f32 to vector<8x1xf32>
    %314 = arith.addf %312, %313 : vector<8x1xf32>
    %315 = math.rsqrt %314 : vector<8x1xf32>
    %316 = vector.broadcast %315 : vector<8x1xf32> to vector<8x32xf32>
    %317 = arith.mulf %307, %316 : vector<8x32xf32>
    %318 = vector.broadcast %299 : vector<1x32xf32> to vector<8x32xf32>
    %319 = arith.mulf %317, %318 : vector<8x32xf32>
    %320 = vector.broadcast %301 : vector<1x32xf32> to vector<8x32xf32>
    %321 = arith.addf %319, %320 : vector<8x32xf32>
    %c0_141 = arith.constant 0 : index
    %c0_142 = arith.constant 0 : index
    %c0_143 = arith.constant 0 : index
    %322 = vector.load %arg31[%c0_141, %c0_142, %c0_143] : memref<1x8x32xf32, #tpu.memory_space<vmem>>, vector<1x8x32xf32>
    %323 = vector.shape_cast %322 : vector<1x8x32xf32> to vector<8x32xf32>
    %324 = vector.shape_cast %321 : vector<8x32xf32> to vector<1x8x32xf32>
    tpu.vector_store %arg31[%c0_141, %c0_142, %c0_143], %324 {strides = array<i32>} : memref<1x8x32xf32, #tpu.memory_space<vmem>>, vector<1x8x32xf32>,
    %c1_i32 = arith.constant 1 : i32
    %325 = arith.cmpi eq, %arg1, %c1_i32 : i32
    %326 = arith.extui %325 : i1 to i32
    %c0_i32_144 = arith.constant 0 : i32
    %327 = arith.cmpi ne, %326, %c0_i32_144 : i32
    scf.if %327 {
      %c0_145 = arith.constant 0 : index
      %c0_146 = arith.constant 0 : index
      %c0_147 = arith.constant 0 : index
      %328 = vector.load %arg30[%c0_145, %c0_146, %c0_147] : memref<1x8x32xf32, #tpu.memory_space<vmem>>, vector<1x8x32xf32>
      %329 = vector.shape_cast %328 : vector<1x8x32xf32> to vector<8x32xf32>
      %330 = vector.shape_cast %321 : vector<8x32xf32> to vector<1x8x32xf32>
      tpu.vector_store %arg30[%c0_145, %c0_146, %c0_147], %330 {strides = array<i32>} : memref<1x8x32xf32, #tpu.memory_space<vmem>>, vector<1x8x32xf32>,
    } else {
    }
    return
  }
  func.func @transform_0(%arg0: i32, %arg1: i32) -> (i32, i32, i32) {
    %c0_i32 = arith.constant 0 : i32
    %c0_i32_0 = arith.constant 0 : i32
    %c0_i32_1 = arith.constant 0 : i32
    return %arg0, %c0_i32, %c0_i32_0 : i32, i32, i32
  }
  func.func @transform_1(%arg0: i32, %arg1: i32) -> (i32, i32, i32) {
    %c0_i32 = arith.constant 0 : i32
    %c0_i32_0 = arith.constant 0 : i32
    %c0_i32_1 = arith.constant 0 : i32
    return %arg0, %c0_i32, %c0_i32_0 : i32, i32, i32
  }
  func.func @transform_2(%arg0: i32, %arg1: i32) -> (i32, i32, i32) {
    %c0_i32 = arith.constant 0 : i32
    %c0_i32_0 = arith.constant 0 : i32
    %c0_i32_1 = arith.constant 0 : i32
    %c0_i32_2 = arith.constant 0 : i32
    return %c0_i32, %c0_i32_0, %c0_i32_1 : i32, i32, i32
  }
  func.func @transform_3(%arg0: i32, %arg1: i32) -> (i32, i32, i32) {
    %c0_i32 = arith.constant 0 : i32
    %c0_i32_0 = arith.constant 0 : i32
    %c0_i32_1 = arith.constant 0 : i32
    return %arg0, %c0_i32, %c0_i32_0 : i32, i32, i32
  }
  func.func @transform_4(%arg0: i32, %arg1: i32) -> (i32, i32) {
    %c0_i32 = arith.constant 0 : i32
    %c0_i32_0 = arith.constant 0 : i32
    %c0_i32_1 = arith.constant 0 : i32
    return %c0_i32, %c0_i32_0 : i32, i32
  }
  func.func @transform_5(%arg0: i32, %arg1: i32) -> (i32, i32) {
    %c0_i32 = arith.constant 0 : i32
    %c0_i32_0 = arith.constant 0 : i32
    %c0_i32_1 = arith.constant 0 : i32
    return %c0_i32, %c0_i32_0 : i32, i32
  }
  func.func @transform_6(%arg0: i32, %arg1: i32) -> (i32, i32, i32) {
    %c0_i32 = arith.constant 0 : i32
    %c0_i32_0 = arith.constant 0 : i32
    %c0_i32_1 = arith.constant 0 : i32
    return %arg1, %c0_i32, %c0_i32_0 : i32, i32, i32
  }
  func.func @transform_7(%arg0: i32, %arg1: i32) -> (i32, i32, i32) {
    %c0_i32 = arith.constant 0 : i32
    %c0_i32_0 = arith.constant 0 : i32
    %c0_i32_1 = arith.constant 0 : i32
    return %arg1, %c0_i32, %c0_i32_0 : i32, i32, i32
  }
  func.func @transform_8(%arg0: i32, %arg1: i32) -> (i32, i32, i32) {
    %c0_i32 = arith.constant 0 : i32
    %c0_i32_0 = arith.constant 0 : i32
    %c0_i32_1 = arith.constant 0 : i32
    return %arg1, %c0_i32, %c0_i32_0 : i32, i32, i32
  }
  func.func @transform_9(%arg0: i32, %arg1: i32) -> (i32, i32, i32) {
    %c0_i32 = arith.constant 0 : i32
    %c0_i32_0 = arith.constant 0 : i32
    %c0_i32_1 = arith.constant 0 : i32
    return %arg1, %c0_i32, %c0_i32_0 : i32, i32, i32
  }
  func.func @transform_10(%arg0: i32, %arg1: i32) -> (i32, i32, i32) {
    %c0_i32 = arith.constant 0 : i32
    %c0_i32_0 = arith.constant 0 : i32
    %c0_i32_1 = arith.constant 0 : i32
    return %arg1, %c0_i32, %c0_i32_0 : i32, i32, i32
  }
  func.func @transform_11(%arg0: i32, %arg1: i32) -> (i32, i32, i32) {
    %c0_i32 = arith.constant 0 : i32
    %c0_i32_0 = arith.constant 0 : i32
    %c0_i32_1 = arith.constant 0 : i32
    return %arg1, %c0_i32, %c0_i32_0 : i32, i32, i32
  }
  func.func @transform_12(%arg0: i32, %arg1: i32) -> (i32, i32, i32) {
    %c0_i32 = arith.constant 0 : i32
    %c0_i32_0 = arith.constant 0 : i32
    %c0_i32_1 = arith.constant 0 : i32
    return %arg1, %c0_i32, %c0_i32_0 : i32, i32, i32
  }
  func.func @transform_13(%arg0: i32, %arg1: i32) -> (i32, i32, i32) {
    %c0_i32 = arith.constant 0 : i32
    %c0_i32_0 = arith.constant 0 : i32
    %c0_i32_1 = arith.constant 0 : i32
    return %arg1, %c0_i32, %c0_i32_0 : i32, i32, i32
  }
  func.func @transform_14(%arg0: i32, %arg1: i32) -> (i32, i32, i32) {
    %c0_i32 = arith.constant 0 : i32
    %c0_i32_0 = arith.constant 0 : i32
    %c0_i32_1 = arith.constant 0 : i32
    return %arg1, %c0_i32, %c0_i32_0 : i32, i32, i32
  }
  func.func @transform_15(%arg0: i32, %arg1: i32) -> (i32, i32, i32) {
    %c0_i32 = arith.constant 0 : i32
    %c0_i32_0 = arith.constant 0 : i32
    %c0_i32_1 = arith.constant 0 : i32
    return %arg1, %c0_i32, %c0_i32_0 : i32, i32, i32
  }
  func.func @transform_16(%arg0: i32, %arg1: i32) -> (i32, i32, i32) {
    %c0_i32 = arith.constant 0 : i32
    %c0_i32_0 = arith.constant 0 : i32
    %c0_i32_1 = arith.constant 0 : i32
    return %arg1, %c0_i32, %c0_i32_0 : i32, i32, i32
  }
  func.func @transform_17(%arg0: i32, %arg1: i32) -> (i32, i32, i32) {
    %c0_i32 = arith.constant 0 : i32
    %c0_i32_0 = arith.constant 0 : i32
    %c0_i32_1 = arith.constant 0 : i32
    return %arg1, %c0_i32, %c0_i32_0 : i32, i32, i32
  }
  func.func @transform_18(%arg0: i32, %arg1: i32) -> (i32, i32, i32) {
    %c0_i32 = arith.constant 0 : i32
    %c0_i32_0 = arith.constant 0 : i32
    %c0_i32_1 = arith.constant 0 : i32
    return %arg1, %c0_i32, %c0_i32_0 : i32, i32, i32
  }
  func.func @transform_19(%arg0: i32, %arg1: i32) -> (i32, i32, i32) {
    %c0_i32 = arith.constant 0 : i32
    %c0_i32_0 = arith.constant 0 : i32
    %c0_i32_1 = arith.constant 0 : i32
    return %arg1, %c0_i32, %c0_i32_0 : i32, i32, i32
  }
  func.func @transform_20(%arg0: i32, %arg1: i32) -> (i32, i32, i32) {
    %c0_i32 = arith.constant 0 : i32
    %c0_i32_0 = arith.constant 0 : i32
    %c0_i32_1 = arith.constant 0 : i32
    return %arg1, %c0_i32, %c0_i32_0 : i32, i32, i32
  }
  func.func @transform_21(%arg0: i32, %arg1: i32) -> (i32, i32, i32) {
    %c0_i32 = arith.constant 0 : i32
    %c0_i32_0 = arith.constant 0 : i32
    %c0_i32_1 = arith.constant 0 : i32
    return %arg1, %c0_i32, %c0_i32_0 : i32, i32, i32
  }
  func.func @transform_22(%arg0: i32, %arg1: i32) -> (i32, i32, i32) {
    %c0_i32 = arith.constant 0 : i32
    %c0_i32_0 = arith.constant 0 : i32
    %c0_i32_1 = arith.constant 0 : i32
    return %arg1, %c0_i32, %c0_i32_0 : i32, i32, i32
  }
  func.func @transform_23(%arg0: i32, %arg1: i32) -> (i32, i32, i32) {
    %c0_i32 = arith.constant 0 : i32
    %c0_i32_0 = arith.constant 0 : i32
    %c0_i32_1 = arith.constant 0 : i32
    return %arg1, %c0_i32, %c0_i32_0 : i32, i32, i32
  }
  func.func @transform_24(%arg0: i32, %arg1: i32) -> (i32, i32, i32) {
    %c0_i32 = arith.constant 0 : i32
    %c0_i32_0 = arith.constant 0 : i32
    %c0_i32_1 = arith.constant 0 : i32
    return %arg1, %c0_i32, %c0_i32_0 : i32, i32, i32
  }
  func.func @transform_25(%arg0: i32, %arg1: i32) -> (i32, i32, i32) {
    %c0_i32 = arith.constant 0 : i32
    %c0_i32_0 = arith.constant 0 : i32
    %c0_i32_1 = arith.constant 0 : i32
    return %arg1, %c0_i32, %c0_i32_0 : i32, i32, i32
  }
  func.func @transform_26(%arg0: i32, %arg1: i32) -> (i32, i32, i32) {
    %c0_i32 = arith.constant 0 : i32
    %c0_i32_0 = arith.constant 0 : i32
    %c0_i32_1 = arith.constant 0 : i32
    return %arg1, %c0_i32, %c0_i32_0 : i32, i32, i32
  }
  func.func @transform_27(%arg0: i32, %arg1: i32) -> (i32, i32, i32) {
    %c0_i32 = arith.constant 0 : i32
    %c0_i32_0 = arith.constant 0 : i32
    %c0_i32_1 = arith.constant 0 : i32
    return %arg1, %c0_i32, %c0_i32_0 : i32, i32, i32
  }
  func.func @transform_28(%arg0: i32, %arg1: i32) -> (i32, i32, i32) {
    %c0_i32 = arith.constant 0 : i32
    %c0_i32_0 = arith.constant 0 : i32
    %c0_i32_1 = arith.constant 0 : i32
    return %arg0, %c0_i32, %c0_i32_0 : i32, i32, i32
  }
}

module attributes {stable_mosaic.version = 11 : i64} {
  func.func @_head_ce_kernel(%arg0: memref<14x32xf32, #tpu.memory_space<vmem>>, %arg1: memref<32x32xbf16, #tpu.memory_space<vmem>>, %arg2: memref<1x32xf32, #tpu.memory_space<vmem>>, %arg3: memref<32x64xbf16, #tpu.memory_space<vmem>>, %arg4: memref<14x1xi32, #tpu.memory_space<vmem>>, %arg5: memref<14x1xf32, #tpu.memory_space<vmem>>, %arg6: memref<1x1xf32, #tpu.memory_space<vmem>>, %arg7: memref<1x1xf32, #tpu.memory_space<vmem>>) attributes {dimension_semantics = [], scalar_prefetch = 0 : i64, scratch_operands = 0 : i64, tpu.core_type = #tpu.core_type<tc>} {
    %c0 = arith.constant 0 : index
    %c0_0 = arith.constant 0 : index
    %0 = vector.load %arg0[%c0, %c0_0] : memref<14x32xf32, #tpu.memory_space<vmem>>, vector<14x32xf32>
    %1 = arith.truncf %0 : vector<14x32xf32> to vector<14x32xbf16>
    %c0_1 = arith.constant 0 : index
    %c0_2 = arith.constant 0 : index
    %2 = vector.load %arg1[%c0_1, %c0_2] : memref<32x32xbf16, #tpu.memory_space<vmem>>, vector<32x32xbf16>
    %cst = arith.constant dense<0.000000e+00> : vector<14x32xf32>
    %3 = tpu.matmul %1, %2, %cst {dimension_numbers = #tpu.dot_dimension_numbers<[1], [0], [0], [1], [0, 0, 1, 1], [], []>} : vector<14x32xbf16>, vector<32x32xbf16>, vector<14x32xf32> -> vector<14x32xf32>
    %c0_3 = arith.constant 0 : index
    %c0_4 = arith.constant 0 : index
    %4 = vector.load %arg2[%c0_3, %c0_4] : memref<1x32xf32, #tpu.memory_space<vmem>>, vector<1x32xf32>
    %5 = vector.broadcast %4 : vector<1x32xf32> to vector<14x32xf32>
    %6 = arith.addf %3, %5 : vector<14x32xf32>
    %7 = math.tanh %6 : vector<14x32xf32>
    %8 = arith.truncf %7 : vector<14x32xf32> to vector<14x32xbf16>
    %c0_5 = arith.constant 0 : index
    %c0_6 = arith.constant 0 : index
    %9 = vector.load %arg3[%c0_5, %c0_6] : memref<32x64xbf16, #tpu.memory_space<vmem>>, vector<32x64xbf16>
    %cst_7 = arith.constant dense<0.000000e+00> : vector<14x64xf32>
    %10 = tpu.matmul %8, %9, %cst_7 {dimension_numbers = #tpu.dot_dimension_numbers<[1], [0], [0], [1], [0, 0, 1, 1], [], []>} : vector<14x32xbf16>, vector<32x64xbf16>, vector<14x64xf32> -> vector<14x64xf32>
    %c0_8 = arith.constant 0 : index
    %c0_9 = arith.constant 0 : index
    %11 = vector.load %arg4[%c0_8, %c0_9] : memref<14x1xi32, #tpu.memory_space<vmem>>, vector<14x1xi32>
    %c0_10 = arith.constant 0 : index
    %c0_11 = arith.constant 0 : index
    %12 = vector.load %arg5[%c0_10, %c0_11] : memref<14x1xf32, #tpu.memory_space<vmem>>, vector<14x1xf32>
    %c-1_i32 = arith.constant -1 : i32
    %13 = vector.broadcast %c-1_i32 : i32 to vector<14x1xi32>
    %14 = arith.cmpi ne, %11, %13 : vector<14x1xi32>
    %15 = arith.extui %14 : vector<14x1xi1> to vector<14x1xi32>
    %16 = arith.sitofp %15 : vector<14x1xi32> to vector<14x1xf32>
    %17 = arith.mulf %12, %16 : vector<14x1xf32>
    %cst_12 = arith.constant dense<0xFF800000> : vector<14xf32>
    %18 = vector.multi_reduction <maximumf>, %10, %cst_12 [1] : vector<14x64xf32> to vector<14xf32>
    %19 = vector.shape_cast %18 : vector<14xf32> to vector<14x1xf32>
    %20 = vector.broadcast %19 : vector<14x1xf32> to vector<14x64xf32>
    %21 = arith.subf %10, %20 : vector<14x64xf32>
    %22 = math.exp %21 : vector<14x64xf32>
    %cst_13 = arith.constant dense<0.000000e+00> : vector<14xf32>
    %23 = vector.multi_reduction <add>, %22, %cst_13 [1] : vector<14x64xf32> to vector<14xf32>
    %24 = vector.shape_cast %23 : vector<14xf32> to vector<14x1xf32>
    %25 = math.log %24 : vector<14x1xf32>
    %26 = arith.addf %25, %19 : vector<14x1xf32>
    %27 = tpu.iota {dimensions = array<i32: 1>} : vector<14x64xi32>
    %28 = vector.broadcast %11 : vector<14x1xi32> to vector<14x64xi32>
    %29 = arith.cmpi eq, %27, %28 : vector<14x64xi32>
    %30 = arith.extui %29 : vector<14x64xi1> to vector<14x64xi32>
    %31 = arith.sitofp %30 : vector<14x64xi32> to vector<14x64xf32>
    %32 = arith.mulf %31, %10 : vector<14x64xf32>
    %cst_14 = arith.constant dense<0.000000e+00> : vector<14xf32>
    %33 = vector.multi_reduction <add>, %32, %cst_14 [1] : vector<14x64xf32> to vector<14xf32>
    %34 = vector.shape_cast %33 : vector<14xf32> to vector<14x1xf32>
    %35 = arith.subf %26, %34 : vector<14x1xf32>
    %36 = arith.mulf %35, %17 : vector<14x1xf32>
    %37 = vector.shape_cast %36 : vector<14x1xf32> to vector<1x14x1xf32>
    %cst_15 = arith.constant dense<0.000000e+00> : vector<1xf32>
    %38 = vector.multi_reduction <add>, %37, %cst_15 [1, 2] : vector<1x14x1xf32> to vector<1xf32>
    %39 = vector.shape_cast %38 : vector<1xf32> to vector<1x1x1xf32>
    %40 = vector.extract %39[0, 0, 0] : f32 from vector<1x1x1xf32>
    %41 = vector.broadcast %40 : f32 to vector<1x1xf32>
    %c0_16 = arith.constant 0 : index
    %c0_17 = arith.constant 0 : index
    %42 = vector.load %arg6[%c0_16, %c0_17] : memref<1x1xf32, #tpu.memory_space<vmem>>, vector<1x1xf32>
    tpu.vector_store %arg6[%c0_16, %c0_17], %41 {strides = array<i32>} : memref<1x1xf32, #tpu.memory_space<vmem>>, vector<1x1xf32>,
    %43 = vector.shape_cast %17 : vector<14x1xf32> to vector<1x14x1xf32>
    %cst_18 = arith.constant dense<0.000000e+00> : vector<1xf32>
    %44 = vector.multi_reduction <add>, %43, %cst_18 [1, 2] : vector<1x14x1xf32> to vector<1xf32>
    %45 = vector.shape_cast %44 : vector<1xf32> to vector<1x1x1xf32>
    %46 = vector.extract %45[0, 0, 0] : f32 from vector<1x1x1xf32>
    %47 = vector.broadcast %46 : f32 to vector<1x1xf32>
    %c0_19 = arith.constant 0 : index
    %c0_20 = arith.constant 0 : index
    %48 = vector.load %arg7[%c0_19, %c0_20] : memref<1x1xf32, #tpu.memory_space<vmem>>, vector<1x1xf32>
    tpu.vector_store %arg7[%c0_19, %c0_20], %47 {strides = array<i32>} : memref<1x1xf32, #tpu.memory_space<vmem>>, vector<1x1xf32>,
    return
  }
}

</mosaic_0001>

<bundles_post_ra>
// kernel: text2text_forward.5
= control target key start
LH: loop header
LB: loop body
LE: loop exit
PB: predicated region body
PF: predicated region fallthrough
CT: control target
= control target key end

     0   :  { %s1404_s27 = smov 0   ;;  %s1549_s0 = inlined_call_operand.vmem [shape: f32[2,8,32], index: 0, kind: input, shape index: {}]   ;;  %s1550_s1 = inlined_call_operand.vmem [shape: f32[2,6,32], index: 1, kind: input, shape index: {}]   ;;  %s1551_s2 = inlined_call_operand.vmem [shape: bf16[32,32], index: 2, kind: input, shape index: {}]   ;;  %s1552_s3 = inlined_call_operand.vmem [shape: f32[1,32], index: 3, kind: input, shape index: {}]   ;;  %s1553_s4 = inlined_call_operand.vmem [shape: bf16[32,64], index: 4, kind: input, shape index: {}]   ;;  %s1554_s5 = inlined_call_operand.vmem [shape: f32[1,64], index: 5, kind: input, shape index: {}]   ;;  %s1555_s6 = inlined_call_operand.vmem [shape: bf16[32,32], index: 6, kind: input, shape index: {}]   ;;  %s1556_s7 = inlined_call_operand.vmem [shape: f32[1,32], index: 7, kind: input, shape index: {}]   ;;  %s1557_s8 = inlined_call_operand.vmem [shape: f32[2,8,32], index: 8, kind: output, shape index: {}]  }
   0x1 LB: > { %s1170_s28 = sadd.s32 4294967295, %s1345_s27   ;;  %p1174_p0 = scmp.ge.s32.totalorder %s1345_s27, 1  ;;  %s1345_s27 = sphi %s1404_s27, %s18_s27  }
   0x2   : > { %p270_p1 = scmp.lt.s32.totalorder %s1345_s27, 3 }
   0x4   : > { %p271_p2 = pnand %p1174_p0, %p270_p1 }
   0x5   : > { %p306_p3 = scmp.lt.s32.totalorder (!%p271_p2), %s1170_s28, 1  ;;  %s1349_s26 = smov (!%p271_p2), 120  }
   0x6   : > { %274 = sbr.rel (%p271_p2) target bundleno = 1871 (0x74f), region = 52  ;;  %s1351_s29 = smov (!%p271_p2), 88  }
   0x7   : > { %s1352_s30 = smov (!%p271_p2), 112   ;;  %s1353_s9 = smov (!%p271_p2), 104  }
   0x8   : > { %s1354_s10 = smov (!%p271_p2), 72   ;;  %s1355_s11 = smov (!%p271_p2), 80  }
   0x9   : > { %s1356_s12 = smov (!%p271_p2), 8   ;;  %s1358_s19 = smov (!%p271_p2), 24  }
   0xb   : > { %v1317_v0 = vld [vmem:[%s1551_s2 + $0x8] sm:$0xff]   ;;  %v1347_v1 = vmov 0.0   ;;  %v1319_v3 = vld [vmem:[%s1551_s2] sm:$0xff]   ;;  %vm1348_vm0 = vmmov 0   ;;  %s1559_s28 = smov (!%p306_p3, %s1170_s28), 1  ;;  %vm355_vm1 = vcmask 261120  }
   0xc   : > { %1229 = vmatprep.subr.bf16.mxu0 %v1347_v1  ;;  %1237 = vmatprep.subr.bf16.mxu1 %v1347_v1  ;;  %v1318_v2 = vld [vmem:[%s1553_s4 + $0x8] sm:$0xff]   ;;  %v1320_v4 = vld [vmem:[%s1553_s4] sm:$0xff]   ;;  %s1432_s15 = sshll.u32 %s1559_s28, 3  ;;  %vm461_vm2 = vcmask 64512   ;;  %vm540_vm3 = vcmask 48128   ;;  %s1350_s28 = smov 96  }
   0xd   : > { %1230 = vmatpush3.bf16.msra.mxu0 %v1317_v0  ;;  %1233 = vmatprep.mubr.msk.bf16.mxu0 %vm1348_vm0, %v1347_v1  ;;  %s309_s18 = scalar_lea.vmem %s1549_s0, %s1432_s15  ;;  %s313_s21 = scalar_lea.vmem %s1550_s1, %s1432_s15  ;;  %v1182_v9 = vld [vmem:[%s1554_s5] ss:$0 sm:$0xff]  ;;  %vm560_vm4 = vcmask 1042432   ;;  %vm1037_vm5 = vcmask 130048   ;;  %vm1039_vm6 = vcmask 195584  }
   0xe   : > { %1238 = vmatpush3.bf16.msra.mxu1 %v1318_v2  ;;  %1231 = vmatprep.subr.bf16.mxu0 %v1347_v1  ;;  %v1443_v5 = vld [vmem:[%s309_s18] sm:$0xff]  ;;  %s1357_s18 = smov 16   ;;  %s317_s24 = scalar_lea.vmem %s1557_s8, %s1432_s15 }
   0xf   : > { %1239 = vmatprep.subr.bf16.mxu1 %v1347_v1  ;;  %1241 = vmatprep.mubr.msk.bf16.mxu1 %vm1348_vm0, %v1347_v1  ;;  %v320_v6 = vld [vmem:[%s313_s21] sm:$0x3f]  ;;  %v336_v7 = vpack.c.bf16 %v1443_v5, %v1443_v5 }
  0x10   : > { %v399_v8 = vpack.c.bf16 %v320_v6, %v320_v6  ;;  %v1178_v10 = vld [vmem:[%s1552_s3] ss:$0 sm:$0xff] }
  0x11   : > { %1232 = vmatpush3.bf16.msra.mxu0 %v1319_v3 }
  0x12   : > { %1240 = vmatpush3.bf16.msra.mxu1 %v1320_v4  ;;  %1245 = vmatprep.subr.mxu0 %v1347_v1 }
  0x13   : > { %1250 = vmatprep.subr.bf16.mxu1 %v1347_v1 }
  0x14   : > { %1234 = vmatmul.mubr.msk.bf16.vlgmr.msra.gmra.mxu0 %vm355_vm1, %v336_v7 }
  0x15   : > { %1242 = vmatmul.mubr.msk.bf16.vlgmr.msra.gmra.mxu1 %vm355_vm1, %v399_v8  ;;  %1247 = vmatprep.mubr.msk.f32.mxu0 %vm1348_vm0, %v1347_v1 }
  0x16   : > { %1252 = vmatprep.mubr.msk.bf16.mxu1 %vm1348_vm0, %v1347_v1 }
  0xd4   : > { %v393_v11 = vpop.f32.mrf.mxu0 }
  0xd5   : > { %v455_v12 = vpop.f32.mrf.mxu1  ;;  %v1462_v14 = vadd.f32 %v1178_v10, %v393_v11 }
  0xd6   : > { %v1460_v13 = vadd.f32 %v1182_v9, %v455_v12  ;;  %v1235_v15 = vpop.f32.mrf.mxu0 }
  0xd7   : > { %v1243_v16 = vpop.f32.mrf.mxu1 }
  0xd8   : > { %606 = vrot.lane.b32.xlu0 %v1460_v13, %s1349_s26  ;;  %1246 = vmatpush3.xpose.msk.msra.mxu0 %vm461_vm2, %v1460_v13  ;;  %v396_v17 = vpop.f32.mrf.mxu0  ;;  %v1482_v31 = vpack.c.bf16 %v1460_v13, %v1460_v13 }
  0xd9   : > { %v458_v18 = vpop.f32.mrf.mxu1  ;;  %1256 = vmatprep.subr.mxu0 %v1347_v1 }
  0xda   : > { %v1236_v19 = vpop.f32.mrf.mxu0 }
  0xdb   : > { %v1244_v20 = vpop.f32.mrf.mxu1  ;;  %1248 = vmatmul.mubr.msk.f32.vlgmr.msra.gmra.mxu0 %vm461_vm2, %v1462_v14 }
  0xdc   : > { %604 = vrot.lane.b32.xlu0 %v1462_v14, %s1349_s26  ;;  %1258 = vmatprep.mubr.msk.f32.mxu0 %vm1348_vm0, %v1347_v1 }
 0x14a   : > { %v607_v21 = vpop.permute.xlu0 %606 }
 0x14b   : > { %1257 = vmatpush3.xpose.msk.msra.mxu0 %vm461_vm2, %v607_v21 }
 0x14c   : > { %1261 = vmatprep.subr.bf16.mxu0 %v1347_v1 }
 0x14e   : > { %v605_v22 = vpop.permute.xlu0 %604 }
 0x14f   : > { %1259 = vmatmul.mubr.msk.f32.vlgmr.msra.gmra.mxu0 %vm461_vm2, %v605_v22 }
 0x150   : > { %1263 = vmatprep.mubr.msk.bf16.mxu0 %vm1348_vm0, %v1347_v1 }
 0x19b   : > { %v534_v23 = vpop.f32.mrf.mxu0 }
 0x19c   : > { %v538_v24 = vmul.f32 0.35355338, %v534_v23 }
 0x19d   : > { %v1249_v25 = vpop.f32.mrf.mxu0 }
 0x19e   : > { %v541_v26 = vsel %vm540_vm3, %v538_v24, -inf }
 0x19f   : > { %542 = vmax.xlane.f32.xlu1 %v541_v26 }
 0x20f   : > { %v678_v27 = vpop.f32.mrf.mxu0 }
 0x210   : > { %v682_v28 = vmul.f32 0.35355338, %v678_v27 }
 0x211   : > { %v1260_v29 = vpop.f32.mrf.mxu0 }
 0x212   : > { %v684_v30 = vsel %vm540_vm3, %v682_v28, -inf }
 0x213   : > { %685 = vmax.xlane.f32.xlu1 %v684_v30 }
 0x224   : > { %555 = vrot.lane.b32.xlu1 %v1482_v31, %s1350_s28 }
 0x228   : > { %v543_v32 = vpop.xlane.xlu1 %542  ;;  %696 = vrot.lane.b32.xlu1 %v1482_v31, %s1351_s29 }
 0x229   : > { %v544_v33 = vsub.f32 %v538_v24, %v543_v32 }
 0x22b   : > { %v545_v34 = vmul.f32 1.442695, %v544_v33 }
 0x22c   : > { %746 = vrot.lane.b32.xlu1 %v1460_v13, %s1352_s30 }
 0x22d   : > { %1323 = vpow2.f32 %v545_v34  ;;  %v1321_v34 = vld [vmem:[%s1555_s6 + $0x8] sm:$0xff]  }
 0x23a   : > { %v1324_v35 = vpop.eup %1323 }
 0x23b   : > { %v547_v36 = vsel %vm540_vm3, %v1324_v35, 0.0 }
 0x23c   : > { %548 = vadd.xlane.f32.xlu0 %v547_v36 }
 0x252   : > { %744 = vrot.lane.b32.xlu0 %v1462_v14, %s1352_s30 }
 0x29c   : > { %v686_v37 = vpop.xlane.xlu1 %685 }
 0x29d   : > { %v687_v38 = vsub.f32 %v682_v28, %v686_v37 }
 0x29f   : > { %v688_v39 = vmul.f32 1.442695, %v687_v38 }
 0x2a0   : > { %v556_v40 = vpop.permute.xlu1 %555 }
 0x2a1   : > { %1325 = vpow2.f32 %v688_v39  ;;  %v562_v41 = vsel %vm560_vm4, %v556_v40, 0 }
 0x2a2   : > { %1251 = vmatpush3.bf16.msra.mxu1 %v562_v41 }
 0x2a3   : > { %1267 = vmatprep.subr.mxu1 %v1347_v1 }
 0x2a4   : > { %v697_v42 = vpop.permute.xlu1 %696 }
 0x2a5   : > { %v702_v43 = vsel %vm560_vm4, %v697_v42, 0 }
 0x2a6   : > { %1262 = vmatpush3.bf16.msra.mxu0 %v702_v43 }
 0x2a7   : > { %1278 = vmatprep.subr.mxu0 %v1347_v1 }
 0x2a8   : > { %v747_v50 = vpop.permute.xlu1 %746 }
 0x2ae   : > { %v1326_v44 = vpop.eup %1325 }
 0x2af   : > { %v690_v45 = vsel %vm540_vm3, %v1326_v44, 0.0 }
 0x2b0   : > { %691 = vadd.xlane.f32.xlu1 %v690_v45 }
 0x2c1   : > { %886 = vrot.lane.b32.xlu1 %v1460_v13, %s1353_s9 }
 0x2c5   : > { %v549_v46 = vpop.xlane.xlu0 %548  ;;  %884 = vrot.lane.b32.xlu1 %v1462_v14, %s1353_s9 }
 0x2c6   : > { %1327 = vrcp.f32 %v549_v46 }
 0x2c9   : > { %v745_v51 = vpop.permute.xlu0 %744 }
 0x2d3   : > { %v1328_v47 = vpop.eup %1327 }
 0x2d4   : > { %v551_v48 = vmul.f32 %v1328_v47, %v1324_v35  ;;  %v1322_v35 = vld [vmem:[%s1555_s6] sm:$0xff]  }
 0x2d6   : > { %v552_v49 = vpack.c.bf16 %v551_v48, %v551_v48 }
 0x2d8   : > { %1253 = vmatmul.mubr.msk.bf16.vlgmr.msra.gmra.mxu1 %vm540_vm3, %v552_v49 }
 0x2d9   : > { %1268 = vmatpush3.xpose.msk.msra.mxu1 %vm461_vm2, %v747_v50  ;;  %1269 = vmatprep.mubr.msk.f32.mxu1 %vm1348_vm0, %v1347_v1  ;;  %v1198_v50 = vld [vmem:[%s1556_s7] ss:$0 sm:$0xff] }
 0x2da   : > { %1272 = vmatprep.subr.bf16.mxu1 %v1347_v1 }
 0x2e0   : > { %1270 = vmatmul.mubr.msk.f32.vlgmr.msra.gmra.mxu1 %vm461_vm2, %v745_v51 }
 0x2e1   : > { %1274 = vmatprep.mubr.msk.bf16.mxu1 %vm1348_vm0, %v1347_v1 }
 0x339   : > { %v692_v52 = vpop.xlane.xlu1 %691 }
 0x33a   : > { %1329 = vrcp.f32 %v692_v52 }
 0x33d   : > { %v887_v56 = vpop.permute.xlu1 %886 }
 0x341   : > { %v885_v57 = vpop.permute.xlu1 %884 }
 0x347   : > { %v1330_v53 = vpop.eup %1329 }
 0x348   : > { %v694_v54 = vmul.f32 %v1330_v53, %v1326_v44 }
 0x34a   : > { %v695_v55 = vpack.c.bf16 %v694_v54, %v694_v54 }
 0x34c   : > { %1264 = vmatmul.mubr.msk.bf16.vlgmr.msra.gmra.mxu0 %vm540_vm3, %v695_v55 }
 0x34d   : > { %1279 = vmatpush3.xpose.msk.msra.mxu0 %vm461_vm2, %v887_v56  ;;  %1280 = vmatprep.mubr.msk.f32.mxu0 %vm1348_vm0, %v1347_v1 }
 0x34e   : > { %1283 = vmatprep.subr.bf16.mxu0 %v1347_v1 }
 0x354   : > { %1281 = vmatmul.mubr.msk.f32.vlgmr.msra.gmra.mxu0 %vm461_vm2, %v885_v57 }
 0x355   : > { %1285 = vmatprep.mubr.msk.bf16.mxu0 %vm1348_vm0, %v1347_v1 }
 0x398   : > { %v1512_v58 = vpop.f32.mrf.mxu1 }
 0x39a   : > { %v1254_v59 = vpop.f32.mrf.mxu1 }
 0x39c   : > { %v601_v60 = vpop.f32.mrf.mxu1 }
 0x39e   : > { %v1255_v61 = vpop.f32.mrf.mxu1 }
 0x3a0   : > { %v818_v62 = vpop.f32.mrf.mxu1 }
 0x3a1   : > { %v822_v63 = vmul.f32 0.35355338, %v818_v62 }
 0x3a2   : > { %v1271_v0 = vpop.f32.mrf.mxu1 }
 0x3a3   : > { %v824_v2 = vsel %vm540_vm3, %v822_v63, -inf }
 0x3a4   : > { %825 = vmax.xlane.f32.xlu1 %v824_v2 }
 0x40c   : > { %v738_v3 = vpop.f32.mrf.mxu0 }
 0x40e   : > { %v1265_v4 = vpop.f32.mrf.mxu0 }
 0x410   : > { %v741_v6 = vpop.f32.mrf.mxu0 }
 0x412   : > { %v1266_v7 = vpop.f32.mrf.mxu0 }
 0x414   : > { %v958_v8 = vpop.f32.mrf.mxu0 }
 0x415   : > { %v962_v9 = vmul.f32 0.35355338, %v958_v8 }
 0x416   : > { %v1282_v10 = vpop.f32.mrf.mxu0 }
 0x417   : > { %v964_v11 = vsel %vm540_vm3, %v962_v9, -inf }
 0x418   : > { %965 = vmax.xlane.f32.xlu0 %v964_v11 }
 0x42d   : > { %v826_v12 = vpop.xlane.xlu1 %825 }
 0x42e   : > { %v827_v13 = vsub.f32 %v822_v63, %v826_v12  ;;  %976 = vrot.lane.b32.xlu0 %v1482_v31, %s1354_s10 }
 0x430   : > { %v828_v14 = vmul.f32 1.442695, %v827_v13 }
 0x432   : > { %1331 = vpow2.f32 %v828_v14 }
 0x43f   : > { %v1332_v15 = vpop.eup %1331 }
 0x440   : > { %v830_v16 = vsel %vm540_vm3, %v1332_v15, 0.0 }
 0x441   : > { %831 = vadd.xlane.f32.xlu1 %v830_v16 }
 0x4a1   : > { %v966_v17 = vpop.xlane.xlu0 %965 }
 0x4a2   : > { %v967_v18 = vsub.f32 %v962_v9, %v966_v17 }
 0x4a4   : > { %v968_v19 = vmul.f32 1.442695, %v967_v18 }
 0x4a5   : > { %v977_v20 = vpop.permute.xlu0 %976 }
 0x4a6   : > { %1333 = vpow2.f32 %v968_v19  ;;  %v982_v21 = vsel %vm560_vm4, %v977_v20, 0 }
 0x4a7   : > { %1284 = vmatpush3.bf16.msra.mxu0 %v982_v21 }
 0x4b3   : > { %v1334_v22 = vpop.eup %1333 }
 0x4b4   : > { %v970_v23 = vsel %vm540_vm3, %v1334_v22, 0.0 }
 0x4b5   : > { %971 = vadd.xlane.f32.xlu1 %v970_v23 }
 0x4c6   : > { %836 = vrot.lane.b32.xlu1 %v1482_v31, %s1355_s11 }
 0x4ca   : > { %1025 = vrot.lane.b32.xlu1 %v738_v3, %s1356_s12  ;;  %v832_v24 = vpop.xlane.xlu1 %831 }
 0x4cb   : > { %1335 = vrcp.f32 %v832_v24 }
 0x4d8   : > { %v1336_v25 = vpop.eup %1335 }
 0x4d9   : > { %v834_v27 = vmul.f32 %v1336_v25, %v1332_v15 }
 0x4db   : > { %v835_v30 = vpack.c.bf16 %v834_v27, %v834_v27 }
 0x53e   : > { %v972_v26 = vpop.xlane.xlu1 %971 }
 0x53f   : > { %1337 = vrcp.f32 %v972_v26 }
 0x542   : > { %v837_v28 = vpop.permute.xlu1 %836 }
 0x543   : > { %v842_v29 = vsel %vm560_vm4, %v837_v28, 0 }
 0x544   : > { %1273 = vmatpush3.bf16.msra.mxu1 %v842_v29 }
 0x545   : > { %1289 = vmatprep.subr.bf16.mxu1 %v1347_v1 }
 0x546   : > { %v1026_v44 = vpop.permute.xlu1 %1025 }
 0x547   : > { %1275 = vmatmul.mubr.msk.bf16.vlgmr.msra.gmra.mxu1 %vm540_vm3, %v835_v30 }
 0x548   : > { %1293 = vmatprep.mubr.msk.bf16.mxu1 %vm1348_vm0, %v1347_v1  ;;  %1290 = vmatpush3.bf16.msra.mxu1 %v1321_v34 }
 0x549   : > { %1291 = vmatprep.subr.bf16.mxu1 %v1347_v1  ;;  %v1036_v1 = vsel %vm461_vm2, %v1512_v58, %v1026_v44 }
 0x54c   : > { %v1338_v31 = vpop.eup %1337  ;;  %1292 = vmatpush3.bf16.msra.mxu1 %v1322_v35 }
 0x54d   : > { %v974_v32 = vmul.f32 %v1338_v31, %v1334_v22 }
 0x54f   : > { %v975_v33 = vpack.c.bf16 %v974_v32, %v974_v32 }
 0x551   : > { %1286 = vmatmul.mubr.msk.bf16.vlgmr.msra.gmra.mxu0 %vm540_vm3, %v975_v33 }
 0x607   : > { %v878_v36 = vpop.f32.mrf.mxu1 }
 0x608   : > { %1029 = vrot.lane.b32.xlu1 %v878_v36, %s1357_s18 }
 0x609   : > { %v1276_v37 = vpop.f32.mrf.mxu1 }
 0x60b   : > { %v881_v38 = vpop.f32.mrf.mxu1 }
 0x60d   : > { %v1277_v39 = vpop.f32.mrf.mxu1 }
 0x611   : > { %v1018_v40 = vpop.f32.mrf.mxu0 }
 0x612   : > { %1033 = vrot.lane.b32.xlu0 %v1018_v40, %s1358_s19 }
 0x613   : > { %v1287_v41 = vpop.f32.mrf.mxu0 }
 0x615   : > { %v1021_v42 = vpop.f32.mrf.mxu0 }
 0x617   : > { %v1288_v43 = vpop.f32.mrf.mxu0 }
 0x67a   : > { %v1030_v45 = vpop.permute.xlu1 %1029 }
 0x67b   : > { %v1038_v46 = vsel %vm1037_vm5, %v1036_v1, %v1030_v45 }
 0x684   : > { %v1034_v47 = vpop.permute.xlu0 %1033 }
 0x685   : > { %v1040_v48 = vsel %vm1039_vm6, %v1038_v46, %v1034_v47 }
 0x686   : > { %v1041_v49 = vpack.c.bf16 %v1040_v48, %v1040_v48 }
 0x688   : > { %1294 = vmatmul.mubr.msk.bf16.vlgmr.msra.gmra.mxu1 %vm355_vm1, %v1041_v49 }
 0x748   : > { %v1097_v51 = vpop.f32.mrf.mxu1 }
 0x749   : > { %v1098_v52 = vadd.f32 %v1198_v50, %v1097_v51 }
 0x74a   : > { %v1295_v53 = vpop.f32.mrf.mxu1 }
 0x74b   : > { %v1103_v54 = vadd.f32 %v1098_v52, %v1443_v5 }
 0x74c   : > { %v1100_v55 = vpop.f32.mrf.mxu1 }
 0x74d   : > { %1104 = vst.msk [vmem:[%s317_s24] sm:$0xff] %vm355_vm1, %v1103_v54 }
 0x74e   : > { %v1296_v56 = vpop.f32.mrf.mxu1 }
 0x74f PF: > { %s18_s27 = sadd.s32 1, %s1345_s27  }
 0x750   : > { %p15_p4 = scmp.ge.s32.totalorder %s18_s27, 4  }
 0x752   :  { %17 = sbr.rel (!%p15_p4) target bundleno = 1 (0x1), region = 85 }

// kernel: text2text_forward.7
= control target key start
LH: loop header
LB: loop body
LE: loop exit
PB: predicated region body
PF: predicated region fallthrough
CT: control target
= control target key end

     0   :  { %13 = vsyncpa [#allocation3], 0  ;;  %v389_v1 = vmov 0.0   ;;  %vm390_vm0 = vmmov 0   ;;  %s497_s0 = inlined_call_operand.vmem [shape: f32[14,32], index: 0, kind: input, shape index: {}]   ;;  %s498_s1 = inlined_call_operand.vmem [shape: bf16[32,32], index: 1, kind: input, shape index: {}]   ;;  %s499_s2 = inlined_call_operand.vmem [shape: f32[1,32], index: 2, kind: input, shape index: {}]   ;;  %s500_s3 = inlined_call_operand.vmem [shape: bf16[32,64], index: 3, kind: input, shape index: {}]   ;;  %s501_s4 = inlined_call_operand.vmem [shape: s32[14,1], index: 4, kind: input, shape index: {}]   ;;  %s502_s5 = inlined_call_operand.vmem [shape: f32[14,1], index: 5, kind: input, shape index: {}]   ;;  %s503_s6 = inlined_call_operand.hbm [shape: f32[1,1], index: 6, kind: output, shape index: {0}]   ;;  %s504_s7 = inlined_call_operand.hbm [shape: f32[1,1], index: 7, kind: output, shape index: {1}]  }
   0x1   :  { %v329_v0 = vld [vmem:[%s498_s1 + $0x8] sm:$0xff]   ;;  %302 = vmatprep.subr.bf16.mxu0 %v389_v1  ;;  %310 = vmatprep.subr.bf16.mxu1 %v389_v1  ;;  %v330_v2 = vld [vmem:[%s498_s1] sm:$0xff]  }
   0x2   :  { %303 = vmatpush3.bf16.msra.mxu0 %v329_v0  ;;  %306 = vmatprep.mubr.msk.bf16.mxu0 %vm390_vm0, %v389_v1  ;;  %v28_v3 = vld [vmem:[%s497_s0] sm:$0xff]  ;;  %v29_v4 = vld [vmem:[%s497_s0 + $0x8] sm:$0x3f] }
   0x3   :  { %304 = vmatprep.subr.bf16.mxu0 %v389_v1  ;;  %314 = vmatprep.mubr.msk.bf16.mxu1 %vm390_vm0, %v389_v1 }
   0x4   :  { %14 = vsyncpa [#allocation5], 0  ;;  %v30_v5 = vpack.c.bf16 %v29_v4, %v28_v3  ;;  %vm54_vm1 = vcmask 261120   ;;  %v331_v6 = vld [vmem:[%s500_s3 + $0x8] sm:$0xff]   ;;  %v332_v7 = vld [vmem:[%s500_s3] sm:$0xff]   ;;  %v391_v9 = vmov 0   ;;  %v200_v31 = vlaneseq }
   0x5   :  { %311 = vmatpush3.bf16.msra.mxu1 %v331_v6  ;;  %v162_v8 = vld [vmem:[%s501_s4] sm:$0xff]  ;;  %327 = vset.pattern.permute.xlu1 %v391_v9  ;;  %v163_v10 = vld [vmem:[%s501_s4 + $0x8] sm:$0x3f]  ;;  %vm174_vm2 = vcmask 523264   ;;  %vm178_vm3 = vcmask 521216   ;;  %vm226_vm8 = vcmask 7168  }
   0x6   :  { %305 = vmatpush3.bf16.msra.mxu0 %v330_v2  ;;  %312 = vmatprep.subr.bf16.mxu1 %v389_v1  ;;  %v285_v11 = vld [vmem:[%s499_s2] ss:$0 sm:$0xff]  ;;  %v201_v35 = vand.u32 127, %v200_v31  ;;  %vm166_vm6 = vcmp.ne.s32.totalorder %v162_v8, 4294967295  ;;  %vm167_vm7 = vcmp.ne.s32.totalorder %v163_v10, 4294967295  ;;  %vm228_vm9 = vcmask 5120  }
   0x7   :  { %328 = vset.pattern.permute.xlu0 %v391_v9  ;;  %203 = vperm.xlu1 %327, %v162_v8   ;;  %v164_v47 = vld [vmem:[%s502_s5] sm:$0xff]  ;;  %v292_v48 = vsel %vm166_vm6, 1.0, %v389_v1  ;;  %v293_v49 = vsel %vm167_vm7, 1.0, %v389_v1  ;;  %v165_v50 = vld [vmem:[%s502_s5 + $0x8] sm:$0x3f]  ;;  %s392_s5 = smov [#allocation2]  }
   0x8   :  { %v172_v51 = vmul.f32 %v292_v48, %v164_v47  ;;  %v173_v52 = vmul.f32 %v293_v49, %v165_v50  ;;  %s263_s18 = sshll.u32 %s392_s5, 4  ;;  %vm241_vm10 = vcmask 0   ;;  %s393_s20 = smov [#allocation4]   ;;  %s264_s18 = int_to_ptr.vmem [resolvable:$true] %s263_s18 }
   0x9   :  { %307 = vmatmul.mubr.msk.bf16.vlgmr.msra.gmra.mxu0 %vm54_vm1, %v30_v5  ;;  %313 = vmatpush3.bf16.msra.mxu1 %v332_v7  ;;  %s273_s21 = sshll.u32 %s393_s20, 4  ;;  %s345_s22 = scalar_lea.vmem %s264_s18, 16  ;;  %s274_s21 = int_to_ptr.vmem [resolvable:$true] %s273_s21 }
   0xa   :  { %v243_v53 = vsel %vm226_vm8, %v172_v51, 0.0  ;;  %v244_v54 = vsel %vm228_vm9, %v173_v52, 0.0  ;;  %p346_p0 = scmp.ne.s32.totalorder %s264_s18, %s345_s22  ;;  %s349_s23 = scalar_lea.vmem %s264_s18, 32 }
   0xb   :  { %206 = vperm.xlu1 %327, %v163_v10   ;;  %v245_v55 = vadd.f32 %v244_v54, %v243_v53  ;;  %p350_p1 = scmp.lt.s32.totalorder %s264_s18, %s264_s18  ;;  %p351_p2 = scmp.lt.s32.totalorder %s349_s23, %s345_s22 }
   0xd   :  { %p352_p3 = por %p351_p2, %p350_p1 }
   0xf   :  { %p353_p4 = pnand %p352_p3, %p346_p0 }
  0x82   :  { %v204_v34 = vpop.permute.xlu1 %203 }
  0x83   :  { %vm208_vm4 = vcmp.eq.s32.totalorder %v201_v35, %v204_v34 }
  0x84   :  { %v294_v37 = vsel %vm208_vm4, 1.0, %v389_v1 }
  0x86   :  { %v207_v36 = vpop.permute.xlu1 %206 }
  0x87   :  { %vm209_vm5 = vcmp.eq.s32.totalorder %v201_v35, %v207_v36 }
  0x88   :  { %v295_v41 = vsel %vm209_vm5, 1.0, %v389_v1 }
  0xc9   :  { %v92_v12 = vpop.f32.mrf.mxu0 }
  0xca   :  { %v93_v13 = vadd.f32 %v285_v11, %v92_v12 }
  0xcb   :  { %v308_v14 = vpop.f32.mrf.mxu0 }
  0xcc   :  { %333 = vtanh.f32 %v93_v13 }
  0xcd   :  { %v95_v15 = vpop.f32.mrf.mxu0 }
  0xce   :  { %v96_v16 = vadd.f32 %v285_v11, %v95_v15 }
  0xcf   :  { %v309_v17 = vpop.f32.mrf.mxu0 }
  0xd0   :  { %335 = vtanh.f32 %v96_v16 }
  0xd9   :  { %v334_v18 = vpop.eup %333 }
  0xdd   :  { %v336_v19 = vpop.eup %335 }
  0xde   :  { %v101_v20 = vpack.c.bf16 %v336_v19, %v334_v18 }
  0xe0   :  { %315 = vmatmul.mubr.msk.bf16.vlgmr.msra.gmra.mxu1 %vm54_vm1, %v101_v20 }
 0x1a0   :  { %v155_v21 = vpop.f32.mrf.mxu1 }
 0x1a1   :  { %v175_v22 = vsel %vm174_vm2, %v155_v21, -inf  ;;  %v214_v40 = vmul.f32 %v294_v37, %v155_v21 }
 0x1a2   :  { %176 = vmax.xlane.f32.xlu0 %v175_v22  ;;  %v316_v23 = vpop.f32.mrf.mxu1 }
 0x1a3   :  { %v216_v43 = vsel %vm174_vm2, %v214_v40, 0.0 }
 0x1a4   :  { %v158_v24 = vpop.f32.mrf.mxu1 }
 0x1a5   :  { %v179_v25 = vsel %vm178_vm3, %v158_v24, -inf  ;;  %v215_v45 = vmul.f32 %v295_v41, %v158_v24 }
 0x1a6   :  { %180 = vmax.xlane.f32.xlu0 %v179_v25  ;;  %v317_v26 = vpop.f32.mrf.mxu1 }
 0x1a7   :  { %v219_v46 = vsel %vm178_vm3, %v215_v45, 0.0 }
 0x22b   :  { %v177_v27 = vpop.xlane.xlu0 %176 }
 0x22c   :  { %v182_v28 = vsub.f32 %v155_v21, %v177_v27 }
 0x22e   :  { %v184_v29 = vmul.f32 1.442695, %v182_v28 }
 0x22f   :  { %v181_v30 = vpop.xlane.xlu0 %180 }
 0x230   :  { %337 = vpow2.f32 %v184_v29  ;;  %v183_v32 = vsub.f32 %v158_v24, %v181_v30 }
 0x232   :  { %v186_v33 = vmul.f32 1.442695, %v183_v32 }
 0x234   :  { %339 = vpow2.f32 %v186_v33 }
 0x23d   :  { %v338_v38 = vpop.eup %337 }
 0x23e   :  { %v188_v39 = vsel %vm174_vm2, %v338_v38, 0.0 }
 0x23f   :  { %189 = vadd.xlane.f32.xlu0 %v188_v39 }
 0x241   :  { %v340_v42 = vpop.eup %339 }
 0x242   :  { %v191_v44 = vsel %vm178_vm3, %v340_v42, 0.0 }
 0x243   :  { %217 = vadd.xlane.f32.xlu0 %v216_v43  ;;  %192 = vadd.xlane.f32.xlu1 %v191_v44 }
 0x247   :  { %220 = vadd.xlane.f32.xlu0 %v219_v46 }
 0x2c8   :  { %v190_v56 = vpop.xlane.xlu0 %189 }
 0x2c9   :  { %341 = vlog2.f32 %v190_v56 }
 0x2cc   :  { %v193_v57 = vpop.xlane.xlu1 %192  ;;  %v218_v60 = vpop.xlane.xlu0 %217 }
 0x2cd   :  { %343 = vlog2.f32 %v193_v57 }
 0x2d0   :  { %v221_v2 = vpop.xlane.xlu0 %220 }
 0x2d6   :  { %v342_v58 = vpop.eup %341 }
 0x2d7   :  { %v195_v59 = vmul.f32 0.6931472, %v342_v58 }
 0x2d9   :  { %v198_v61 = vadd.f32 %v195_v59, %v177_v27 }
 0x2da   :  { %v344_v62 = vpop.eup %343 }
 0x2db   :  { %v197_v63 = vmul.f32 0.6931472, %v344_v62  ;;  %v222_v0 = vsub.f32 %v198_v61, %v218_v60 }
 0x2dd   :  { %v199_v1 = vadd.f32 %v197_v63, %v181_v30  ;;  %v224_v3 = vmul.f32 %v222_v0, %v172_v51 }
 0x2df   :  { %v223_v4 = vsub.f32 %v199_v1, %v221_v2  ;;  %v227_v6 = vsel %vm226_vm8, %v224_v3, 0.0 }
 0x2e1   :  { %v225_v5 = vmul.f32 %v223_v4, %v173_v52 }
 0x2e3   :  { %v229_v7 = vsel %vm228_vm9, %v225_v5, 0.0 }
 0x2e4   :  { %v230_v8 = vadd.f32 %v229_v7, %v227_v6 }
 0x2e6   :  { %231 = vadd.xlane.f32.xlu0 %v230_v8 }
 0x2ea   :  { %246 = vadd.xlane.f32.xlu0 %v245_v55 }
 0x36f   :  { %v232_v9 = vpop.xlane.xlu0 %231 }
 0x370   :  { %v233_v10 = vrot.slane %v232_v9, 4 }
 0x372   :  { %v234_v11 = vadd.f32 %v233_v10, %v232_v9 }
 0x373   :  { %v247_v12 = vpop.xlane.xlu0 %246 }
 0x374   :  { %v235_v13 = vrot.slane %v234_v11, 2  ;;  %v248_v14 = vrot.slane %v247_v12, 4 }
 0x376   :  { %v249_v15 = vadd.f32 %v248_v14, %v247_v12  ;;  %v236_v16 = vadd.f32 %v235_v13, %v234_v11 }
 0x378   :  { %v250_v17 = vrot.slane %v249_v15, 2  ;;  %v237_v18 = vrot.slane %v236_v16, 1 }
 0x37a   :  { %v251_v19 = vadd.f32 %v250_v17, %v249_v15  ;;  %v238_v20 = vadd.f32 %v237_v18, %v236_v16 }
 0x37c   :  { %318 = vpush %v238_v20  ;;  %v252_v21 = vrot.slane %v251_v19, 1 }
 0x37e   :  { %v253_v22 = vadd.f32 %v252_v21, %v251_v19 }
 0x380   :  { %320 = vpush %v253_v22 }
 0x3ad   :  { %s319_s19 = spop %318 }
 0x3ae   :  { %v240_v23 = vstv %s319_s19 }
 0x3af   :  { %242 = vst.msk [vmem:[#allocation2] sm:$0x1] %vm241_vm10, %v240_v23 }
 0x3b0   :  { %356 = shalt.err (!%p353_p4)
}
 0x3b1   :  { %266 = dma.vmem_to_hbm [thread:$0]  %s264_s18, 16, %s503_s6, [#allocation3]  }
 0x3b2   :  { %s321_s26 = spop %320  ;;  %s365_s27 = scalar_lea.vmem %s274_s21, 16 }
 0x3b3   :  { %v255_v24 = vstv %s321_s26  ;;  %p366_p5 = scmp.ne.s32.totalorder %s274_s21, %s365_s27  ;;  %s369_s28 = scalar_lea.vmem %s274_s21, 32 }
 0x3b4   :  { %256 = vst.msk [vmem:[#allocation4] sm:$0x1] %vm241_vm10, %v255_v24  ;;  %p370_p6 = scmp.lt.s32.totalorder %s274_s21, %s274_s21  ;;  %p371_p7 = scmp.lt.s32.totalorder %s369_s28, %s365_s27 }
 0x3b6   :  { %p372_p8 = por %p371_p7, %p370_p6 }
 0x3b8   :  { %p373_p9 = pnand %p372_p8, %p366_p5 }
 0x3ba   :  { %376 = shalt.err (!%p373_p9)
}
 0x3bb   :  { %276 = dma.vmem_to_hbm [thread:$0]  %s274_s21, 16, %s504_s7, [#allocation5]  }
 0x3bc   :  { %385 = dma.done.wait [#allocation3], 16  }
 0x3bd   :  { %386 = vsyncadd [#allocation3], 4294967280 }
 0x3be   :  { %387 = dma.done.wait [#allocation5], 16  }
 0x3bf   :  { %388 = vsyncadd [#allocation5], 4294967280 }
 0x3c0   :  { %283 = vsyncpa [#allocation3], 1 }
 0x3c1   :  { %284 = vsyncpa [#allocation5], 1 }

// kernel: text2text_forward.4
= control target key start
LH: loop header
LB: loop body
LE: loop exit
PB: predicated region body
PF: predicated region fallthrough
CT: control target
= control target key end

     0   :  { %s2510_s27 = smov 0   ;;  %s2512_s28 = smov 0   ;;  %s2807_s0 = inlined_call_operand.vmem [shape: f32[2,8,32], index: 0, kind: input, shape index: {}]   ;;  %s2808_s1 = inlined_call_operand.vmem [shape: f32[2,1,8], index: 1, kind: input, shape index: {}]   ;;  %s2809_s2 = inlined_call_operand.vmem [shape: f32[1,32], index: 2, kind: input, shape index: {}]   ;;  %s2810_s3 = inlined_call_operand.vmem [shape: f32[1,32], index: 3, kind: input, shape index: {}]   ;;  %s2811_s4 = inlined_call_operand.vmem [shape: bf16[2,32,32], index: 4, kind: input, shape index: {}]   ;;  %s2812_s5 = inlined_call_operand.vmem [shape: f32[2,1,32], index: 5, kind: input, shape index: {}]   ;;  %s2813_s6 = inlined_call_operand.vmem [shape: bf16[2,32,64], index: 6, kind: input, shape index: {}]   ;;  %s2814_s7 = inlined_call_operand.vmem [shape: f32[2,1,64], index: 7, kind: input, shape index: {}]   ;;  %s2815_s8 = inlined_call_operand.vmem [shape: bf16[2,32,32], index: 8, kind: input, shape index: {}]   ;;  %s2816_s9 = inlined_call_operand.vmem [shape: f32[2,1,32], index: 9, kind: input, shape index: {}]   ;;  %s2817_s10 = inlined_call_operand.vmem [shape: f32[2,1,32], index: 10, kind: input, shape index: {}]   ;;  %s2818_s11 = inlined_call_operand.vmem [shape: f32[2,1,32], index: 11, kind: input, shape index: {}]   ;;  %s2819_s12 = inlined_call_operand.vmem [shape: bf16[2,32,64], index: 12, kind: input, shape index: {}]   ;;  %s2820_s13 = inlined_call_operand.vmem [shape: f32[2,1,64], index: 13, kind: input, shape index: {}]   ;;  %s2821_s14 = inlined_call_operand.vmem [shape: bf16[2,64,32], index: 14, kind: input, shape index: {}]   ;;  %s2822_s15 = inlined_call_operand.vmem [shape: f32[2,1,32], index: 15, kind: input, shape index: {}]   ;;  %s2823_s16 = inlined_call_operand.vmem [shape: f32[2,1,32], index: 16, kind: input, shape index: {}]   ;;  %s2824_s17 = inlined_call_operand.vmem [shape: f32[2,1,32], index: 17, kind: input, shape index: {}]   ;;  %s2825_s18 = inlined_call_operand.vmem [shape: f32[2,8,32], index: 18, kind: output, shape index: {}]  }
   0x1   :  { %2831 = sst [smem:[#allocation10_spill]] %s2807_s0  ;;  %s2514_s29 = smov 0  }
   0x2   :  { %2832 = sst [smem:[#allocation11_spill]] %s2808_s1  ;;  %s2516_s30 = smov 0  }
   0x3   :  { %2833 = sst [smem:[#allocation12_spill]] %s2809_s2  ;;  %s2518_s0 = smov 0  }
   0x4   :  { %2834 = sst [smem:[#allocation13_spill]] %s2810_s3 }
   0x5   :  { %2835 = sst [smem:[#allocation14_spill]] %s2811_s4 }
   0x6   :  { %2836 = sst [smem:[#allocation15_spill]] %s2813_s6 }
   0x7   :  { %2837 = sst [smem:[#allocation16_spill]] %s2815_s8 }
   0x8   :  { %2838 = sst [smem:[#allocation17_spill]] %s2817_s10 }
   0x9   :  { %2839 = sst [smem:[#allocation18_spill]] %s2818_s11 }
   0xa   :  { %2840 = sst [smem:[#allocation19_spill]] %s2819_s12 }
   0xb   :  { %2841 = sst [smem:[#allocation20_spill]] %s2820_s13 }
   0xc   :  { %2842 = sst [smem:[#allocation21_spill]] %s2821_s14 }
   0xd   :  { %2843 = sst [smem:[#allocation22_spill]] %s2823_s16 }
   0xe   :  { %2844 = sst [smem:[#allocation23_spill]] %s2824_s17 }
   0xf   :  { %2845 = sst [smem:[#allocation24_spill]] %s2825_s18 }
  0x10 LB: > { %2846 = sst [smem:[#allocation3_spill]] %s2385_s27  ;;  %s37_s19 = sadd.s32 1, %s2393_s29  ;;  %s2401_s0 = sphi %s2518_s0, %s28_s0   ;;  %s2397_s30 = sphi %s2516_s30, %s2888_s30   ;;  %s2393_s29 = sphi %s2514_s29, %s2887_s29   ;;  %s2389_s28 = sphi %s2512_s28, %s2886_s28   ;;  %s2385_s27 = sphi %s2510_s27, %s2885_s27  }
  0x11   : > { %2847 = sst [smem:[#allocation4_spill]] %s2393_s29  ;;  %s40_s1 = sadd.s32 1, %s2397_s30 }
  0x12   : > { %2848 = sst [smem:[#allocation5_spill]] %s2397_s30  ;;  %p38_p0 = scmp.ge.s32.totalorder %s37_s19, 2 }
  0x13   : > { %2849 = sst [smem:[#allocation6_spill]] %s2401_s0  ;;  %p2091_p1 = scmp.ge.s32.totalorder %s2401_s0, 1 }
  0x14   : > { %p653_p2 = scmp.lt.s32.totalorder %s2401_s0, 5  ;;  %s2890_s19 = smov (%p38_p0, %s37_s19), 0 }
  0x15   : > { %2850 = sst [smem:[#allocation7_spill]] %s2890_s19  ;;  %s2892_s1 = smov (!%p38_p0, %s40_s1), %s2397_s30 }
  0x16   : > { %p654_p3 = pnand %p2091_p1, %p653_p2  ;;  %p42_p4 = scmp.ge.s32.totalorder %s2892_s1, 2 }
  0x18   : > { %s2894_s1 = smov (%p42_p4, %s2892_s1), 0  ;;  %657 = sbr.rel (%p654_p3) target bundleno = 3276 (0xccc), region = 92 }
  0x19   : > { %2851 = sst [smem:[#allocation8_spill]] %s2894_s1 }
  0x1d   : > { %p760_p5 = scmp.lt.s32.totalorder %s2389_s28, 1  ;;  %p767_p6 = scmp.lt.s32.totalorder %s2385_s27, 1 }
  0x1e   : > { %s2854_s1 = sld [smem:[#allocation10_spill]] }
  0x1f   : > { %s2896_s28 = smov (!%p760_p5, %s2389_s28), 1  ;;  %s2855_s4 = sld [smem:[#allocation14_spill]] }
  0x20   : > { %2852 = sst [smem:[#allocation9_spill]] %s2896_s28  ;;  %s2092_s21 = sshll.u32 %s2896_s28, 3 }
  0x21   : > { %s2546_s20 = scalar_select %p767_p6, %s2385_s27, 1 }
  0x22   : > { %s2856_s6 = sld [smem:[#allocation15_spill]] }
  0x23   : > { %s2149_s30 = sshll.u32 %s2546_s20, 4  ;;  %s2857_s8 = sld [smem:[#allocation16_spill]] }
  0x24   : > { %s763_s19 = scalar_lea.vmem %s2854_s1, %s2092_s21  ;;  %s2860_s12 = sld [smem:[#allocation19_spill]] }
  0x25   : > { %s2560_s3 = scalar_lea.vmem %s2855_s4, %s2149_s30  ;;  %s812_s4 = scalar_lea.vmem %s2822_s15, %s2546_s20 }
  0x26   : > { %s2862_s17 = sld [smem:[#allocation21_spill]] }
  0x27   : > { %s2865_s1 = sld [smem:[#allocation24_spill]] }
  0x28   : > { %s2569_s22 = scalar_lea.vmem %s2856_s6, %s2149_s30  ;;  %s2863_s6 = sld [smem:[#allocation22_spill]] }
  0x29   : > { %s2578_s24 = scalar_lea.vmem %s2857_s8, %s2149_s30  ;;  %s2153_s8 = sshll.u32 %s2546_s20, 5 }
  0x2a   : > { %s2595_s23 = scalar_lea.vmem %s2860_s12, %s2149_s30  ;;  %s2864_s12 = sld [smem:[#allocation23_spill]] }
  0x2b   : > { %s2866_s29 = sld [smem:[#allocation3_spill]] }
  0x2c   : > { %s2609_s10 = scalar_lea.vmem %s2862_s17, %s2153_s8 }
  0x2d   : > { %s2622_s13 = scalar_lea.vmem %s2865_s1, %s2092_s21 }
  0x2e   : > { %s815_s28 = scalar_lea.vmem %s2863_s6, %s2546_s20 }
  0x30   : > { %s818_s11 = scalar_lea.vmem %s2864_s12, %s2546_s20 }
  0x31   : > { %p2104_p7 = scmp.ne.s32.totalorder %s2866_s29, 0 }
  0x32   : > { %s2867_s12 = sld [smem:[#allocation12_spill]] (!%p2104_p7) }
  0x33   : > { %827 = sbr.rel (%p2104_p7) target bundleno = 366 (0x16e), region = 96  ;;  %s2868_s21 = sld [smem:[#allocation13_spill]] (!%p2104_p7) }
  0x38   : > { %v828_v0 = vld [vmem:[%s763_s19] sm:$0xff]  ;;  %vm831_vm0 = vcmask 261120  }
  0x39   : > { %v832_v1 = vsel %vm831_vm0, %v828_v0, 0.0  ;;  %v2105_v11 = vld [vmem:[%s2867_s12] ss:$0 sm:$0xff] }
  0x3a   : > { %833 = vadd.xlane.f32.xlu0 %v832_v1  ;;  %v2106_v13 = vld [vmem:[%s2868_s21] ss:$0 sm:$0xff] }
  0xc3   : > { %v834_v2 = vpop.xlane.xlu0 %833 }
  0xc4   : > { %v836_v3 = vmul.f32 0.03125, %v834_v2 }
  0xc6   : > { %v837_v4 = vsub.f32 %v828_v0, %v836_v3 }
  0xc8   : > { %v838_v5 = vmul.f32 %v837_v4, %v837_v4 }
  0xca   : > { %v839_v6 = vsel %vm831_vm0, %v838_v5, 0.0 }
  0xcb   : > { %840 = vadd.xlane.f32.xlu0 %v839_v6 }
 0x154   : > { %v841_v7 = vpop.xlane.xlu0 %840 }
 0x155   : > { %v842_v8 = vmul.f32 0.03125, %v841_v7 }
 0x157   : > { %v843_v9 = vadd.f32 1e-12, %v842_v8 }
 0x159   : > { %2327 = vrsqrt.f32 %v843_v9 }
 0x166   : > { %v2328_v10 = vpop.eup %2327 }
 0x167   : > { %v845_v12 = vmul.f32 %v2328_v10, %v837_v4 }
 0x169   : > { %v852_v14 = vmul.f32 %v2105_v11, %v845_v12 }
 0x16b   : > { %v859_v15 = vadd.f32 %v2106_v13, %v852_v14 }
 0x16d   : > { %860 = vst.msk [vmem:[#allocation2] sm:$0xff] %vm831_vm0, %v859_v15 }
 0x16e PF: > { %v2329_v16 = vld [vmem:[%s2560_s3 + $0x8] sm:$0xff]   ;;  %v2403_v17 = vmov 0.0   ;;  %v2331_v19 = vld [vmem:[%s2560_s3] sm:$0xff]   ;;  %vm2404_vm1 = vmmov 0   ;;  %vm897_vm2 = vcmask 261120   ;;  %s2869_s1 = scalar_lea.vmem %s2814_s7, %s2546_s20  ;;  %s2870_s27 = scalar_lea.vmem %s2812_s5, %s2546_s20  ;;  %vm999_vm3 = vcmask 64512  }
 0x16f   : > { %2187 = vmatprep.subr.bf16.mxu0 %v2403_v17  ;;  %2195 = vmatprep.subr.bf16.mxu1 %v2403_v17  ;;  %v2330_v18 = vld [vmem:[%s2569_s22 + $0x8] sm:$0xff]   ;;  %v2332_v20 = vld [vmem:[%s2569_s22] sm:$0xff]   ;;  %s2405_s14 = smov 120   ;;  %s2406_s16 = smov 88   ;;  %vm1103_vm4 = vcmask 1043456   ;;  %vm1580_vm5 = vcmask 130048  }
 0x170   : > { %2188 = vmatpush3.bf16.msra.mxu0 %v2329_v16  ;;  %2191 = vmatprep.mubr.msk.bf16.mxu0 %vm2404_vm1, %v2403_v17  ;;  %v2111_v23 = vld [vmem:[%s2869_s1] ss:$0 sm:$0xff]  ;;  %s2407_s30 = smov 112   ;;  %s2871_s2 = sld [smem:[#allocation9_spill]]  ;;  %vm1582_vm6 = vcmask 195584   ;;  %vm1793_vm7 = vcmask 523264  }
 0x171   : > { %2196 = vmatpush3.bf16.msra.mxu1 %v2330_v18  ;;  %2189 = vmatprep.subr.bf16.mxu0 %v2403_v17  ;;  %v2107_v24 = vld [vmem:[%s2870_s27] ss:$0 sm:$0xff]  ;;  %s2408_s25 = smov 104   ;;  %s2872_s6 = sld [smem:[#allocation11_spill]] }
 0x172   : > { %2197 = vmatprep.subr.bf16.mxu1 %v2403_v17  ;;  %2199 = vmatprep.mubr.msk.bf16.mxu1 %vm2404_vm1, %v2403_v17  ;;  %s2409_s12 = smov 96   ;;  %s2410_s17 = smov 72  }
 0x173   : > { %s2411_s19 = smov 8   ;;  %s2412_s21 = smov 80  }
 0x174   : > { %v2646_v21 = vld [vmem:[#allocation2] sm:$0xff]  ;;  %2190 = vmatpush3.bf16.msra.mxu0 %v2331_v19  ;;  %s2413_s3 = smov 16   ;;  %s2414_s22 = smov 24  }
 0x175   : > { %v878_v22 = vpack.c.bf16 %v2646_v21, %v2646_v21  ;;  %2198 = vmatpush3.bf16.msra.mxu1 %v2332_v20  ;;  %2203 = vmatprep.subr.mxu0 %v2403_v17  ;;  %s2874_s0 = scalar_lea.vmem %s2816_s9, %s2546_s20 }
 0x176   : > { %2208 = vmatprep.subr.bf16.mxu1 %v2403_v17 }
 0x177   : > { %2192 = vmatmul.mubr.msk.bf16.vlgmr.msra.gmra.mxu0 %vm897_vm2, %v878_v22  ;;  %s2873_s8 = scalar_lea.vmem %s2872_s6, %s2871_s2  ;;  %s2879_s6 = sld [smem:[#allocation20_spill]] }
 0x178   : > { %2200 = vmatmul.mubr.msk.bf16.vlgmr.msra.gmra.mxu1 %vm897_vm2, %v878_v22  ;;  %2205 = vmatprep.mubr.msk.f32.mxu0 %vm2404_vm1, %v2403_v17  ;;  %v2117_v41 = vld [vmem:[%s2873_s8] ss:$0 sm:$0xff] }
 0x179   : > { %2210 = vmatprep.mubr.msk.bf16.mxu1 %vm2404_vm1, %v2403_v17 }
 0x17d   : > { %s2880_s8 = scalar_lea.vmem %s2879_s6, %s2546_s20 }
 0x237   : > { %v935_v25 = vpop.f32.mrf.mxu0 }
 0x238   : > { %v993_v26 = vpop.f32.mrf.mxu1  ;;  %v936_v29 = vadd.f32 %v2107_v24, %v935_v25 }
 0x239   : > { %v994_v27 = vadd.f32 %v2111_v23, %v993_v26  ;;  %v2193_v28 = vpop.f32.mrf.mxu0 }
 0x23a   : > { %v2201_v30 = vpop.f32.mrf.mxu1 }
 0x23b   : > { %1149 = vrot.lane.b32.xlu0 %v994_v27, %s2405_s14  ;;  %2204 = vmatpush3.xpose.msk.msra.mxu0 %vm999_vm3, %v994_v27  ;;  %v938_v31 = vpop.f32.mrf.mxu0  ;;  %v2673_v35 = vpack.c.bf16 %v994_v27, %v994_v27 }
 0x23c   : > { %v996_v32 = vpop.f32.mrf.mxu1  ;;  %2214 = vmatprep.subr.mxu0 %v2403_v17 }
 0x23d   : > { %v2194_v33 = vpop.f32.mrf.mxu0 }
 0x23e   : > { %v2202_v34 = vpop.f32.mrf.mxu1  ;;  %2206 = vmatmul.mubr.msk.f32.vlgmr.msra.gmra.mxu0 %vm999_vm3, %v936_v29 }
 0x23f   : > { %1147 = vrot.lane.b32.xlu0 %v936_v29, %s2405_s14  ;;  %2216 = vmatprep.mubr.msk.f32.mxu0 %vm2404_vm1, %v2403_v17  ;;  %s2875_s14 = sld [smem:[#allocation17_spill]] }
 0x243   : > { %1239 = vrot.lane.b32.xlu0 %v2673_v35, %s2406_s16 }
 0x245   : > { %s2876_s16 = scalar_lea.vmem %s2875_s14, %s2546_s20 }
 0x247   : > { %1287 = vrot.lane.b32.xlu0 %v936_v29, %s2407_s30 }
 0x24b   : > { %1429 = vrot.lane.b32.xlu0 %v994_v27, %s2408_s25 }
 0x24f   : > { %1427 = vrot.lane.b32.xlu0 %v936_v29, %s2408_s25 }
 0x2ad   : > { %v1150_v36 = vpop.permute.xlu0 %1149 }
 0x2ae   : > { %2215 = vmatpush3.xpose.msk.msra.mxu0 %vm999_vm3, %v1150_v36 }
 0x2af   : > { %2219 = vmatprep.subr.bf16.mxu0 %v2403_v17 }
 0x2b1   : > { %v1148_v37 = vpop.permute.xlu0 %1147 }
 0x2b2   : > { %2217 = vmatmul.mubr.msk.f32.vlgmr.msra.gmra.mxu0 %vm999_vm3, %v1148_v37 }
 0x2b3   : > { %2221 = vmatprep.mubr.msk.bf16.mxu0 %vm2404_vm1, %v2403_v17 }
 0x2b5   : > { %v1240_v38 = vpop.permute.xlu0 %1239 }
 0x2b6   : > { %v1245_v39 = vsel %vm1103_vm4, %v1240_v38, 0 }
 0x2b7   : > { %2220 = vmatpush3.bf16.msra.mxu0 %v1245_v39 }
 0x2b8   : > { %2225 = vmatprep.subr.mxu0 %v2403_v17 }
 0x2b9   : > { %v1288_v60 = vpop.permute.xlu0 %1287 }
 0x2bd   : > { %v1430_v62 = vpop.permute.xlu0 %1429 }
 0x2c1   : > { %v1428_v63 = vpop.permute.xlu0 %1427 }
 0x2fe   : > { %v1072_v40 = vpop.f32.mrf.mxu0 }
 0x2ff   : > { %v1076_v42 = vmul.f32 0.35355338, %v1072_v40 }
 0x300   : > { %v2207_v43 = vpop.f32.mrf.mxu0 }
 0x301   : > { %v1083_v44 = vadd.f32 %v2117_v41, %v1076_v42 }
 0x303   : > { %v1084_v45 = vsel %vm999_vm3, %v1083_v44, -inf }
 0x304   : > { %1085 = vmax.xlane.f32.xlu0 %v1084_v45 }
 0x372   : > { %v1221_v46 = vpop.f32.mrf.mxu0 }
 0x373   : > { %v1225_v47 = vmul.f32 0.35355338, %v1221_v46 }
 0x374   : > { %v2218_v48 = vpop.f32.mrf.mxu0 }
 0x375   : > { %v1226_v49 = vadd.f32 %v2117_v41, %v1225_v47 }
 0x377   : > { %v1227_v50 = vsel %vm999_vm3, %v1226_v49, -inf }
 0x378   : > { %1228 = vmax.xlane.f32.xlu1 %v1227_v50 }
 0x38d   : > { %v1086_v0 = vpop.xlane.xlu0 %1085 }
 0x38e   : > { %v1087_v1 = vsub.f32 %v1083_v44, %v1086_v0 }
 0x390   : > { %v1088_v3 = vmul.f32 1.442695, %v1087_v1 }
 0x401   : > { %v1229_v51 = vpop.xlane.xlu1 %1228 }
 0x402   : > { %v1230_v52 = vsub.f32 %v1226_v49, %v1229_v51 }
 0x404   : > { %v1231_v53 = vmul.f32 1.442695, %v1230_v52 }
 0x406   : > { %2341 = vpow2.f32 %v1231_v53  ;;  %v2333_v53 = vld [vmem:[%s2578_s24 + $0x8] sm:$0xff]  }
 0x413   : > { %v2342_v54 = vpop.eup %2341 }
 0x414   : > { %v1233_v55 = vsel %vm999_vm3, %v2342_v54, 0.0 }
 0x415   : > { %1234 = vadd.xlane.f32.xlu1 %v1233_v55 }
 0x426   : > { %1289 = vrot.lane.b32.xlu1 %v994_v27, %s2407_s30 }
 0x49e   : > { %v1235_v56 = vpop.xlane.xlu1 %1234 }
 0x49f   : > { %2343 = vrcp.f32 %v1235_v56 }
 0x4a0   : > { %2345 = vpow2.f32 %v1088_v3 }
 0x4a2   : > { %v1290_v61 = vpop.permute.xlu1 %1289 }
 0x4ac   : > { %v2344_v57 = vpop.eup %2343 }
 0x4ad   : > { %v1237_v58 = vmul.f32 %v2344_v57, %v2342_v54  ;;  %v2346_v18 = vpop.eup %2345  ;;  %v2334_v54 = vld [vmem:[%s2578_s24] sm:$0xff]   ;;  %s2883_s24 = sld [smem:[#allocation3_spill]] }
 0x4ae   : > { %v1090_v19 = vsel %vm999_vm3, %v2346_v18, 0.0 }
 0x4af   : > { %v1238_v59 = vpack.c.bf16 %v1237_v58, %v1237_v58 }
 0x4b1   : > { %2222 = vmatmul.mubr.msk.bf16.vlgmr.msra.gmra.mxu0 %vm999_vm3, %v1238_v59 }
 0x4b2   : > { %2226 = vmatpush3.xpose.msk.msra.mxu0 %vm999_vm3, %v1290_v61  ;;  %2227 = vmatprep.mubr.msk.f32.mxu0 %vm2404_vm1, %v2403_v17 }
 0x4b3   : > { %2236 = vmatprep.subr.mxu0 %v2403_v17  ;;  %p2146_p8 = scmp.ne.s32.totalorder %s2883_s24, 1 }
 0x4b9   : > { %2228 = vmatmul.mubr.msk.f32.vlgmr.msra.gmra.mxu0 %vm999_vm3, %v1288_v60 }
 0x4ba   : > { %2237 = vmatpush3.xpose.msk.msra.mxu0 %vm999_vm3, %v1430_v62  ;;  %2238 = vmatprep.mubr.msk.f32.mxu0 %vm2404_vm1, %v2403_v17 }
 0x4bb   : > { %2241 = vmatprep.subr.bf16.mxu0 %v2403_v17 }
 0x4bd   : > { %2239 = vmatmul.mubr.msk.f32.vlgmr.msra.gmra.mxu0 %vm999_vm3, %v1428_v63 }
 0x4be   : > { %2243 = vmatprep.mubr.msk.bf16.mxu0 %vm2404_vm1, %v2403_v17 }
 0x571   : > { %v1281_v2 = vpop.f32.mrf.mxu0 }
 0x573   : > { %v2223_v4 = vpop.f32.mrf.mxu0 }
 0x575   : > { %v1284_v5 = vpop.f32.mrf.mxu0 }
 0x577   : > { %v2224_v6 = vpop.f32.mrf.mxu0 }
 0x578   : > { %v2128_v6 = vld [vmem:[%s2874_s0] ss:$0 sm:$0xff] }
 0x579   : > { %v1361_v7 = vpop.f32.mrf.mxu0 }
 0x57a   : > { %v1365_v8 = vmul.f32 0.35355338, %v1361_v7 }
 0x57b   : > { %v2229_v9 = vpop.f32.mrf.mxu0 }
 0x57c   : > { %v1366_v10 = vadd.f32 %v2117_v41, %v1365_v8 }
 0x57d   : > { %v1501_v11 = vpop.f32.mrf.mxu0 }
 0x57e   : > { %v1505_v12 = vmul.f32 0.35355338, %v1501_v11  ;;  %v1367_v13 = vsel %vm999_vm3, %v1366_v10, -inf }
 0x57f   : > { %1368 = vmax.xlane.f32.xlu1 %v1367_v13  ;;  %v2240_v14 = vpop.f32.mrf.mxu0 }
 0x580   : > { %v1506_v15 = vadd.f32 %v2117_v41, %v1505_v12 }
 0x582   : > { %v1507_v16 = vsel %vm999_vm3, %v1506_v15, -inf }
 0x583   : > { %1508 = vmax.xlane.f32.xlu0 %v1507_v16 }
 0x587   : > { %1091 = vadd.xlane.f32.xlu0 %v1090_v19 }
 0x590   : > { %1098 = vrot.lane.b32.xlu1 %v2673_v35, %s2409_s12 }
 0x608   : > { %v1369_v20 = vpop.xlane.xlu1 %1368 }
 0x609   : > { %v1370_v22 = vsub.f32 %v1366_v10, %v1369_v20  ;;  %v2335_v20 = vld [vmem:[%s2595_s23 + $0x8] sm:$0xff]  }
 0x60b   : > { %v1371_v23 = vmul.f32 1.442695, %v1370_v22  ;;  %v2336_v22 = vld [vmem:[%s2595_s23] sm:$0xff]   ;;  %s2877_s23 = sld [smem:[#allocation18_spill]] }
 0x60c   : > { %v1099_v24 = vpop.permute.xlu1 %1098  ;;  %v1509_v25 = vpop.xlane.xlu0 %1508 }
 0x60d   : > { %2347 = vpow2.f32 %v1371_v23  ;;  %v1105_v26 = vsel %vm1103_vm4, %v1099_v24, 0  ;;  %v1510_v27 = vsub.f32 %v1506_v15, %v1509_v25 }
 0x60e   : > { %2209 = vmatpush3.bf16.msra.mxu1 %v1105_v26  ;;  %v2132_v26 = vld [vmem:[%s2876_s16] ss:$0 sm:$0xff] }
 0x60f   : > { %v1511_v28 = vmul.f32 1.442695, %v1510_v27  ;;  %2230 = vmatprep.subr.bf16.mxu1 %v2403_v17 }
 0x610   : > { %v1092_v29 = vpop.xlane.xlu0 %1091 }
 0x611   : > { %2349 = vpow2.f32 %v1511_v28  ;;  %s2878_s25 = scalar_lea.vmem %s2877_s23, %s2546_s20 }
 0x612   : > { %2351 = vrcp.f32 %v1092_v29  ;;  %v2133_v28 = vld [vmem:[%s2878_s25] ss:$0 sm:$0xff] }
 0x61a   : > { %v2348_v30 = vpop.eup %2347 }
 0x61b   : > { %v1373_v31 = vsel %vm999_vm3, %v2348_v30, 0.0 }
 0x61c   : > { %1374 = vadd.xlane.f32.xlu1 %v1373_v31 }
 0x61e   : > { %v2350_v32 = vpop.eup %2349 }
 0x61f   : > { %v2352_v33 = vpop.eup %2351  ;;  %v1513_v34 = vsel %vm999_vm3, %v2350_v32, 0.0 }
 0x620   : > { %1514 = vadd.xlane.f32.xlu0 %v1513_v34  ;;  %v1094_v36 = vmul.f32 %v2352_v33, %v2346_v18  ;;  %v2338_v33 = vld [vmem:[%s2609_s10 + $0x10] sm:$0xff]   ;;  %v2339_v34 = vld [vmem:[%s2609_s10 + $0x8] sm:$0xff]  }
 0x622   : > { %v1095_v37 = vpack.c.bf16 %v1094_v36, %v1094_v36  ;;  %v2340_v36 = vld [vmem:[%s2609_s10] sm:$0xff]  }
 0x624   : > { %2211 = vmatmul.mubr.msk.bf16.vlgmr.msra.gmra.mxu1 %vm999_vm3, %v1095_v37  ;;  %v2134_v37 = vld [vmem:[%s2880_s8] ss:$0 sm:$0xff] }
 0x625   : > { %2232 = vmatprep.mubr.msk.bf16.mxu1 %vm2404_vm1, %v2403_v17 }
 0x62d   : > { %1519 = vrot.lane.b32.xlu1 %v2673_v35, %s2410_s17 }
 0x631   : > { %1568 = vrot.lane.b32.xlu1 %v1281_v2, %s2411_s19 }
 0x636   : > { %1379 = vrot.lane.b32.xlu0 %v2673_v35, %s2412_s21 }
 0x6a5   : > { %v1375_v38 = vpop.xlane.xlu1 %1374 }
 0x6a6   : > { %2353 = vrcp.f32 %v1375_v38 }
 0x6a9   : > { %v1520_v39 = vpop.permute.xlu1 %1519  ;;  %v1515_v40 = vpop.xlane.xlu0 %1514 }
 0x6aa   : > { %v1525_v41 = vsel %vm1103_vm4, %v1520_v39, 0  ;;  %2355 = vrcp.f32 %v1515_v40 }
 0x6ab   : > { %2242 = vmatpush3.bf16.msra.mxu0 %v1525_v41 }
 0x6ac   : > { %2255 = vmatprep.subr.bf16.mxu0 %v2403_v17 }
 0x6ad   : > { %v1380_v42 = vpop.permute.xlu0 %1379  ;;  %v1569_v63 = vpop.permute.xlu1 %1568 }
 0x6ae   : > { %v1385_v43 = vsel %vm1103_vm4, %v1380_v42, 0 }
 0x6af   : > { %2231 = vmatpush3.bf16.msra.mxu1 %v1385_v43 }
 0x6b0   : > { %2247 = vmatprep.subr.bf16.mxu1 %v2403_v17 }
 0x6b3   : > { %v2354_v44 = vpop.eup %2353 }
 0x6b4   : > { %v1377_v45 = vmul.f32 %v2354_v44, %v2348_v30 }
 0x6b6   : > { %v1378_v35 = vpack.c.bf16 %v1377_v45, %v1377_v45 }
 0x6b7   : > { %v2356_v46 = vpop.eup %2355 }
 0x6b8   : > { %2233 = vmatmul.mubr.msk.bf16.vlgmr.msra.gmra.mxu1 %vm999_vm3, %v1378_v35  ;;  %v1517_v47 = vmul.f32 %v2356_v46, %v2350_v32  ;;  %v2337_v32 = vld [vmem:[%s2609_s10 + $0x18] sm:$0xff]  }
 0x6b9   : > { %2251 = vmatprep.mubr.msk.bf16.mxu1 %vm2404_vm1, %v2403_v17  ;;  %2248 = vmatpush3.bf16.msra.mxu1 %v2333_v53 }
 0x6ba   : > { %v1518_v48 = vpack.c.bf16 %v1517_v47, %v1517_v47  ;;  %2249 = vmatprep.subr.bf16.mxu1 %v2403_v17 }
 0x6bc   : > { %2244 = vmatmul.mubr.msk.bf16.vlgmr.msra.gmra.mxu0 %vm999_vm3, %v1518_v48 }
 0x6bd   : > { %2259 = vmatprep.mubr.msk.bf16.mxu0 %vm2404_vm1, %v2403_v17  ;;  %2250 = vmatpush3.bf16.msra.mxu1 %v2334_v54 }
 0x6be   : > { %2263 = vmatprep.subr.bf16.mxu1 %v2403_v17  ;;  %2256 = vmatpush3.bf16.msra.mxu0 %v2335_v20 }
 0x6bf   : > { %2257 = vmatprep.subr.bf16.mxu0 %v2403_v17 }
 0x6c2   : > { %2258 = vmatpush3.bf16.msra.mxu0 %v2336_v22 }
 0x6e4   : > { %v1141_v49 = vpop.f32.mrf.mxu1 }
 0x6e5   : > { %v1579_v1 = vsel %vm999_vm3, %v1141_v49, %v1569_v63 }
 0x6e6   : > { %v2212_v50 = vpop.f32.mrf.mxu1 }
 0x6e8   : > { %v1144_v51 = vpop.f32.mrf.mxu1 }
 0x6e9   : > { %v2138_v51 = vld [vmem:[%s812_s4] ss:$0 sm:$0xff] }
 0x6ea   : > { %v2213_v52 = vpop.f32.mrf.mxu1 }
 0x778   : > { %v1421_v55 = vpop.f32.mrf.mxu1 }
 0x779   : > { %1572 = vrot.lane.b32.xlu0 %v1421_v55, %s2413_s3 }
 0x77a   : > { %v2234_v56 = vpop.f32.mrf.mxu1 }
 0x77c   : > { %v1424_v57 = vpop.f32.mrf.mxu1  ;;  %v1561_v58 = vpop.f32.mrf.mxu0 }
 0x77d   : > { %1576 = vrot.lane.b32.xlu1 %v1561_v58, %s2414_s22 }
 0x77e   : > { %v2235_v59 = vpop.f32.mrf.mxu1  ;;  %v2245_v60 = vpop.f32.mrf.mxu0 }
 0x780   : > { %v1564_v61 = vpop.f32.mrf.mxu0 }
 0x782   : > { %v2246_v62 = vpop.f32.mrf.mxu0 }
 0x7eb   : > { %v1573_v0 = vpop.permute.xlu0 %1572 }
 0x7ec   : > { %v1581_v2 = vsel %vm1580_vm5, %v1579_v1, %v1573_v0 }
 0x7ef   : > { %v1577_v3 = vpop.permute.xlu1 %1576 }
 0x7f0   : > { %v1583_v4 = vsel %vm1582_vm6, %v1581_v2, %v1577_v3 }
 0x7f1   : > { %v1584_v5 = vpack.c.bf16 %v1583_v4, %v1583_v4  ;;  %v2144_v4 = vld [vmem:[%s815_s28] ss:$0 sm:$0xff] }
 0x7f3   : > { %2252 = vmatmul.mubr.msk.bf16.vlgmr.msra.gmra.mxu1 %vm897_vm2, %v1584_v5 }
 0x7f4   : > { %2271 = vmatprep.mubr.msk.bf16.mxu1 %vm2404_vm1, %v2403_v17  ;;  %2264 = vmatpush3.bf16.msra.mxu1 %v2337_v32 }
 0x7f5   : > { %2265 = vmatprep.subr.bf16.mxu1 %v2403_v17 }
 0x7f8   : > { %2266 = vmatpush3.bf16.msra.mxu1 %v2338_v33 }
 0x7f9   : > { %2267 = vmatprep.subr.bf16.mxu1 %v2403_v17 }
 0x7fc   : > { %2268 = vmatpush3.bf16.msra.mxu1 %v2339_v34 }
 0x7fd   : > { %2269 = vmatprep.subr.bf16.mxu1 %v2403_v17 }
 0x800   : > { %2270 = vmatpush3.bf16.msra.mxu1 %v2340_v36 }
 0x8b3   : > { %v1640_v7 = vpop.f32.mrf.mxu1 }
 0x8b4   : > { %v1641_v8 = vadd.f32 %v2128_v6, %v1640_v7  ;;  %v2145_v6 = vld [vmem:[%s818_s11] ss:$0 sm:$0xff] }
 0x8b5   : > { %v2253_v9 = vpop.f32.mrf.mxu1 }
 0x8b6   : > { %v1646_v10 = vadd.f32 %v1641_v8, %v2646_v21 }
 0x8b7   : > { %v1643_v11 = vpop.f32.mrf.mxu1 }
 0x8b8   : > { %v1649_v12 = vsel %vm897_vm2, %v1646_v10, 0.0 }
 0x8b9   : > { %1650 = vadd.xlane.f32.xlu0 %v1649_v12  ;;  %v2254_v13 = vpop.f32.mrf.mxu1 }
 0x942   : > { %v1651_v14 = vpop.xlane.xlu0 %1650 }
 0x943   : > { %v1653_v15 = vmul.f32 0.03125, %v1651_v14 }
 0x945   : > { %v1654_v16 = vsub.f32 %v1646_v10, %v1653_v15 }
 0x947   : > { %v1655_v18 = vmul.f32 %v1654_v16, %v1654_v16 }
 0x949   : > { %v1656_v19 = vsel %vm897_vm2, %v1655_v18, 0.0 }
 0x94a   : > { %1657 = vadd.xlane.f32.xlu1 %v1656_v19 }
 0x9d3   : > { %v1658_v21 = vpop.xlane.xlu1 %1657 }
 0x9d4   : > { %v1659_v23 = vmul.f32 0.03125, %v1658_v21 }
 0x9d6   : > { %v1660_v24 = vadd.f32 1e-12, %v1659_v23 }
 0x9d8   : > { %2357 = vrsqrt.f32 %v1660_v24 }
 0x9e5   : > { %v2358_v25 = vpop.eup %2357 }
 0x9e6   : > { %v1662_v27 = vmul.f32 %v2358_v25, %v1654_v16 }
 0x9e8   : > { %v1669_v29 = vmul.f32 %v2132_v26, %v1662_v27 }
 0x9ea   : > { %v1676_v30 = vadd.f32 %v2133_v28, %v1669_v29 }
 0x9ec   : > { %v1691_v31 = vpack.c.bf16 %v1676_v30, %v1676_v30 }
 0x9ee   : > { %2260 = vmatmul.mubr.msk.bf16.vlgmr.msra.gmra.mxu0 %vm897_vm2, %v1691_v31 }
 0xaae   : > { %v1747_v38 = vpop.f32.mrf.mxu0 }
 0xaaf   : > { %v1748_v39 = vadd.f32 %v2134_v37, %v1747_v38 }
 0xab0   : > { %v2261_v40 = vpop.f32.mrf.mxu0 }
 0xab1   : > { %v1753_v41 = vmul.f32 %v1748_v39, %v1748_v39 }
 0xab2   : > { %v1750_v42 = vpop.f32.mrf.mxu0 }
 0xab3   : > { %v1754_v43 = vmul.f32 %v1753_v41, %v1748_v39 }
 0xab4   : > { %v2262_v44 = vpop.f32.mrf.mxu0 }
 0xab5   : > { %v1755_v45 = vmul.f32 0.044715, %v1754_v43 }
 0xab7   : > { %v1756_v35 = vadd.f32 %v1755_v45, %v1748_v39 }
 0xab9   : > { %v1757_v46 = vmul.f32 0.7978846, %v1756_v35 }
 0xabb   : > { %2359 = vtanh.f32 %v1757_v46 }
 0xac8   : > { %v2360_v17 = vpop.eup %2359 }
 0xac9   : > { %v1759_v47 = vadd.f32 1.0, %v2360_v17 }
 0xacb   : > { %v1760_v48 = vmul.f32 0.5, %v1759_v47 }
 0xacd   : > { %v1761_v49 = vmul.f32 %v1760_v48, %v1748_v39 }
 0xacf   : > { %v1762_v50 = vpack.c.bf16 %v1761_v49, %v1761_v49 }
 0xad1   : > { %2272 = vmatmul.mubr.msk.bf16.vlgmr.msra.gmra.mxu1 %vm1793_vm7, %v1762_v50 }
 0xb91   : > { %v1831_v52 = vpop.f32.mrf.mxu1 }
 0xb92   : > { %v1832_v53 = vadd.f32 %v2138_v51, %v1831_v52 }
 0xb93   : > { %v2273_v54 = vpop.f32.mrf.mxu1 }
 0xb94   : > { %v1837_v55 = vadd.f32 %v1832_v53, %v1676_v30 }
 0xb95   : > { %v1834_v56 = vpop.f32.mrf.mxu1 }
 0xb96   : > { %v1840_v57 = vsel %vm897_vm2, %v1837_v55, 0.0 }
 0xb97   : > { %1841 = vadd.xlane.f32.xlu0 %v1840_v57  ;;  %v2274_v58 = vpop.f32.mrf.mxu1 }
 0xc20   : > { %v1842_v59 = vpop.xlane.xlu0 %1841 }
 0xc21   : > { %v1843_v60 = vmul.f32 0.03125, %v1842_v59 }
 0xc23   : > { %v1844_v61 = vsub.f32 %v1837_v55, %v1843_v60 }
 0xc25   : > { %v1845_v62 = vmul.f32 %v1844_v61, %v1844_v61 }
 0xc27   : > { %v1846_v63 = vsel %vm897_vm2, %v1845_v62, 0.0 }
 0xc28   : > { %1847 = vadd.xlane.f32.xlu0 %v1846_v63 }
 0xcb1   : > { %v1848_v0 = vpop.xlane.xlu0 %1847 }
 0xcb2   : > { %v1849_v1 = vmul.f32 0.03125, %v1848_v0 }
 0xcb4   : > { %v1850_v2 = vadd.f32 1e-12, %v1849_v1 }
 0xcb6   : > { %2361 = vrsqrt.f32 %v1850_v2 }
 0xcc3   : > { %v2362_v3 = vpop.eup %2361 }
 0xcc4   : > { %v1852_v5 = vmul.f32 %v2362_v3, %v1844_v61 }
 0xcc6   : > { %v1859_v7 = vmul.f32 %v2144_v4, %v1852_v5  ;;  %1871 = sbr.rel (%p2146_p8) target bundleno = 3276 (0xccc), region = 100 }
 0xcc8   : > { %v1866_v8 = vadd.f32 %v2145_v6, %v1859_v7 }
 0xcca   : > { %1867 = vst.msk [vmem:[#allocation2] sm:$0xff] %vm897_vm2, %v1866_v8 }
 0xccb   : > { %1872 = vst.msk [vmem:[%s2622_s13] sm:$0xff] %vm897_vm2, %v1866_v8 }
 0xccc PF: > { %s2884_s1 = sld [smem:[#allocation6_spill]] }
 0xccd   : > { %s2885_s27 = sld [smem:[#allocation4_spill]] }
 0xcce   : > { %s2886_s28 = sld [smem:[#allocation5_spill]] }
 0xccf   : > { %s2887_s29 = sld [smem:[#allocation7_spill]] }
 0xcd0   : > { %s2888_s30 = sld [smem:[#allocation8_spill]] }
 0xcd2   : > { %s28_s0 = sadd.s32 1, %s2884_s1  }
 0xcd3   : > { %p25_p9 = scmp.ge.s32.totalorder %s28_s0, 6  }
 0xcd5   :  { %27 = sbr.rel (!%p25_p9) target bundleno = 16 (0x10), region = 175 }

// kernel: text2text_forward.6
= control target key start
LH: loop header
LB: loop body
LE: loop exit
PB: predicated region body
PF: predicated region fallthrough
CT: control target
= control target key end

     0   :  { %s4796_s0 = inlined_call_operand.vmem [shape: f32[2,8,32], index: 0, kind: input, shape index: {}]   ;;  %s4797_s1 = inlined_call_operand.vmem [shape: f32[2,8,32], index: 1, kind: input, shape index: {}]   ;;  %s4798_s2 = inlined_call_operand.vmem [shape: f32[1,8,8], index: 2, kind: input, shape index: {}]   ;;  %s4799_s3 = inlined_call_operand.vmem [shape: f32[2,1,8], index: 3, kind: input, shape index: {}]   ;;  %s4800_s4 = inlined_call_operand.vmem [shape: f32[1,32], index: 4, kind: input, shape index: {}]   ;;  %s4801_s5 = inlined_call_operand.vmem [shape: f32[1,32], index: 5, kind: input, shape index: {}]   ;;  %s4802_s6 = inlined_call_operand.vmem [shape: bf16[2,32,32], index: 6, kind: input, shape index: {}]   ;;  %s4803_s7 = inlined_call_operand.vmem [shape: f32[2,1,32], index: 7, kind: input, shape index: {}]   ;;  %s4804_s8 = inlined_call_operand.vmem [shape: bf16[2,32,64], index: 8, kind: input, shape index: {}]   ;;  %s4805_s9 = inlined_call_operand.vmem [shape: f32[2,1,64], index: 9, kind: input, shape index: {}]   ;;  %s4806_s10 = inlined_call_operand.vmem [shape: bf16[2,32,32], index: 10, kind: input, shape index: {}]   ;;  %s4807_s11 = inlined_call_operand.vmem [shape: f32[2,1,32], index: 11, kind: input, shape index: {}]   ;;  %s4808_s12 = inlined_call_operand.vmem [shape: f32[2,1,32], index: 12, kind: input, shape index: {}]   ;;  %s4809_s13 = inlined_call_operand.vmem [shape: f32[2,1,32], index: 13, kind: input, shape index: {}]   ;;  %s4810_s14 = inlined_call_operand.vmem [shape: bf16[2,32,32], index: 14, kind: input, shape index: {}]   ;;  %s4811_s15 = inlined_call_operand.vmem [shape: f32[2,1,32], index: 15, kind: input, shape index: {}]   ;;  %s4812_s16 = inlined_call_operand.vmem [shape: bf16[2,32,64], index: 16, kind: input, shape index: {}]   ;;  %s4813_s17 = inlined_call_operand.vmem [shape: f32[2,1,64], index: 17, kind: input, shape index: {}]   ;;  %s4814_s18 = inlined_call_operand.vmem [shape: bf16[2,32,32], index: 18, kind: input, shape index: {}]   ;;  %s4815_s19 = inlined_call_operand.vmem [shape: f32[2,1,32], index: 19, kind: input, shape index: {}]   ;;  %s4816_s20 = inlined_call_operand.vmem [shape: f32[2,1,32], index: 20, kind: input, shape index: {}]   ;;  %s4817_s21 = inlined_call_operand.vmem [shape: f32[2,1,32], index: 21, kind: input, shape index: {}]   ;;  %s4818_s22 = inlined_call_operand.vmem [shape: bf16[2,32,64], index: 22, kind: input, shape index: {}]   ;;  %s4819_s23 = inlined_call_operand.vmem [shape: f32[2,1,64], index: 23, kind: input, shape index: {}]   ;;  %s4820_s24 = inlined_call_operand.vmem [shape: bf16[2,64,32], index: 24, kind: input, shape index: {}]   ;;  %s4821_s25 = inlined_call_operand.vmem [shape: f32[2,1,32], index: 25, kind: input, shape index: {}]   ;;  %s4822_s26 = inlined_call_operand.hbm [shape: f32[2,1,32], index: 26, kind: input, shape index: {}]   ;;  %s4823_s27 = inlined_call_operand.hbm [shape: f32[2,1,32], index: 27, kind: input, shape index: {}]   ;;  %s4824_s28 = inlined_call_operand.vmem [shape: f32[2,8,32], index: 28, kind: output, shape index: {}]  }
   0x1   :  { %4838 = sst [smem:[#allocation23_spill]] %s4796_s0 }
   0x2   :  { %4839 = sst [smem:[#allocation24_spill]] %s4797_s1 }
   0x3   :  { %4840 = sst [smem:[#allocation25_spill]] %s4798_s2 }
   0x4   :  { %4841 = sst [smem:[#allocation26_spill]] %s4799_s3 }
   0x5   :  { %4842 = sst [smem:[#allocation27_spill]] %s4800_s4 }
   0x6   :  { %4843 = sst [smem:[#allocation28_spill]] %s4801_s5 }
   0x7   :  { %4844 = sst [smem:[#allocation29_spill]] %s4802_s6 }
   0x8   :  { %4845 = sst [smem:[#allocation30_spill]] %s4803_s7 }
   0x9   :  { %4846 = sst [smem:[#allocation31_spill]] %s4804_s8 }
   0xa   :  { %4847 = sst [smem:[#allocation32_spill]] %s4805_s9 }
   0xb   :  { %4848 = sst [smem:[#allocation33_spill]] %s4806_s10 }
   0xc   :  { %4849 = sst [smem:[#allocation34_spill]] %s4807_s11 }
   0xd   :  { %4850 = sst [smem:[#allocation35_spill]] %s4808_s12 }
   0xe   :  { %4851 = sst [smem:[#allocation36_spill]] %s4810_s14 }
   0xf   :  { %4852 = sst [smem:[#allocation37_spill]] %s4812_s16 }
  0x10   :  { %4853 = sst [smem:[#allocation38_spill]] %s4814_s18 }
  0x11   :  { %4854 = sst [smem:[#allocation39_spill]] %s4815_s19 }
  0x12   :  { %4855 = sst [smem:[#allocation40_spill]] %s4817_s21 }
  0x13   :  { %4856 = sst [smem:[#allocation41_spill]] %s4818_s22 }
  0x14   :  { %4857 = sst [smem:[#allocation42_spill]] %s4819_s23 }
  0x15   :  { %4858 = sst [smem:[#allocation43_spill]] %s4820_s24 }
  0x16   :  { %4859 = sst [smem:[#allocation44_spill]] %s4821_s25 }
  0x17   :  { %4860 = sst [smem:[#allocation45_spill]] %s4822_s26 }
  0x18   :  { %4861 = sst [smem:[#allocation46_spill]] %s4823_s27 }
  0x19   :  { %4862 = sst [smem:[#allocation47_spill]] %s4824_s28 }
  0x1a   :  { %33 = vsyncpa [#allocation4], 0 }
  0x1b   :  { %35 = vsyncpa [#allocation4 + $0x1], 0 }
  0x1c   :  { %36 = vsyncpa [#allocation6], 0 }
  0x1d   :  { %38 = vsyncpa [#allocation6 + $0x1], 0  ;;  %s4212_s8 = smov 0   ;;  %s4214_s5 = smov 0  }
  0x1e   :  { %s4216_s9 = smov 0   ;;  %s4218_s30 = smov 0  }
  0x1f   :  { %s4220_s3 = smov 0   ;;  %s4222_s6 = smov 0  }
  0x20   :  { %s4224_s10 = smov 0   ;;  %s4226_s0 = smov 0  }
  0x21 LB: > { %4863 = sst [smem:[#allocation9_spill]] %s4027_s5  ;;  %s3460_s11 = sadd.s32 4294967295, %s4051_s0   ;;  %s4051_s0 = sphi %s4226_s0, %s44_s0   ;;  %s4047_s10 = sphi %s4224_s10, %s4945_s10   ;;  %s4043_s6 = sphi %s4222_s6, %s4944_s6   ;;  %s4039_s3 = sphi %s4220_s3, %s4943_s3   ;;  %s4035_s30 = sphi %s4218_s30, %s4942_s30   ;;  %s4031_s9 = sphi %s4216_s9, %s4941_s9   ;;  %s4027_s5 = sphi %s4214_s5, %s4940_s5   ;;  %s4023_s8 = sphi %s4212_s8, %s4939_s8  }
  0x22   : > { %4864 = sst [smem:[#allocation10_spill]] %s4031_s9  ;;  %s53_s29 = sadd.s32 1, %s4043_s6 }
  0x23   : > { %4865 = sst [smem:[#allocation11_spill]] %s4035_s30  ;;  %p54_p0 = scmp.ge.s32.totalorder %s53_s29, 2 }
  0x24   : > { %4866 = sst [smem:[#allocation12_spill]] %s4043_s6  ;;  %s56_s2 = sadd.s32 1, %s4047_s10 }
  0x25   : > { %4867 = sst [smem:[#allocation13_spill]] %s4047_s10  ;;  %s724_s7 = sadd.s32 1, %s4031_s9 }
  0x26   : > { %4868 = sst [smem:[#allocation14_spill]] %s4051_s0  ;;  %p731_p1 = scmp.ne.s32.totalorder %s4031_s9, %s4027_s5 }
  0x27   : > { %s4947_s29 = smov (%p54_p0, %s53_s29), 0  ;;  %s4949_s2 = smov (!%p54_p0, %s56_s2), %s4047_s10 }
  0x28   : > { %4869 = sst [smem:[#allocation15_spill]] %s4947_s29  ;;  %s721_s12 = ssub.s32 %s4043_s6, %s4947_s29 }
  0x29   : > { %p732_p2 = scmp.eq.s32.totalorder %s4051_s0, 0  ;;  %p58_p3 = scmp.ge.s32.totalorder %s4949_s2, 2 }
  0x2a   : > { %p722_p4 = scmp.eq.s32.totalorder %s721_s12, 0  ;;  %p737_p6 = scmp.ne.s32.totalorder %s4027_s5, %s4023_s8 }
  0x2b   : > { %p4262_p5 = por %p732_p2, %p731_p1  ;;  %s4951_s2 = smov (%p58_p3, %s4949_s2), 0 }
  0x2c   : > { %4871 = sst [smem:[#allocation16_spill]] %s4951_s2  ;;  %p738_p7 = scmp.eq.s32.totalorder %s3460_s11, 0 }
  0x2d   : > { %s4270_s4 = scalar_select %p722_p4, %s4031_s9, %s724_s7  }
  0x2e   : > { %p3790_p8 = scmp.lt.s32.totalorder %s4051_s0, 4  ;;  %s4274_s28 = sand.u32 1, %s4031_s9  }
  0x2f   : > { %4872 = sst [smem:[#allocation17_spill]] %s4270_s4  ;;  %p4276_p9 = por %p738_p7, %p737_p6 }
  0x30   : > { %s3464_s12 = sshll.u32 %s4043_s6, 4  ;;  %s4874_s26 = sld [smem:[#allocation45_spill]] }
  0x31   : > { %s981_s8 = scalar_lea.vmem [#allocation3], %s4274_s28  ;;  %p4287_p10 = pnand %p3790_p8, %p4262_p5 }
  0x32   : > { %s988_s23 = sshll.u32 %s981_s8, 4  ;;  %p3466_p11 = scmp.ge.s32.totalorder %s4051_s0, 1  ;;  %s989_s23 = int_to_ptr.vmem [resolvable:$true] %s988_s23 }
  0x33   : > { %p1010_p12 = scmp.lt.s32.totalorder %s4051_s0, 5  ;;  %s979_s7 = scalar_lea.sflag [#allocation4], %s4274_s28 }
  0x34   : > { %p3927_p13 = pneg %p4287_p10  ;;  %s3938_s2 = scalar_lea.vmem %s989_s23, 16 }
  0x35   : > { %p3939_p0 = scmp.ne.s32.totalorder %s989_s23, %s3938_s2  ;;  %s4053_s25 = smov [#allocation3]  }
  0x36   : > { %s986_s24 = scalar_lea.hbm %s4874_s26, %s3464_s12  ;;  %s3943_s10 = sshll.u32 %s4053_s25, 4  ;;  %s3944_s10 = int_to_ptr.vmem [resolvable:$false] %s3943_s10 }
  0x37   : > { %p3941_p1 = pnand %p3939_p0, %p3927_p13  ;;  %s3945_s1 = scalar_lea.vmem %s3944_s10, 32 }
  0x38   : > { %p3946_p3 = scmp.lt.s32.totalorder %s989_s23, %s3944_s10  ;;  %p3947_p4 = scmp.lt.s32.totalorder %s3945_s1, %s3938_s2 }
  0x39   : > { %p3942_p2 = pneg %p3941_p1 }
  0x3a   : > { %p3948_p5 = por %p3947_p4, %p3946_p3 }
  0x3c   : > { %p3949_p6 = pnand %p3948_p5, %p3942_p2 }
  0x3e   : > { %3952 = shalt.err (!%p3949_p6)
}
  0x3f   : > { %3786 = dma.hbm_to_vmem [thread:$0]  (!%p4287_p10), %s986_s24, 16, %s989_s23, %s979_s7  }
  0x40   : > { %p4305_p7 = pnand %p3466_p11, %p1010_p12  ;;  %s4877_s27 = sld [smem:[#allocation46_spill]] }
  0x41   : > { %s998_s1 = scalar_lea.vmem [#allocation5], %s4274_s28  ;;  %s996_s6 = scalar_lea.sflag [#allocation6], %s4274_s28 }
  0x42   : > { %s1005_s26 = sshll.u32 %s998_s1, 4  ;;  %s4054_s23 = smov [#allocation5]   ;;  %s1006_s26 = int_to_ptr.vmem [resolvable:$true] %s1005_s26 }
  0x43   : > { %s3966_s4 = scalar_lea.vmem %s1006_s26, 16  ;;  %s3971_s24 = sshll.u32 %s4054_s23, 4  ;;  %s3972_s24 = int_to_ptr.vmem [resolvable:$false] %s3971_s24 }
  0x44   : > { %p3967_p8 = scmp.ne.s32.totalorder %s1006_s26, %s3966_s4  ;;  %s3973_s7 = scalar_lea.vmem %s3972_s24, 32 }
  0x45   : > { %p3974_p11 = scmp.lt.s32.totalorder %s1006_s26, %s3972_s24  ;;  %p3975_p12 = scmp.lt.s32.totalorder %s3973_s7, %s3966_s4 }
  0x46   : > { %s1003_s2 = scalar_lea.hbm %s4877_s27, %s3464_s12  ;;  %p3969_p0 = pnand %p3967_p8, %p3927_p13 }
  0x47   : > { %p3976_p2 = por %p3975_p12, %p3974_p11 }
  0x48   : > { %p3970_p1 = pneg %p3969_p0 }
  0x4a   : > { %p3977_p3 = pnand %p3976_p2, %p3970_p1 }
  0x4c   : > { %3980 = shalt.err (!%p3977_p3)
}
  0x4d   : > { %3789 = dma.hbm_to_vmem [thread:$0]  (!%p4287_p10), %s1003_s2, 16, %s1006_s26, %s996_s6  }
  0x4e   : > { %1014 = sbr.rel (%p4305_p7) target bundleno = 5474 (0x1562), region = 132 }
  0x53   : > { %s4322_s28 = sand.u32 1, %s4027_s5  }
  0x54   : > { %4878 = sst [smem:[#allocation18_spill]] %s4322_s28  ;;  %s1017_s12 = scalar_lea.sflag [#allocation4], %s4322_s28 }
  0x55   : > { %4014 = dma.done.wait (%p4276_p9), %s1017_s12, 16  }
  0x56   : > { %4016 = vsyncadd (%p4276_p9), %s1017_s12, 4294967280  ;;  %s1025_s26 = scalar_lea.sflag [#allocation6], %s4322_s28 }
  0x57   : > { %4018 = dma.done.wait (%p4276_p9), %s1025_s26, 16  }
  0x58   : > { %4020 = vsyncadd (%p4276_p9), %s1025_s26, 4294967280  ;;  %p1189_p10 = scmp.lt.s32.totalorder %s4039_s3, 1  ;;  %p1200_p13 = scmp.lt.s32.totalorder %s4035_s30, 1 }
  0x59   : > { %s4881_s24 = sld [smem:[#allocation23_spill]] }
  0x5a   : > { %s4953_s3 = smov (!%p1189_p10, %s4039_s3), 1  ;;  %s4886_s23 = sld [smem:[#allocation31_spill]] }
  0x5b   : > { %4879 = sst [smem:[#allocation19_spill]] %s4953_s3  ;;  %s4345_s29 = sshll.u32 %s4953_s3, 3 }
  0x5c   : > { %s4342_s4 = scalar_select %p1200_p13, %s4035_s30, 1 }
  0x5d   : > { %s4884_s30 = sld [smem:[#allocation29_spill]] }
  0x5e   : > { %s3557_s27 = sshll.u32 %s4342_s4, 4  ;;  %s4889_s9 = sld [smem:[#allocation33_spill]] }
  0x5f   : > { %s1192_s7 = scalar_lea.vmem %s4881_s24, %s4345_s29  ;;  %s4892_s14 = sld [smem:[#allocation36_spill]] }
  0x60   : > { %s4372_s24 = scalar_lea.vmem %s4886_s23, %s3557_s27  ;;  %s4893_s16 = sld [smem:[#allocation37_spill]] }
  0x61   : > { %4887 = sst [smem:[#allocation21_spill]] %s4372_s24 }
  0x62   : > { %s4894_s18 = sld [smem:[#allocation38_spill]] }
  0x63   : > { %s4367_s10 = scalar_lea.vmem %s4884_s30, %s3557_s27  ;;  %s4898_s2 = sld [smem:[#allocation41_spill]] }
  0x64   : > { %4885 = sst [smem:[#allocation20_spill]] %s4367_s10  ;;  %s4381_s0 = scalar_lea.vmem %s4889_s9, %s3557_s27 }
  0x65   : > { %s4398_s3 = scalar_lea.vmem %s4892_s14, %s3557_s27  ;;  %s4900_s23 = sld [smem:[#allocation43_spill]] }
  0x66   : > { %s4407_s8 = scalar_lea.vmem %s4893_s16, %s3557_s27  ;;  %s4899_s16 = sld [smem:[#allocation42_spill]] }
  0x67   : > { %s4901_s11 = sld [smem:[#allocation44_spill]] }
  0x68   : > { %s4416_s12 = scalar_lea.vmem %s4894_s18, %s3557_s27  ;;  %s4902_s21 = sld [smem:[#allocation47_spill]] }
  0x69   : > { %4895 = sst [smem:[#allocation22_spill]] %s4416_s12  ;;  %s4433_s1 = scalar_lea.vmem %s4898_s2, %s3557_s27 }
  0x6a   : > { %s3564_s12 = sshll.u32 %s4342_s4, 5  ;;  %s4903_s27 = sld [smem:[#allocation11_spill]] }
  0x6b   : > { %s4443_s19 = scalar_lea.vmem %s4900_s23, %s3564_s12 }
  0x6c   : > { %s1267_s18 = scalar_lea.vmem %s4899_s16, %s4342_s4 }
  0x6d   : > { %s1275_s28 = scalar_lea.vmem %s4901_s11, %s4342_s4 }
  0x6e   : > { %s1279_s14 = scalar_lea.vmem %s4902_s21, %s4345_s29 }
  0x70   : > { %p3486_p9 = scmp.ne.s32.totalorder %s4903_s27, 0 }
  0x71   : > { %s4904_s25 = sld [smem:[#allocation27_spill]] (!%p3486_p9) }
  0x72   : > { %1284 = sbr.rel (%p3486_p9) target bundleno = 429 (0x1ad), region = 144  ;;  %s4905_s12 = sld [smem:[#allocation28_spill]] (!%p3486_p9) }
  0x77   : > { %v1285_v0 = vld [vmem:[%s1192_s7] sm:$0xff]  ;;  %vm1288_vm0 = vcmask 261120  }
  0x78   : > { %v1289_v1 = vsel %vm1288_vm0, %v1285_v0, 0.0  ;;  %v3487_v11 = vld [vmem:[%s4904_s25] ss:$0 sm:$0xff] }
  0x79   : > { %1290 = vadd.xlane.f32.xlu0 %v1289_v1  ;;  %v3488_v13 = vld [vmem:[%s4905_s12] ss:$0 sm:$0xff] }
 0x102   : > { %v1291_v2 = vpop.xlane.xlu0 %1290 }
 0x103   : > { %v1293_v3 = vmul.f32 0.03125, %v1291_v2 }
 0x105   : > { %v1294_v4 = vsub.f32 %v1285_v0, %v1293_v3 }
 0x107   : > { %v1295_v5 = vmul.f32 %v1294_v4, %v1294_v4 }
 0x109   : > { %v1296_v6 = vsel %vm1288_vm0, %v1295_v5, 0.0 }
 0x10a   : > { %1297 = vadd.xlane.f32.xlu0 %v1296_v6 }
 0x193   : > { %v1298_v7 = vpop.xlane.xlu0 %1297 }
 0x194   : > { %v1299_v8 = vmul.f32 0.03125, %v1298_v7 }
 0x196   : > { %v1300_v9 = vadd.f32 1e-12, %v1299_v8 }
 0x198   : > { %3867 = vrsqrt.f32 %v1300_v9 }
 0x1a5   : > { %v3868_v10 = vpop.eup %3867 }
 0x1a6   : > { %v1302_v12 = vmul.f32 %v3868_v10, %v1294_v4 }
 0x1a8   : > { %v1309_v14 = vmul.f32 %v3487_v11, %v1302_v12 }
 0x1aa   : > { %v1316_v15 = vadd.f32 %v3488_v13, %v1309_v14 }
 0x1ac   : > { %1317 = vst.msk [vmem:[#allocation2] sm:$0xff] %vm1288_vm0, %v1316_v15 }
 0x1ad PF: > { %s4906_s11 = sld [smem:[#allocation20_spill]]  ;;  %v4055_v17 = vmov 0.0   ;;  %vm4056_vm1 = vmmov 0   ;;  %vm1356_vm2 = vcmask 261120   ;;  %vm1458_vm3 = vcmask 64512   ;;  %s4057_s27 = smov 120  }
 0x1ae   : > { %s4907_s10 = sld [smem:[#allocation21_spill]]  ;;  %3623 = vmatprep.subr.bf16.mxu0 %v4055_v17  ;;  %3631 = vmatprep.subr.bf16.mxu1 %v4055_v17  ;;  %s4058_s16 = smov 88   ;;  %vm1556_vm4 = vcmask 1043456   ;;  %vm2033_vm5 = vcmask 130048   ;;  %vm2035_vm6 = vcmask 195584   ;;  %vm3050_vm7 = vcmask 523264  }
 0x1af   : > { %3627 = vmatprep.mubr.msk.bf16.mxu0 %vm4056_vm1, %v4055_v17  ;;  %3635 = vmatprep.mubr.msk.bf16.mxu1 %vm4056_vm1, %v4055_v17  ;;  %s4908_s24 = sld [smem:[#allocation32_spill]]  ;;  %s4059_s21 = smov 112  }
 0x1b0   : > { %s4910_s9 = sld [smem:[#allocation30_spill]]  ;;  %s4060_s25 = smov 104  }
 0x1b1   : > { %s4912_s12 = sld [smem:[#allocation25_spill]]  ;;  %s4063_s2 = smov 8  }
 0x1b2   : > { %s4064_s22 = smov 80   ;;  %s4913_s5 = sld [smem:[#allocation34_spill]] }
 0x1b3   : > { %v3869_v16 = vld [vmem:[%s4906_s11 + $0x8] sm:$0xff]   ;;  %v3871_v19 = vld [vmem:[%s4906_s11] sm:$0xff]   ;;  %s4061_s11 = smov 96   ;;  %s4915_s23 = sld [smem:[#allocation24_spill]] }
 0x1b4   : > { %v3870_v18 = vld [vmem:[%s4907_s10 + $0x8] sm:$0xff]   ;;  %3624 = vmatpush3.bf16.msra.mxu0 %v3869_v16  ;;  %v3872_v20 = vld [vmem:[%s4907_s10] sm:$0xff]   ;;  %s4062_s10 = smov 72   ;;  %s4917_s26 = sld [smem:[#allocation35_spill]] }
 0x1b5   : > { %3632 = vmatpush3.bf16.msra.mxu1 %v3870_v18  ;;  %3625 = vmatprep.subr.bf16.mxu0 %v4055_v17  ;;  %v4475_v21 = vld [vmem:[#allocation2] sm:$0xff]  ;;  %s4909_s6 = scalar_lea.vmem %s4908_s24, %s4342_s4  ;;  %s4065_s24 = smov 16  }
 0x1b6   : > { %3633 = vmatprep.subr.bf16.mxu1 %v4055_v17  ;;  %v1337_v22 = vpack.c.bf16 %v4475_v21, %v4475_v21  ;;  %v3493_v23 = vld [vmem:[%s4909_s6] ss:$0 sm:$0xff]  ;;  %s4911_s30 = scalar_lea.vmem %s4910_s9, %s4342_s4  ;;  %s4066_s6 = smov 24  }
 0x1b7   : > { %v3489_v24 = vld [vmem:[%s4911_s30] ss:$0 sm:$0xff]  ;;  %s4923_s30 = sld [smem:[#allocation26_spill]] }
 0x1b8   : > { %3626 = vmatpush3.bf16.msra.mxu0 %v3871_v19  ;;  %v1320_v41 = vld [vmem:[%s4912_s12] sm:$0xff]  ;;  %s4914_s9 = scalar_lea.vmem %s4913_s5, %s4342_s4  ;;  %s4929_s7 = sld [smem:[#allocation40_spill]] }
 0x1b9   : > { %3634 = vmatpush3.bf16.msra.mxu1 %v3872_v20  ;;  %3639 = vmatprep.subr.mxu0 %v4055_v17  ;;  %s4916_s12 = scalar_lea.vmem %s4915_s23, %s4345_s29 }
 0x1ba   : > { %3644 = vmatprep.subr.bf16.mxu1 %v4055_v17  ;;  %s4918_s5 = scalar_lea.vmem %s4917_s26, %s4342_s4  ;;  %s4921_s26 = scalar_lea.vmem %s4811_s15, %s4342_s4 }
 0x1bb   : > { %3628 = vmatmul.mubr.msk.bf16.vlgmr.msra.gmra.mxu0 %vm1356_vm2, %v1337_v22 }
 0x1bc   : > { %3636 = vmatmul.mubr.msk.bf16.vlgmr.msra.gmra.mxu1 %vm1356_vm2, %v1337_v22  ;;  %3641 = vmatprep.mubr.msk.f32.mxu0 %vm4056_vm1, %v4055_v17 }
 0x1bd   : > { %3646 = vmatprep.mubr.msk.bf16.mxu1 %vm4056_vm1, %v4055_v17 }
 0x1be   : > { %s4930_s23 = scalar_lea.vmem %s4929_s7, %s4342_s4 }
 0x27b   : > { %v1394_v25 = vpop.f32.mrf.mxu0 }
 0x27c   : > { %v1452_v26 = vpop.f32.mrf.mxu1  ;;  %v1395_v29 = vadd.f32 %v3489_v24, %v1394_v25 }
 0x27d   : > { %v1453_v27 = vadd.f32 %v3493_v23, %v1452_v26  ;;  %v3629_v28 = vpop.f32.mrf.mxu0 }
 0x27e   : > { %v3637_v30 = vpop.f32.mrf.mxu1 }
 0x27f   : > { %1602 = vrot.lane.b32.xlu0 %v1453_v27, %s4057_s27  ;;  %3640 = vmatpush3.xpose.msk.msra.mxu0 %vm1458_vm3, %v1453_v27  ;;  %v1397_v31 = vpop.f32.mrf.mxu0  ;;  %v4504_v35 = vpack.c.bf16 %v1453_v27, %v1453_v27 }
 0x280   : > { %v1455_v32 = vpop.f32.mrf.mxu1  ;;  %3650 = vmatprep.subr.mxu0 %v4055_v17 }
 0x281   : > { %v3630_v33 = vpop.f32.mrf.mxu0 }
 0x282   : > { %v3638_v34 = vpop.f32.mrf.mxu1  ;;  %3642 = vmatmul.mubr.msk.f32.vlgmr.msra.gmra.mxu0 %vm1458_vm3, %v1395_v29 }
 0x283   : > { %1600 = vrot.lane.b32.xlu0 %v1395_v29, %s4057_s27  ;;  %3652 = vmatprep.mubr.msk.f32.mxu0 %vm4056_vm1, %v4055_v17 }
 0x287   : > { %1692 = vrot.lane.b32.xlu0 %v4504_v35, %s4058_s16 }
 0x28b   : > { %1740 = vrot.lane.b32.xlu0 %v1395_v29, %s4059_s21 }
 0x28f   : > { %1882 = vrot.lane.b32.xlu0 %v1453_v27, %s4060_s25 }
 0x293   : > { %1880 = vrot.lane.b32.xlu0 %v1395_v29, %s4060_s25 }
 0x2f1   : > { %v1603_v36 = vpop.permute.xlu0 %1602 }
 0x2f2   : > { %3651 = vmatpush3.xpose.msk.msra.mxu0 %vm1458_vm3, %v1603_v36 }
 0x2f3   : > { %3655 = vmatprep.subr.bf16.mxu0 %v4055_v17 }
 0x2f5   : > { %v1601_v37 = vpop.permute.xlu0 %1600 }
 0x2f6   : > { %3653 = vmatmul.mubr.msk.f32.vlgmr.msra.gmra.mxu0 %vm1458_vm3, %v1601_v37 }
 0x2f7   : > { %3657 = vmatprep.mubr.msk.bf16.mxu0 %vm4056_vm1, %v4055_v17 }
 0x2f9   : > { %v1693_v38 = vpop.permute.xlu0 %1692 }
 0x2fa   : > { %v1698_v39 = vsel %vm1556_vm4, %v1693_v38, 0 }
 0x2fb   : > { %3656 = vmatpush3.bf16.msra.mxu0 %v1698_v39 }
 0x2fc   : > { %3661 = vmatprep.subr.mxu0 %v4055_v17 }
 0x2fd   : > { %v1741_v60 = vpop.permute.xlu0 %1740 }
 0x301   : > { %v1883_v62 = vpop.permute.xlu0 %1882 }
 0x305   : > { %v1881_v63 = vpop.permute.xlu0 %1880 }
 0x342   : > { %v1531_v40 = vpop.f32.mrf.mxu0 }
 0x343   : > { %v1535_v42 = vmul.f32 0.35355338, %v1531_v40 }
 0x344   : > { %v3643_v43 = vpop.f32.mrf.mxu0 }
 0x345   : > { %v1536_v44 = vadd.f32 %v1535_v42, %v1320_v41 }
 0x347   : > { %v1537_v45 = vsel %vm1458_vm3, %v1536_v44, -inf }
 0x348   : > { %1538 = vmax.xlane.f32.xlu0 %v1537_v45 }
 0x3b6   : > { %v1674_v46 = vpop.f32.mrf.mxu0 }
 0x3b7   : > { %v1678_v47 = vmul.f32 0.35355338, %v1674_v46 }
 0x3b8   : > { %v3654_v48 = vpop.f32.mrf.mxu0 }
 0x3b9   : > { %v1679_v49 = vadd.f32 %v1678_v47, %v1320_v41 }
 0x3bb   : > { %v1680_v50 = vsel %vm1458_vm3, %v1679_v49, -inf }
 0x3bc   : > { %1681 = vmax.xlane.f32.xlu1 %v1680_v50 }
 0x3d1   : > { %v1539_v0 = vpop.xlane.xlu0 %1538 }
 0x3d2   : > { %v1540_v1 = vsub.f32 %v1536_v44, %v1539_v0 }
 0x3d4   : > { %v1541_v3 = vmul.f32 1.442695, %v1540_v1 }
 0x445   : > { %v1682_v51 = vpop.xlane.xlu1 %1681 }
 0x446   : > { %v1683_v52 = vsub.f32 %v1679_v49, %v1682_v51 }
 0x448   : > { %v1684_v53 = vmul.f32 1.442695, %v1683_v52 }
 0x44a   : > { %3887 = vpow2.f32 %v1684_v53  ;;  %v3873_v53 = vld [vmem:[%s4381_s0 + $0x8] sm:$0xff]  }
 0x457   : > { %v3888_v54 = vpop.eup %3887 }
 0x458   : > { %v1686_v55 = vsel %vm1458_vm3, %v3888_v54, 0.0 }
 0x459   : > { %1687 = vadd.xlane.f32.xlu1 %v1686_v55 }
 0x46a   : > { %1742 = vrot.lane.b32.xlu1 %v1453_v27, %s4059_s21 }
 0x4e2   : > { %v1688_v56 = vpop.xlane.xlu1 %1687 }
 0x4e3   : > { %3889 = vrcp.f32 %v1688_v56 }
 0x4e4   : > { %3891 = vpow2.f32 %v1541_v3 }
 0x4e6   : > { %v1743_v61 = vpop.permute.xlu1 %1742 }
 0x4f0   : > { %v3890_v57 = vpop.eup %3889 }
 0x4f1   : > { %v1690_v58 = vmul.f32 %v3890_v57, %v3888_v54  ;;  %v3892_v18 = vpop.eup %3891  ;;  %v3874_v54 = vld [vmem:[%s4381_s0] sm:$0xff]  }
 0x4f2   : > { %v1543_v19 = vsel %vm1458_vm3, %v3892_v18, 0.0 }
 0x4f3   : > { %v1691_v59 = vpack.c.bf16 %v1690_v58, %v1690_v58 }
 0x4f5   : > { %3658 = vmatmul.mubr.msk.bf16.vlgmr.msra.gmra.mxu0 %vm1458_vm3, %v1691_v59 }
 0x4f6   : > { %3662 = vmatpush3.xpose.msk.msra.mxu0 %vm1458_vm3, %v1743_v61  ;;  %3663 = vmatprep.mubr.msk.f32.mxu0 %vm4056_vm1, %v4055_v17 }
 0x4f7   : > { %3672 = vmatprep.subr.mxu0 %v4055_v17 }
 0x4fd   : > { %3664 = vmatmul.mubr.msk.f32.vlgmr.msra.gmra.mxu0 %vm1458_vm3, %v1741_v60 }
 0x4fe   : > { %3673 = vmatpush3.xpose.msk.msra.mxu0 %vm1458_vm3, %v1883_v62  ;;  %3674 = vmatprep.mubr.msk.f32.mxu0 %vm4056_vm1, %v4055_v17 }
 0x4ff   : > { %3677 = vmatprep.subr.bf16.mxu0 %v4055_v17 }
 0x501   : > { %3675 = vmatmul.mubr.msk.f32.vlgmr.msra.gmra.mxu0 %vm1458_vm3, %v1881_v63 }
 0x502   : > { %3679 = vmatprep.mubr.msk.bf16.mxu0 %vm4056_vm1, %v4055_v17 }
 0x5b5   : > { %v1734_v2 = vpop.f32.mrf.mxu0 }
 0x5b7   : > { %v3659_v4 = vpop.f32.mrf.mxu0 }
 0x5b9   : > { %v1737_v5 = vpop.f32.mrf.mxu0 }
 0x5bb   : > { %v3660_v6 = vpop.f32.mrf.mxu0 }
 0x5bc   : > { %v3509_v6 = vld [vmem:[%s4914_s9] ss:$0 sm:$0xff] }
 0x5bd   : > { %v1814_v7 = vpop.f32.mrf.mxu0 }
 0x5be   : > { %v1818_v8 = vmul.f32 0.35355338, %v1814_v7 }
 0x5bf   : > { %v3665_v9 = vpop.f32.mrf.mxu0 }
 0x5c0   : > { %v1819_v10 = vadd.f32 %v1818_v8, %v1320_v41 }
 0x5c1   : > { %v1954_v11 = vpop.f32.mrf.mxu0 }
 0x5c2   : > { %v1958_v12 = vmul.f32 0.35355338, %v1954_v11  ;;  %v1820_v13 = vsel %vm1458_vm3, %v1819_v10, -inf }
 0x5c3   : > { %1821 = vmax.xlane.f32.xlu1 %v1820_v13  ;;  %v3676_v14 = vpop.f32.mrf.mxu0 }
 0x5c4   : > { %v1959_v15 = vadd.f32 %v1958_v12, %v1320_v41 }
 0x5c6   : > { %v1960_v16 = vsel %vm1458_vm3, %v1959_v15, -inf }
 0x5c7   : > { %1961 = vmax.xlane.f32.xlu0 %v1960_v16 }
 0x5cb   : > { %1544 = vadd.xlane.f32.xlu0 %v1543_v19 }
 0x5d4   : > { %1551 = vrot.lane.b32.xlu1 %v4504_v35, %s4061_s11 }
 0x64c   : > { %v1822_v20 = vpop.xlane.xlu1 %1821 }
 0x64d   : > { %v1823_v22 = vsub.f32 %v1819_v10, %v1822_v20  ;;  %v3875_v20 = vld [vmem:[%s4407_s8 + $0x8] sm:$0xff]  }
 0x64f   : > { %v1824_v23 = vmul.f32 1.442695, %v1823_v22  ;;  %v1319_v22 = vld [vmem:[%s4916_s12] sm:$0xff]  ;;  %s4920_s12 = scalar_lea.vmem %s4813_s17, %s4342_s4 }
 0x650   : > { %v1552_v24 = vpop.permute.xlu1 %1551  ;;  %v1962_v25 = vpop.xlane.xlu0 %1961 }
 0x651   : > { %3893 = vpow2.f32 %v1824_v23  ;;  %v1558_v26 = vsel %vm1556_vm4, %v1552_v24, 0  ;;  %v1963_v27 = vsub.f32 %v1959_v15, %v1962_v25  ;;  %v2207_v23 = vpack.c.bf16 %v1319_v22, %v1319_v22  ;;  %v3877_v24 = vld [vmem:[%s4398_s3 + $0x8] sm:$0xff]   ;;  %v3878_v25 = vld [vmem:[%s4398_s3] sm:$0xff]   ;;  %s4919_s3 = scalar_lea.vmem %s4809_s13, %s4342_s4 }
 0x652   : > { %3645 = vmatpush3.bf16.msra.mxu1 %v1558_v26 }
 0x653   : > { %v1964_v28 = vmul.f32 1.442695, %v1963_v27  ;;  %3666 = vmatprep.subr.bf16.mxu1 %v4055_v17 }
 0x654   : > { %v1545_v29 = vpop.xlane.xlu0 %1544 }
 0x655   : > { %3895 = vpow2.f32 %v1964_v28 }
 0x656   : > { %3897 = vrcp.f32 %v1545_v29 }
 0x65e   : > { %v3894_v30 = vpop.eup %3893 }
 0x65f   : > { %v1826_v31 = vsel %vm1458_vm3, %v3894_v30, 0.0 }
 0x660   : > { %1827 = vadd.xlane.f32.xlu1 %v1826_v31 }
 0x662   : > { %v3896_v32 = vpop.eup %3895 }
 0x663   : > { %v3898_v33 = vpop.eup %3897  ;;  %v1966_v34 = vsel %vm1458_vm3, %v3896_v32, 0.0 }
 0x664   : > { %1967 = vadd.xlane.f32.xlu0 %v1966_v34  ;;  %v1547_v36 = vmul.f32 %v3898_v33, %v3892_v18 }
 0x666   : > { %v1548_v37 = vpack.c.bf16 %v1547_v36, %v1547_v36 }
 0x668   : > { %3647 = vmatmul.mubr.msk.bf16.vlgmr.msra.gmra.mxu1 %vm1458_vm3, %v1548_v37  ;;  %v3519_v37 = vld [vmem:[%s4920_s12] ss:$0 sm:$0xff] }
 0x669   : > { %3668 = vmatprep.mubr.msk.bf16.mxu1 %vm4056_vm1, %v4055_v17 }
 0x671   : > { %1972 = vrot.lane.b32.xlu1 %v4504_v35, %s4062_s10 }
 0x675   : > { %2021 = vrot.lane.b32.xlu1 %v1734_v2, %s4063_s2 }
 0x67a   : > { %1832 = vrot.lane.b32.xlu0 %v4504_v35, %s4064_s22 }
 0x6e9   : > { %v1828_v38 = vpop.xlane.xlu1 %1827 }
 0x6ea   : > { %3899 = vrcp.f32 %v1828_v38 }
 0x6ed   : > { %v1973_v39 = vpop.permute.xlu1 %1972  ;;  %v1968_v40 = vpop.xlane.xlu0 %1967 }
 0x6ee   : > { %v1978_v41 = vsel %vm1556_vm4, %v1973_v39, 0  ;;  %3901 = vrcp.f32 %v1968_v40 }
 0x6ef   : > { %3678 = vmatpush3.bf16.msra.mxu0 %v1978_v41 }
 0x6f0   : > { %3691 = vmatprep.subr.bf16.mxu0 %v4055_v17 }
 0x6f1   : > { %v1833_v42 = vpop.permute.xlu0 %1832  ;;  %v2022_v63 = vpop.permute.xlu1 %2021 }
 0x6f2   : > { %v1838_v43 = vsel %vm1556_vm4, %v1833_v42, 0 }
 0x6f3   : > { %3667 = vmatpush3.bf16.msra.mxu1 %v1838_v43  ;;  %v3515_v43 = vld [vmem:[%s4921_s26] ss:$0 sm:$0xff] }
 0x6f4   : > { %3683 = vmatprep.subr.bf16.mxu1 %v4055_v17 }
 0x6f7   : > { %v3900_v44 = vpop.eup %3899 }
 0x6f8   : > { %v1830_v45 = vmul.f32 %v3900_v44, %v3894_v30  ;;  %v3513_v30 = vld [vmem:[%s4918_s5] ss:$0 sm:$0xff]  ;;  %s4922_s5 = sld [smem:[#allocation19_spill]] }
 0x6fa   : > { %v1831_v35 = vpack.c.bf16 %v1830_v45, %v1830_v45 }
 0x6fb   : > { %v3902_v46 = vpop.eup %3901 }
 0x6fc   : > { %3669 = vmatmul.mubr.msk.bf16.vlgmr.msra.gmra.mxu1 %vm1458_vm3, %v1831_v35  ;;  %v1970_v47 = vmul.f32 %v3902_v46, %v3896_v32  ;;  %v3514_v32 = vld [vmem:[%s4919_s3] ss:$0 sm:$0xff] }
 0x6fd   : > { %3687 = vmatprep.mubr.msk.bf16.mxu1 %vm4056_vm1, %v4055_v17  ;;  %3684 = vmatpush3.bf16.msra.mxu1 %v3873_v53 }
 0x6fe   : > { %v1971_v48 = vpack.c.bf16 %v1970_v47, %v1970_v47  ;;  %3685 = vmatprep.subr.bf16.mxu1 %v4055_v17  ;;  %s4924_s3 = scalar_lea.vmem %s4923_s30, %s4922_s5 }
 0x700   : > { %3680 = vmatmul.mubr.msk.bf16.vlgmr.msra.gmra.mxu0 %vm1458_vm3, %v1971_v48 }
 0x701   : > { %3695 = vmatprep.mubr.msk.bf16.mxu0 %vm4056_vm1, %v4055_v17  ;;  %3686 = vmatpush3.bf16.msra.mxu1 %v3874_v54 }
 0x702   : > { %3699 = vmatprep.subr.bf16.mxu1 %v4055_v17  ;;  %3692 = vmatpush3.bf16.msra.mxu0 %v3877_v24 }
 0x703   : > { %3693 = vmatprep.subr.bf16.mxu0 %v4055_v17 }
 0x706   : > { %3694 = vmatpush3.bf16.msra.mxu0 %v3878_v25 }
 0x707   : > { %3707 = vmatprep.subr.mxu0 %v4055_v17 }
 0x728   : > { %v1594_v49 = vpop.f32.mrf.mxu1 }
 0x729   : > { %v2032_v1 = vsel %vm1458_vm3, %v1594_v49, %v2022_v63 }
 0x72a   : > { %v3648_v50 = vpop.f32.mrf.mxu1 }
 0x72c   : > { %v1597_v51 = vpop.f32.mrf.mxu1 }
 0x72d   : > { %v4645_v51 = vld [vmem:[%s4924_s3] ss:$0 sm:$0xff] }
 0x72e   : > { %v3649_v52 = vpop.f32.mrf.mxu1 }
 0x7bc   : > { %v1874_v55 = vpop.f32.mrf.mxu1 }
 0x7bd   : > { %2025 = vrot.lane.b32.xlu0 %v1874_v55, %s4065_s24 }
 0x7be   : > { %v3670_v56 = vpop.f32.mrf.mxu1 }
 0x7c0   : > { %v1877_v57 = vpop.f32.mrf.mxu1  ;;  %v2014_v58 = vpop.f32.mrf.mxu0 }
 0x7c1   : > { %2029 = vrot.lane.b32.xlu1 %v2014_v58, %s4066_s6 }
 0x7c2   : > { %v3671_v59 = vpop.f32.mrf.mxu1  ;;  %v3681_v60 = vpop.f32.mrf.mxu0 }
 0x7c4   : > { %v2017_v61 = vpop.f32.mrf.mxu0 }
 0x7c6   : > { %v3682_v62 = vpop.f32.mrf.mxu0 }
 0x82f   : > { %v2026_v0 = vpop.permute.xlu0 %2025 }
 0x830   : > { %v2034_v2 = vsel %vm2033_vm5, %v2032_v1, %v2026_v0 }
 0x833   : > { %v2030_v3 = vpop.permute.xlu1 %2029 }
 0x834   : > { %v2036_v4 = vsel %vm2035_vm6, %v2034_v2, %v2030_v3 }
 0x835   : > { %v2037_v5 = vpack.c.bf16 %v2036_v4, %v2036_v4 }
 0x837   : > { %3688 = vmatmul.mubr.msk.bf16.vlgmr.msra.gmra.mxu1 %vm1356_vm2, %v2037_v5 }
 0x838   : > { %3703 = vmatprep.mubr.msk.bf16.mxu1 %vm4056_vm1, %v4055_v17  ;;  %3700 = vmatpush3.bf16.msra.mxu1 %v3875_v20 }
 0x839   : > { %3701 = vmatprep.subr.bf16.mxu1 %v4055_v17 }
 0x8f7   : > { %v2093_v7 = vpop.f32.mrf.mxu1 }
 0x8f8   : > { %v2094_v8 = vadd.f32 %v3509_v6, %v2093_v7 }
 0x8f9   : > { %v3689_v9 = vpop.f32.mrf.mxu1 }
 0x8fa   : > { %v2099_v10 = vadd.f32 %v2094_v8, %v4475_v21  ;;  %v3876_v21 = vld [vmem:[%s4407_s8] sm:$0xff]  }
 0x8fb   : > { %v2096_v11 = vpop.f32.mrf.mxu1  ;;  %3702 = vmatpush3.bf16.msra.mxu1 %v3876_v21 }
 0x8fc   : > { %v2102_v12 = vsel %vm1356_vm2, %v2099_v10, 0.0  ;;  %3712 = vmatprep.subr.bf16.mxu1 %v4055_v17 }
 0x8fd   : > { %2103 = vadd.xlane.f32.xlu0 %v2102_v12  ;;  %v3690_v13 = vpop.f32.mrf.mxu1 }
 0x8fe   : > { %3704 = vmatmul.mubr.msk.bf16.vlgmr.msra.gmra.mxu1 %vm1356_vm2, %v2207_v23 }
 0x8ff   : > { %3714 = vmatprep.mubr.msk.bf16.mxu1 %vm4056_vm1, %v4055_v17 }
 0x986   : > { %v2104_v14 = vpop.xlane.xlu0 %2103 }
 0x987   : > { %v2106_v15 = vmul.f32 0.03125, %v2104_v14 }
 0x989   : > { %v2107_v16 = vsub.f32 %v2099_v10, %v2106_v15 }
 0x98b   : > { %v2108_v18 = vmul.f32 %v2107_v16, %v2107_v16 }
 0x98d   : > { %v2109_v19 = vsel %vm1356_vm2, %v2108_v18, 0.0 }
 0x98e   : > { %2110 = vadd.xlane.f32.xlu1 %v2109_v19 }
 0x9be   : > { %v2263_v38 = vpop.f32.mrf.mxu1 }
 0x9bf   : > { %v2264_v39 = vadd.f32 %v3519_v37, %v2263_v38 }
 0x9c0   : > { %v3705_v40 = vpop.f32.mrf.mxu1 }
 0x9c1   : > { %2417 = vrot.lane.b32.xlu0 %v2264_v39, %s4057_s27  ;;  %v4651_v61 = vpack.c.bf16 %v2264_v39, %v2264_v39 }
 0x9c2   : > { %v2266_v41 = vpop.f32.mrf.mxu1 }
 0x9c4   : > { %v3706_v42 = vpop.f32.mrf.mxu1 }
 0xa17   : > { %v2111_v26 = vpop.xlane.xlu1 %2110 }
 0xa18   : > { %v2112_v27 = vmul.f32 0.03125, %v2111_v26 }
 0xa1a   : > { %v2113_v28 = vadd.f32 1e-05, %v2112_v27 }
 0xa1c   : > { %3903 = vrsqrt.f32 %v2113_v28 }
 0xa29   : > { %v3904_v29 = vpop.eup %3903 }
 0xa2a   : > { %v2115_v31 = vmul.f32 %v3904_v29, %v2107_v16 }
 0xa2c   : > { %v2122_v33 = vmul.f32 %v3513_v30, %v2115_v31 }
 0xa2e   : > { %v4611_v34 = vadd.f32 %v3514_v32, %v2122_v33 }
 0xa30   : > { %v2145_v36 = vpack.c.bf16 %v4611_v34, %v4611_v34 }
 0xa32   : > { %3696 = vmatmul.mubr.msk.bf16.vlgmr.msra.gmra.mxu0 %vm1356_vm2, %v2145_v36 }
 0xa33   : > { %3709 = vmatprep.mubr.msk.f32.mxu0 %vm4056_vm1, %v4055_v17  ;;  %3708 = vmatpush3.xpose.msk.msra.mxu0 %vm1458_vm3, %v2264_v39  ;;  %v2418_v35 = vpop.permute.xlu0 %2417 }
 0xa34   : > { %3718 = vmatprep.subr.mxu0 %v4055_v17 }
 0xaf2   : > { %v2201_v44 = vpop.f32.mrf.mxu0 }
 0xaf3   : > { %v2202_v45 = vadd.f32 %v3515_v43, %v2201_v44 }
 0xaf4   : > { %v3697_v46 = vpop.f32.mrf.mxu0 }
 0xaf5   : > { %2415 = vrot.lane.b32.xlu1 %v2202_v45, %s4057_s27  ;;  %3710 = vmatmul.mubr.msk.f32.vlgmr.msra.gmra.mxu0 %vm1458_vm3, %v2202_v45 }
 0xaf6   : > { %v2204_v47 = vpop.f32.mrf.mxu0  ;;  %3719 = vmatpush3.xpose.msk.msra.mxu0 %vm1458_vm3, %v2418_v35  ;;  %3720 = vmatprep.mubr.msk.f32.mxu0 %vm4056_vm1, %v4055_v17 }
 0xaf7   : > { %3723 = vmatprep.subr.bf16.mxu0 %v4055_v17 }
 0xaf8   : > { %v3698_v48 = vpop.f32.mrf.mxu0 }
 0xb67   : > { %v2416_v49 = vpop.permute.xlu1 %2415 }
 0xb68   : > { %3721 = vmatmul.mubr.msk.f32.vlgmr.msra.gmra.mxu0 %vm1458_vm3, %v2416_v49 }
 0xb69   : > { %3725 = vmatprep.mubr.msk.bf16.mxu0 %vm4056_vm1, %v4055_v17 }
 0xbb5   : > { %v2341_v50 = vpop.f32.mrf.mxu0 }
 0xbb6   : > { %v2345_v52 = vmul.f32 0.35355338, %v2341_v50 }
 0xbb7   : > { %v3711_v53 = vpop.f32.mrf.mxu0 }
 0xbb8   : > { %v2352_v54 = vadd.f32 %v4645_v51, %v2345_v52 }
 0xbba   : > { %v2353_v55 = vsel %vm1458_vm3, %v2352_v54, -inf }
 0xbbb   : > { %2354 = vmax.xlane.f32.xlu0 %v2353_v55 }
 0xc28   : > { %v2489_v56 = vpop.f32.mrf.mxu0 }
 0xc29   : > { %v2493_v57 = vmul.f32 0.35355338, %v2489_v56 }
 0xc2a   : > { %v3722_v58 = vpop.f32.mrf.mxu0 }
 0xc2b   : > { %v2494_v59 = vadd.f32 %v4645_v51, %v2493_v57 }
 0xc2d   : > { %v2495_v60 = vsel %vm1458_vm3, %v2494_v59, -inf }
 0xc2e   : > { %2496 = vmax.xlane.f32.xlu1 %v2495_v60 }
 0xc3f   : > { %2367 = vrot.lane.b32.xlu1 %v4651_v61, %s4061_s11  ;;  %s4926_s11 = sld [smem:[#allocation39_spill]] }
 0xc43   : > { %2557 = vrot.lane.b32.xlu1 %v2264_v39, %s4059_s21 }
 0xc44   : > { %v2355_v62 = vpop.xlane.xlu0 %2354 }
 0xc45   : > { %v2356_v63 = vsub.f32 %v2352_v54, %v2355_v62 }
 0xc47   : > { %v2357_v0 = vmul.f32 1.442695, %v2356_v63  ;;  %2697 = vrot.lane.b32.xlu1 %v2264_v39, %s4060_s25 }
 0xc49   : > { %3905 = vpow2.f32 %v2357_v0 }
 0xc4b   : > { %2695 = vrot.lane.b32.xlu1 %v2202_v45, %s4060_s25 }
 0xc56   : > { %v3906_v1 = vpop.eup %3905 }
 0xc57   : > { %v2359_v2 = vsel %vm1458_vm3, %v3906_v1, 0.0 }
 0xc58   : > { %2360 = vadd.xlane.f32.xlu0 %v2359_v2 }
 0xcb7   : > { %v2497_v3 = vpop.xlane.xlu1 %2496 }
 0xcb8   : > { %v2498_v4 = vsub.f32 %v2494_v59, %v2497_v3 }
 0xcba   : > { %v2499_v5 = vmul.f32 1.442695, %v2498_v4 }
 0xcbb   : > { %v2368_v6 = vpop.permute.xlu1 %2367 }
 0xcbc   : > { %3907 = vpow2.f32 %v2499_v5  ;;  %v2373_v7 = vsel %vm1556_vm4, %v2368_v6, 0 }
 0xcbd   : > { %3713 = vmatpush3.bf16.msra.mxu1 %v2373_v7 }
 0xcbe   : > { %3729 = vmatprep.subr.mxu1 %v4055_v17 }
 0xcbf   : > { %v2558_v14 = vpop.permute.xlu1 %2557 }
 0xcc3   : > { %v2698_v23 = vpop.permute.xlu1 %2697 }
 0xcc7   : > { %v2696_v24 = vpop.permute.xlu1 %2695 }
 0xcc9   : > { %v3908_v8 = vpop.eup %3907 }
 0xcca   : > { %v2501_v9 = vsel %vm1458_vm3, %v3908_v8, 0.0 }
 0xccb   : > { %2502 = vadd.xlane.f32.xlu0 %v2501_v9 }
 0xce1   : > { %v2361_v10 = vpop.xlane.xlu0 %2360  ;;  %2507 = vrot.lane.b32.xlu0 %v4651_v61, %s4058_s16  ;;  %s4925_s16 = sld [smem:[#allocation22_spill]] }
 0xce2   : > { %3909 = vrcp.f32 %v2361_v10 }
 0xce5   : > { %2555 = vrot.lane.b32.xlu0 %v2202_v45, %s4059_s21 }
 0xce7   : > { %v3879_v2 = vld [vmem:[%s4925_s16 + $0x8] sm:$0xff]   ;;  %v3880_v3 = vld [vmem:[%s4925_s16] sm:$0xff]  }
 0xcef   : > { %v3910_v11 = vpop.eup %3909 }
 0xcf0   : > { %v2363_v12 = vmul.f32 %v3910_v11, %v3906_v1 }
 0xcf2   : > { %v2364_v13 = vpack.c.bf16 %v2363_v12, %v2363_v12 }
 0xcf4   : > { %3715 = vmatmul.mubr.msk.bf16.vlgmr.msra.gmra.mxu1 %vm1458_vm3, %v2364_v13 }
 0xcf5   : > { %3730 = vmatpush3.xpose.msk.msra.mxu1 %vm1458_vm3, %v2558_v14  ;;  %3731 = vmatprep.mubr.msk.f32.mxu1 %vm4056_vm1, %v4055_v17 }
 0xcf6   : > { %3734 = vmatprep.subr.bf16.mxu1 %v4055_v17 }
 0xd54   : > { %v2503_v15 = vpop.xlane.xlu0 %2502 }
 0xd55   : > { %3911 = vrcp.f32 %v2503_v15 }
 0xd58   : > { %v2508_v16 = vpop.permute.xlu0 %2507 }
 0xd59   : > { %v2513_v18 = vsel %vm1556_vm4, %v2508_v16, 0 }
 0xd5a   : > { %3724 = vmatpush3.bf16.msra.mxu0 %v2513_v18 }
 0xd5b   : > { %3740 = vmatprep.subr.mxu0 %v4055_v17 }
 0xd5c   : > { %v2556_v19 = vpop.permute.xlu0 %2555 }
 0xd5d   : > { %3732 = vmatmul.mubr.msk.f32.vlgmr.msra.gmra.mxu1 %vm1458_vm3, %v2556_v19 }
 0xd5e   : > { %3736 = vmatprep.mubr.msk.bf16.mxu1 %vm4056_vm1, %v4055_v17 }
 0xd62   : > { %v3912_v20 = vpop.eup %3911 }
 0xd63   : > { %v2505_v21 = vmul.f32 %v3912_v20, %v3908_v8 }
 0xd65   : > { %v2506_v22 = vpack.c.bf16 %v2505_v21, %v2505_v21 }
 0xd67   : > { %3726 = vmatmul.mubr.msk.bf16.vlgmr.msra.gmra.mxu0 %vm1458_vm3, %v2506_v22 }
 0xd68   : > { %3741 = vmatpush3.xpose.msk.msra.mxu0 %vm1458_vm3, %v2698_v23  ;;  %3742 = vmatprep.mubr.msk.f32.mxu0 %vm4056_vm1, %v4055_v17 }
 0xd69   : > { %3745 = vmatprep.subr.bf16.mxu0 %v4055_v17 }
 0xd6f   : > { %3743 = vmatmul.mubr.msk.f32.vlgmr.msra.gmra.mxu0 %vm1458_vm3, %v2696_v24 }
 0xd70   : > { %3747 = vmatprep.mubr.msk.bf16.mxu0 %vm4056_vm1, %v4055_v17 }
 0xdb4   : > { %v4683_v25 = vpop.f32.mrf.mxu1 }
 0xdb6   : > { %v3716_v26 = vpop.f32.mrf.mxu1 }
 0xdb8   : > { %v2412_v27 = vpop.f32.mrf.mxu1 }
 0xdba   : > { %v3717_v28 = vpop.f32.mrf.mxu1 }
 0xe1d   : > { %v2629_v29 = vpop.f32.mrf.mxu1 }
 0xe1e   : > { %v2633_v30 = vmul.f32 0.35355338, %v2629_v29 }
 0xe1f   : > { %v3733_v31 = vpop.f32.mrf.mxu1 }
 0xe20   : > { %v2634_v32 = vadd.f32 %v4645_v51, %v2633_v30 }
 0xe22   : > { %v2635_v33 = vsel %vm1458_vm3, %v2634_v32, -inf }
 0xe23   : > { %2636 = vmax.xlane.f32.xlu0 %v2635_v33  ;;  %v3881_v33 = vld [vmem:[%s4433_s1 + $0x8] sm:$0xff]  }
 0xe27   : > { %v2549_v36 = vpop.f32.mrf.mxu0 }
 0xe29   : > { %v3727_v37 = vpop.f32.mrf.mxu0 }
 0xe2a   : > { %v3884_v37 = vld [vmem:[%s4443_s19 + $0x10] sm:$0xff]  }
 0xe2b   : > { %v2552_v38 = vpop.f32.mrf.mxu0 }
 0xe2d   : > { %v3728_v39 = vpop.f32.mrf.mxu0 }
 0xe2f   : > { %v2769_v40 = vpop.f32.mrf.mxu0 }
 0xe30   : > { %v2773_v41 = vmul.f32 0.35355338, %v2769_v40 }
 0xe31   : > { %v3744_v42 = vpop.f32.mrf.mxu0 }
 0xe32   : > { %v2774_v43 = vadd.f32 %v4645_v51, %v2773_v41 }
 0xe34   : > { %v2775_v44 = vsel %vm1458_vm3, %v2774_v43, -inf }
 0xe35   : > { %2776 = vmax.xlane.f32.xlu1 %v2775_v44  ;;  %v3541_v44 = vld [vmem:[%s4930_s23] ss:$0 sm:$0xff] }
 0xe46   : > { %2647 = vrot.lane.b32.xlu1 %v4651_v61, %s4064_s22  ;;  %s4928_s22 = scalar_lea.vmem %s4816_s20, %s4342_s4 }
 0xe47   : > { %v3540_v42 = vld [vmem:[%s4928_s22] ss:$0 sm:$0xff] }
 0xe4a   : > { %2836 = vrot.lane.b32.xlu1 %v2549_v36, %s4063_s2  ;;  %v3882_v36 = vld [vmem:[%s4433_s1] sm:$0xff]  }
 0xeac   : > { %v2637_v45 = vpop.xlane.xlu0 %2636 }
 0xead   : > { %v2638_v35 = vsub.f32 %v2634_v32, %v2637_v45 }
 0xeaf   : > { %v2639_v46 = vmul.f32 1.442695, %v2638_v35 }
 0xeb1   : > { %3913 = vpow2.f32 %v2639_v46 }
 0xebe   : > { %v3914_v47 = vpop.eup %3913  ;;  %v2777_v48 = vpop.xlane.xlu1 %2776 }
 0xebf   : > { %v2778_v49 = vsub.f32 %v2774_v43, %v2777_v48  ;;  %v2641_v50 = vsel %vm1458_vm3, %v3914_v47, 0.0  ;;  %v3886_v48 = vld [vmem:[%s4443_s19] sm:$0xff]  }
 0xec0   : > { %2642 = vadd.xlane.f32.xlu0 %v2641_v50 }
 0xec1   : > { %v2779_v52 = vmul.f32 1.442695, %v2778_v49  ;;  %v3542_v49 = vld [vmem:[%s1267_s18] ss:$0 sm:$0xff] }
 0xec2   : > { %v2648_v51 = vpop.permute.xlu1 %2647 }
 0xec3   : > { %3915 = vpow2.f32 %v2779_v52  ;;  %v2653_v53 = vsel %vm1556_vm4, %v2648_v51, 0 }
 0xec4   : > { %3735 = vmatpush3.bf16.msra.mxu1 %v2653_v53 }
 0xec5   : > { %3751 = vmatprep.subr.bf16.mxu1 %v4055_v17 }
 0xec6   : > { %v2837_v12 = vpop.permute.xlu1 %2836 }
 0xec7   : > { %v2847_v14 = vsel %vm1458_vm3, %v4683_v25, %v2837_v12 }
 0xed0   : > { %v3916_v54 = vpop.eup %3915 }
 0xed1   : > { %v2781_v55 = vsel %vm1458_vm3, %v3916_v54, 0.0 }
 0xed2   : > { %2782 = vadd.xlane.f32.xlu0 %v2781_v55 }
 0xee8   : > { %2787 = vrot.lane.b32.xlu0 %v4651_v61, %s4062_s10  ;;  %s4927_s10 = scalar_lea.vmem %s4926_s11, %s4342_s4 }
 0xee9   : > { %v3536_v20 = vld [vmem:[%s4927_s10] ss:$0 sm:$0xff] }
 0xf49   : > { %v2643_v56 = vpop.xlane.xlu0 %2642 }
 0xf4a   : > { %3917 = vrcp.f32 %v2643_v56 }
 0xf57   : > { %v3918_v57 = vpop.eup %3917 }
 0xf58   : > { %v2645_v58 = vmul.f32 %v3918_v57, %v3914_v47  ;;  %v3885_v47 = vld [vmem:[%s4443_s19 + $0x8] sm:$0xff]  }
 0xf5a   : > { %v2646_v59 = vpack.c.bf16 %v2645_v58, %v2645_v58 }
 0xf5b   : > { %v2783_v60 = vpop.xlane.xlu0 %2782 }
 0xf5c   : > { %3919 = vrcp.f32 %v2783_v60  ;;  %3737 = vmatmul.mubr.msk.bf16.vlgmr.msra.gmra.mxu1 %vm1458_vm3, %v2646_v59 }
 0xf5d   : > { %3755 = vmatprep.mubr.msk.bf16.mxu1 %vm4056_vm1, %v4055_v17  ;;  %3752 = vmatpush3.bf16.msra.mxu1 %v3879_v2 }
 0xf5e   : > { %3753 = vmatprep.subr.bf16.mxu1 %v4055_v17 }
 0xf5f   : > { %v2788_v62 = vpop.permute.xlu0 %2787 }
 0xf60   : > { %v2793_v63 = vsel %vm1556_vm4, %v2788_v62, 0 }
 0xf61   : > { %3746 = vmatpush3.bf16.msra.mxu0 %v2793_v63  ;;  %3754 = vmatpush3.bf16.msra.mxu1 %v3880_v3 }
 0xf62   : > { %3759 = vmatprep.subr.bf16.mxu0 %v4055_v17  ;;  %3767 = vmatprep.subr.bf16.mxu1 %v4055_v17 }
 0xf69   : > { %v3920_v61 = vpop.eup %3919 }
 0xf6a   : > { %v2785_v0 = vmul.f32 %v3920_v61, %v3916_v54 }
 0xf6c   : > { %v2786_v1 = vpack.c.bf16 %v2785_v0, %v2785_v0 }
 0xf6e   : > { %3748 = vmatmul.mubr.msk.bf16.vlgmr.msra.gmra.mxu0 %vm1458_vm3, %v2786_v1 }
 0xf6f   : > { %3763 = vmatprep.mubr.msk.bf16.mxu0 %vm4056_vm1, %v4055_v17  ;;  %3760 = vmatpush3.bf16.msra.mxu0 %v3881_v33 }
 0xf70   : > { %3761 = vmatprep.subr.bf16.mxu0 %v4055_v17 }
 0xf73   : > { %3762 = vmatpush3.bf16.msra.mxu0 %v3882_v36 }
0x101c   : > { %v2689_v4 = vpop.f32.mrf.mxu1 }
0x101d   : > { %2840 = vrot.lane.b32.xlu1 %v2689_v4, %s4065_s24 }
0x101e   : > { %v3738_v5 = vpop.f32.mrf.mxu1 }
0x1020   : > { %v2692_v6 = vpop.f32.mrf.mxu1 }
0x1022   : > { %v3739_v7 = vpop.f32.mrf.mxu1 }
0x102e   : > { %v2829_v8 = vpop.f32.mrf.mxu0 }
0x102f   : > { %2844 = vrot.lane.b32.xlu0 %v2829_v8, %s4066_s6 }
0x1030   : > { %v3749_v9 = vpop.f32.mrf.mxu0 }
0x1032   : > { %v2832_v10 = vpop.f32.mrf.mxu0 }
0x1034   : > { %v3750_v11 = vpop.f32.mrf.mxu0 }
0x108f   : > { %v2841_v13 = vpop.permute.xlu1 %2840 }
0x1090   : > { %v2848_v15 = vsel %vm2033_vm5, %v2847_v14, %v2841_v13 }
0x10a1   : > { %v2845_v16 = vpop.permute.xlu0 %2844 }
0x10a2   : > { %v2849_v18 = vsel %vm2035_vm6, %v2848_v15, %v2845_v16 }
0x10a3   : > { %v2850_v19 = vpack.c.bf16 %v2849_v18, %v2849_v18 }
0x10a5   : > { %3756 = vmatmul.mubr.msk.bf16.vlgmr.msra.gmra.mxu1 %vm1356_vm2, %v2850_v19 }
0x10a6   : > { %3775 = vmatprep.mubr.msk.bf16.mxu1 %vm4056_vm1, %v4055_v17 }
0x1165   : > { %v2906_v21 = vpop.f32.mrf.mxu1 }
0x1166   : > { %v2907_v22 = vadd.f32 %v3536_v20, %v2906_v21 }
0x1167   : > { %v3757_v23 = vpop.f32.mrf.mxu1 }
0x1168   : > { %v2912_v24 = vadd.f32 %v2907_v22, %v4611_v34  ;;  %v3883_v34 = vld [vmem:[%s4443_s19 + $0x18] sm:$0xff]   ;;  %s4933_s19 = sld [smem:[#allocation18_spill]] }
0x1169   : > { %v2909_v25 = vpop.f32.mrf.mxu1  ;;  %3768 = vmatpush3.bf16.msra.mxu1 %v3883_v34 }
0x116a   : > { %v2915_v26 = vsel %vm1356_vm2, %v2912_v24, 0.0  ;;  %3769 = vmatprep.subr.bf16.mxu1 %v4055_v17 }
0x116b   : > { %2916 = vadd.xlane.f32.xlu1 %v2915_v26  ;;  %v3758_v27 = vpop.f32.mrf.mxu1 }
0x116d   : > { %3770 = vmatpush3.bf16.msra.mxu1 %v3884_v37 }
0x116e   : > { %3771 = vmatprep.subr.bf16.mxu1 %v4055_v17  ;;  %s4934_s18 = scalar_lea.vmem [#allocation3], %s4933_s19  ;;  %s4935_s4 = scalar_lea.vmem [#allocation5], %s4933_s19 }
0x116f   : > { %v3552_v9 = vld [vmem:[%s4934_s18] ss:$0 sm:$0xff] }
0x1170   : > { %v3553_v11 = vld [vmem:[%s4935_s4] ss:$0 sm:$0xff] }
0x1171   : > { %3772 = vmatpush3.bf16.msra.mxu1 %v3885_v47 }
0x1172   : > { %3773 = vmatprep.subr.bf16.mxu1 %v4055_v17  ;;  %v3546_v17 = vld [vmem:[%s1275_s28] ss:$0 sm:$0xff]  ;;  %s4936_s28 = sld [smem:[#allocation11_spill]] }
0x1175   : > { %3774 = vmatpush3.bf16.msra.mxu1 %v3886_v48 }
0x1178   : > { %p3554_p4 = scmp.ne.s32.totalorder %s4936_s28, 1 }
0x11f4   : > { %v2917_v28 = vpop.xlane.xlu1 %2916 }
0x11f5   : > { %v2918_v29 = vmul.f32 0.03125, %v2917_v28 }
0x11f7   : > { %v2919_v30 = vsub.f32 %v2912_v24, %v2918_v29 }
0x11f9   : > { %v2920_v31 = vmul.f32 %v2919_v30, %v2919_v30 }
0x11fb   : > { %v2921_v32 = vsel %vm1356_vm2, %v2920_v31, 0.0 }
0x11fc   : > { %2922 = vadd.xlane.f32.xlu0 %v2921_v32 }
0x1285   : > { %v2923_v38 = vpop.xlane.xlu0 %2922 }
0x1286   : > { %v2924_v39 = vmul.f32 0.03125, %v2923_v38 }
0x1288   : > { %v2925_v40 = vadd.f32 1e-05, %v2924_v39 }
0x128a   : > { %3921 = vrsqrt.f32 %v2925_v40 }
0x1297   : > { %v3922_v41 = vpop.eup %3921 }
0x1298   : > { %v2927_v43 = vmul.f32 %v3922_v41, %v2919_v30 }
0x129a   : > { %v2934_v45 = vmul.f32 %v3540_v42, %v2927_v43 }
0x129c   : > { %v2941_v35 = vadd.f32 %v3541_v44, %v2934_v45 }
0x129e   : > { %v2956_v46 = vpack.c.bf16 %v2941_v35, %v2941_v35 }
0x12a0   : > { %3764 = vmatmul.mubr.msk.bf16.vlgmr.msra.gmra.mxu0 %vm1356_vm2, %v2956_v46 }
0x1360   : > { %v3012_v50 = vpop.f32.mrf.mxu0 }
0x1361   : > { %v3013_v52 = vadd.f32 %v3542_v49, %v3012_v50 }
0x1362   : > { %v3765_v51 = vpop.f32.mrf.mxu0 }
0x1363   : > { %v3018_v53 = vmax.f32 %v3013_v52, 0.0 }
0x1364   : > { %v3015_v54 = vpop.f32.mrf.mxu0 }
0x1365   : > { %v3019_v55 = vpack.c.bf16 %v3018_v53, %v3018_v53 }
0x1366   : > { %v3766_v56 = vpop.f32.mrf.mxu0 }
0x1367   : > { %3776 = vmatmul.mubr.msk.bf16.vlgmr.msra.gmra.mxu1 %vm3050_vm7, %v3019_v55 }
0x1427   : > { %v3088_v57 = vpop.f32.mrf.mxu1 }
0x1428   : > { %v3089_v58 = vadd.f32 %v3546_v17, %v3088_v57 }
0x1429   : > { %v3777_v59 = vpop.f32.mrf.mxu1 }
0x142a   : > { %v3094_v60 = vadd.f32 %v3089_v58, %v2941_v35 }
0x142b   : > { %v3091_v62 = vpop.f32.mrf.mxu1 }
0x142c   : > { %v3097_v63 = vsel %vm1356_vm2, %v3094_v60, 0.0 }
0x142d   : > { %3098 = vadd.xlane.f32.xlu0 %v3097_v63  ;;  %v3778_v61 = vpop.f32.mrf.mxu1 }
0x14b6   : > { %v3099_v0 = vpop.xlane.xlu0 %3098 }
0x14b7   : > { %v3100_v1 = vmul.f32 0.03125, %v3099_v0 }
0x14b9   : > { %v3101_v2 = vsub.f32 %v3094_v60, %v3100_v1 }
0x14bb   : > { %v3102_v3 = vmul.f32 %v3101_v2, %v3101_v2 }
0x14bd   : > { %v3103_v4 = vsel %vm1356_vm2, %v3102_v3, 0.0 }
0x14be   : > { %3104 = vadd.xlane.f32.xlu1 %v3103_v4 }
0x1547   : > { %v3105_v5 = vpop.xlane.xlu1 %3104 }
0x1548   : > { %v3106_v6 = vmul.f32 0.03125, %v3105_v5 }
0x154a   : > { %v3107_v7 = vadd.f32 1e-05, %v3106_v6 }
0x154c   : > { %3923 = vrsqrt.f32 %v3107_v7 }
0x1559   : > { %v3924_v8 = vpop.eup %3923 }
0x155a   : > { %v3109_v10 = vmul.f32 %v3924_v8, %v3101_v2 }
0x155c   : > { %v3116_v12 = vmul.f32 %v3552_v9, %v3109_v10  ;;  %3128 = sbr.rel (%p3554_p4) target bundleno = 5474 (0x1562), region = 148 }
0x155e   : > { %v3123_v13 = vadd.f32 %v3553_v11, %v3116_v12 }
0x1560   : > { %3124 = vst.msk [vmem:[#allocation2] sm:$0xff] %vm1356_vm2, %v3123_v13 }
0x1561   : > { %3129 = vst.msk [vmem:[%s1279_s14] sm:$0xff] %vm1356_vm2, %v3123_v13 }
0x1562 PF: > { %s4938_s16 = sld [smem:[#allocation14_spill]] }
0x1563   : > { %s4939_s8 = sld [smem:[#allocation9_spill]] }
0x1564   : > { %s4940_s5 = sld [smem:[#allocation10_spill]] }
0x1565   : > { %s4941_s9 = sld [smem:[#allocation17_spill]] }
0x1566   : > { %s4942_s30 = sld [smem:[#allocation12_spill]] }
0x1567   : > { %s4943_s3 = sld [smem:[#allocation13_spill]] }
0x1568   : > { %s44_s0 = sadd.s32 1, %s4938_s16   ;;  %s4944_s6 = sld [smem:[#allocation15_spill]] }
0x1569   : > { %p41_p5 = scmp.ge.s32.totalorder %s44_s0, 6   ;;  %s4945_s10 = sld [smem:[#allocation16_spill]] }
0x156b   :  { %43 = sbr.rel (!%p41_p5) target bundleno = 33 (0x21), region = 262 }
0x1570   :  { %3149 = vsyncpa [#allocation4], 1 }
0x1571   :  { %3151 = vsyncpa [#allocation4 + $0x1], 1 }
0x1572   :  { %3152 = vsyncpa [#allocation6], 1 }
0x1573   :  { %3154 = vsyncpa [#allocation6 + $0x1], 1 }

</bundles_post_ra>
